<compile_context>
chip_gen: v7x
topology: tpu7x:2x2x1
jax: 0.10.0
libtpu: 0.0.40
codegen_flags: <defaults>
</compile_context>

<pallas_src>
import functools

import numpy as np
import jax
import jax.numpy as jnp
from jax.experimental import pallas as pl
from jax.experimental.pallas import tpu as pltpu


# ----------------------------- tiling helpers ------------------------------

def _pick_tile(dim, cap, mult):
    """Largest divisor of `dim` that is <= cap and a multiple of `mult`; else full dim."""
    if dim <= cap:
        return dim
    t = (cap // mult) * mult
    while t >= mult:
        if dim % t == 0:
            return t
        t -= mult
    return dim


def _row_tile(m, cap=512):
    """Row (sublane) tile: divides m, multiple of 8 when possible, and prefers
    >= 2 row blocks so the parallel M axis can shard across v7x's two
    TensorCores (no downside beyond one extra ~0.35us grid step on v5e/v6e)."""
    half = (m // 2) // 8 * 8
    target = half if 8 <= half < m else m
    return _pick_tile(m, min(target, cap), 8)


# ----------------------------- Pallas kernels ------------------------------

def _fused_mm_kernel(*refs, nk, has_ln, has_bias, has_res, activation):
    i = 0
    x_ref = refs[i]; i += 1
    w_ref = refs[i]; i += 1
    if has_ln:
        g_ref = refs[i]; i += 1
        bl_ref = refs[i]; i += 1
    if has_bias:
        b_ref = refs[i]; i += 1
    if has_res:
        r_ref = refs[i]; i += 1
    o_ref = refs[i]

    x = x_ref[...].astype(jnp.float32)
    if has_ln:
        # LayerNorm prologue: valid because tk == K (full row in this block).
        mu = jnp.mean(x, axis=-1, keepdims=True)
        xc = x - mu
        var = jnp.mean(xc * xc, axis=-1, keepdims=True)
        x = (xc * jax.lax.rsqrt(var + 1e-5)) * g_ref[...].astype(jnp.float32) \
            + bl_ref[...].astype(jnp.float32)

    # bf16 MXU operands, f32 accumulation.
    prod = jnp.dot(x.astype(jnp.bfloat16), w_ref[...].astype(jnp.bfloat16),
                   preferred_element_type=jnp.float32)

    def epilogue(acc):
        if has_bias:
            acc = acc + b_ref[...].astype(jnp.float32)
        if activation == "gelu":
            # TODO(synk): PyTorch nn.GELU defaults to exact erf; tanh approx used
            # here for Mosaic-friendly lowering (~1e-3 difference).
            acc = jax.nn.gelu(acc, approximate=True)
        if has_res:
            acc = acc + r_ref[...].astype(jnp.float32)
        return acc.astype(o_ref.dtype)

    if nk == 1:                       # the only path exercised at these sizes
        o_ref[...] = epilogue(prod)
    else:                             # generic K-tiled path: accumulate in o_ref (f32)
        @pl.when(pl.program_id(2) == 0)
        def _():
            o_ref[...] = jnp.zeros_like(o_ref)
        o_ref[...] += prod

        @pl.when(pl.program_id(2) == nk - 1)
        def _():
            o_ref[...] = epilogue(o_ref[...])


def matmul_fused(x, w, bias=None, residual=None, ln=None, activation=None):
    """(M,K) @ (K,N) with optional fused LayerNorm prologue (needs tk == K),
    bias, GELU and residual epilogue.  bf16 operands, f32 accumulation."""
    M, K = x.shape
    N = w.shape[1]
    tm = _row_tile(M)
    tn = _pick_tile(N, 512, 128)
    tk = K if ln is not None else _pick_tile(K, 512, 128)
    nk = K // tk
    if ln is not None and nk != 1:
        raise ValueError("LayerNorm fusion requires tk == K")
    grid = (M // tm, N // tn, nk)

    in_specs = [pl.BlockSpec((tm, tk), lambda i, j, k: (i, k)),
                pl.BlockSpec((tk, tn), lambda i, j, k: (k, j))]
    args = [x, w]
    if ln is not None:
        g, b_ln = ln
        in_specs += [pl.BlockSpec((1, K), lambda i, j, k: (0, 0)),
                     pl.BlockSpec((1, K), lambda i, j, k: (0, 0))]
        args += [g.reshape(1, K), b_ln.reshape(1, K)]
    if bias is not None:
        in_specs.append(pl.BlockSpec((1, tn), lambda i, j, k: (0, j)))
        args.append(bias.reshape(1, N))
    if residual is not None:
        in_specs.append(pl.BlockSpec((tm, tn), lambda i, j, k: (i, j)))
        args.append(residual)

    return pl.pallas_call(
        functools.partial(_fused_mm_kernel, nk=nk, has_ln=ln is not None,
                          has_bias=bias is not None, has_res=residual is not None,
                          activation=activation),
        grid=grid,
        in_specs=in_specs,
        out_specs=pl.BlockSpec((tm, tn), lambda i, j, k: (i, j)),
        out_shape=jax.ShapeDtypeStruct((M, N), x.dtype),
        compiler_params=pltpu.CompilerParams(
            dimension_semantics=("parallel", "parallel", "arbitrary")),
    )(*args)


def _ln_kernel(x_ref, g_ref, b_ref, o_ref):
    x = x_ref[...].astype(jnp.float32)
    mu = jnp.mean(x, axis=-1, keepdims=True)
    xc = x - mu
    var = jnp.mean(xc * xc, axis=-1, keepdims=True)
    o_ref[...] = ((xc * jax.lax.rsqrt(var + 1e-5)) * g_ref[...].astype(jnp.float32)
                  + b_ref[...].astype(jnp.float32)).astype(o_ref.dtype)


def layernorm(x, g, b):
    """Standalone LayerNorm (only used for the final pre-pool norm)."""
    M, C = x.shape
    tm = _row_tile(M, 1024)
    return pl.pallas_call(
        _ln_kernel,
        grid=(M // tm,),
        in_specs=[pl.BlockSpec((tm, C), lambda i: (i, 0)),
                  pl.BlockSpec((1, C), lambda i: (0, 0)),
                  pl.BlockSpec((1, C), lambda i: (0, 0))],
        out_specs=pl.BlockSpec((tm, C), lambda i: (i, 0)),
        out_shape=jax.ShapeDtypeStruct((M, C), x.dtype),
        compiler_params=pltpu.CompilerParams(dimension_semantics=("parallel",)),
    )(x, g.reshape(1, C), b.reshape(1, C))


def _win_attn_kernel(qkv_ref, bias_ref, o_ref, *, scale):
    # qkv_ref: (3, n_win*heads, Wl, dh) head-major -> zero lane slicing / concat.
    q = qkv_ref[0].astype(jnp.bfloat16)
    k = qkv_ref[1].astype(jnp.bfloat16)
    v = qkv_ref[2].astype(jnp.bfloat16)
    s = jnp.einsum("bqd,bkd->bqk", q, k, preferred_element_type=jnp.float32)
    s = s * scale + bias_ref[...].astype(jnp.float32)   # rel-pos bias (+ shift mask)
    s = s - jnp.max(s, axis=-1, keepdims=True)
    p = jnp.exp(s)
    p = p * pl.reciprocal(jnp.sum(p, axis=-1, keepdims=True), approx=True)
    o = jnp.einsum("bqk,bkd->bqd", p.astype(jnp.bfloat16), v,
                   preferred_element_type=jnp.float32)
    o_ref[...] = o.astype(o_ref.dtype)


def window_attention(qkv, attn_bias, nwh, scale):
    """qkv: (3, B*nwh, Wl, dh) head-major; attn_bias: (nwh, Wl, Wl).
    One grid step per image -> B (=2) parallel steps (both v7x TensorCores)."""
    _, BN, Wl, dh = qkv.shape
    B = BN // nwh
    return pl.pallas_call(
        functools.partial(_win_attn_kernel, scale=scale),
        grid=(B,),
        in_specs=[pl.BlockSpec((3, nwh, Wl, dh), lambda b: (0, b, 0, 0)),
                  pl.BlockSpec((nwh, Wl, Wl), lambda b: (0, 0, 0))],
        out_specs=pl.BlockSpec((nwh, Wl, dh), lambda b: (b, 0, 0)),
        out_shape=jax.ShapeDtypeStruct((BN, Wl, dh), qkv.dtype),
        compiler_params=pltpu.CompilerParams(dimension_semantics=("parallel",)),
    )(qkv, attn_bias)


# ------------------------------ model glue ---------------------------------

def rel_pos_index(ws):
    coords = np.stack(np.meshgrid(np.arange(ws), np.arange(ws), indexing="ij"))
    cf = coords.reshape(2, -1)
    rel = (cf[:, :, None] - cf[:, None, :]).transpose(1, 2, 0).astype(np.int64)
    rel[:, :, 0] += ws - 1
    rel[:, :, 1] += ws - 1
    rel[:, :, 0] *= 2 * ws - 1
    return rel.sum(-1)  # (Wl, Wl)


def make_attn_mask(H, W, ws, shift):
    img_mask = np.zeros((H, W), np.float32)
    slices = (slice(0, -ws), slice(-ws, -shift), slice(-shift, None))
    cnt = 0
    for hs in slices:
        for wss in slices:
            img_mask[hs, wss] = cnt
            cnt += 1
    mw = img_mask.reshape(H // ws, ws, W // ws, ws).transpose(0, 2, 1, 3).reshape(-1, ws * ws)
    diff = mw[:, None, :] - mw[:, :, None]
    return np.where(diff != 0, -100.0, 0.0).astype(np.float32)  # (n_win, Wl, Wl)


def trunc_normal(key, shape, std=0.02):
    return (std * jax.random.truncated_normal(key, -2.0, 2.0, shape)).astype(jnp.float32)


def mxu_weight(key, shape, std=0.02):
    # Weights stored bf16 at build time so no per-call cast of weight tensors.
    return trunc_normal(key, shape, std).astype(jnp.bfloat16)


def build_model(key, cfg):
    keys = iter(jax.random.split(key, 128))
    dim, p, img = cfg["dim"], cfg["patch_size"], cfg["img_size"]
    Hp = Wp = img // p
    params = {
        "patch_w": mxu_weight(next(keys), (3 * p * p, dim)),
        "patch_b": jnp.zeros((dim,), jnp.float32),
        "pos_embed": trunc_normal(next(keys), (1, Hp * Wp, dim)),
    }
    layers, block_cfgs = [], []
    res = (Hp, Wp)
    num_layers = len(cfg["depths"])
    for il in range(num_layers):
        C = dim * 2 ** il
        heads = cfg["heads"][il]
        hidden = int(C * cfg["mlp_ratio"])
        blocks, bcfgs = [], []
        for bi in range(cfg["depths"][il]):
            ws = cfg["window_size"]
            shift = 0 if bi % 2 == 0 else ws // 2
            if min(res) <= ws:          # standard Swin clamp
                ws = min(res)
                shift = 0
            Wl = ws * ws
            n_win = (res[0] // ws) * (res[1] // ws)
            table = trunc_normal(next(keys), ((2 * ws - 1) ** 2, heads))
            idx = rel_pos_index(ws)
            rel = table[idx.reshape(-1)].reshape(Wl, Wl, heads).transpose(2, 0, 1)
            # Pre-combine rel-pos bias with the shift mask per (window, head) so
            # the attention kernel does a single add and never tiles the mask.
            attn_bias = jnp.broadcast_to(rel[None], (n_win, heads, Wl, Wl))
            if shift > 0:
                m = jnp.asarray(make_attn_mask(res[0], res[1], ws, shift))
                attn_bias = attn_bias + m[:, None, :, :]
            attn_bias = attn_bias.reshape(n_win * heads, Wl, Wl).astype(jnp.float32)
            blocks.append(dict(
                norm1_g=jnp.ones((C,), jnp.float32), norm1_b=jnp.zeros((C,), jnp.float32),
                qkv_w=mxu_weight(next(keys), (C, 3 * C)), qkv_b=jnp.zeros((3 * C,), jnp.float32),
                proj_w=mxu_weight(next(keys), (C, C)), proj_b=jnp.zeros((C,), jnp.float32),
                norm2_g=jnp.ones((C,), jnp.float32), norm2_b=jnp.zeros((C,), jnp.float32),
                fc1_w=mxu_weight(next(keys), (C, hidden)), fc1_b=jnp.zeros((hidden,), jnp.float32),
                fc2_w=mxu_weight(next(keys), (hidden, C)), fc2_b=jnp.zeros((C,), jnp.float32),
                attn_bias=attn_bias,
            ))
            bcfgs.append(dict(ws=ws, shift=shift, heads=heads, res=res, n_win=n_win))
        layer = {"blocks": blocks}
        if il < num_layers - 1:
            layer["downsample"] = dict(
                norm_g=jnp.ones((4 * C,), jnp.float32),
                norm_b=jnp.zeros((4 * C,), jnp.float32),
                red_w=mxu_weight(next(keys), (4 * C, 2 * C)),
            )
            next_res = (res[0] // 2, res[1] // 2)
        else:
            layer["downsample"] = None
            next_res = res
        layers.append(layer)
        block_cfgs.append(bcfgs)
        res = next_res
    params["layers"] = layers
    nf = dim * 2 ** (num_layers - 1)
    params["norm_g"] = jnp.ones((nf,), jnp.float32)
    params["norm_b"] = jnp.zeros((nf,), jnp.float32)
    params["head_w"] = trunc_normal(next(keys), (nf, cfg["num_classes"]))
    params["head_b"] = jnp.zeros((cfg["num_classes"],), jnp.float32)
    return params, block_cfgs


def swin_block(x, prm, bcfg):
    Hs, Ws = bcfg["res"]
    ws, shift, heads, n_win = bcfg["ws"], bcfg["shift"], bcfg["heads"], bcfg["n_win"]
    B, L, C = x.shape
    dh = C // heads
    Wl = ws * ws
    nHw, nWw = Hs // ws, Ws // ws
    shortcut = x

    # ---- attention branch (LN1 fused into the qkv matmul prologue) ----
    # LayerNorm is per-token so it commutes with the roll / window partition.
    y = x.reshape(B, Hs, Ws, C)
    if shift > 0:
        # TODO(synk): roll + window partition could be folded into one gather;
        # left as separate XLA glue (tiny tensors at this problem size).
        y = jnp.roll(y, shift=(-shift, -shift), axis=(1, 2))
    xw = (y.reshape(B, nHw, ws, nWw, ws, C)
           .transpose(0, 1, 3, 2, 4, 5)
           .reshape(B * n_win * Wl, C))

    qkv = matmul_fused(xw, prm["qkv_w"], bias=prm["qkv_b"],
                       ln=(prm["norm1_g"], prm["norm1_b"]))          # (B*n_win*Wl, 3C)
    # Pre-split head-major in the wrapper so the kernel does no lane slicing.
    qkv = (qkv.reshape(B, n_win, Wl, 3, heads, dh)
              .transpose(3, 0, 1, 4, 2, 5)
              .reshape(3, B * n_win * heads, Wl, dh))
    attn = window_attention(qkv, prm["attn_bias"], n_win * heads, dh ** -0.5)
    attn = (attn.reshape(B, n_win, heads, Wl, dh)
                .transpose(0, 1, 3, 2, 4)
                .reshape(B * n_win * Wl, C))
    attn = matmul_fused(attn, prm["proj_w"], bias=prm["proj_b"])
    attn = (attn.reshape(B, nHw, nWw, ws, ws, C)
                .transpose(0, 1, 3, 2, 4, 5)
                .reshape(B, Hs, Ws, C))
    if shift > 0:
        attn = jnp.roll(attn, shift=(shift, shift), axis=(1, 2))
    # This residual is left to XLA (it fuses with the un-partition copy above);
    # fusing it into proj's epilogue would require windowing the shortcut too.
    x = shortcut + attn.reshape(B, L, C)
    # TODO(synk): drop_path (stochastic depth) is identity at inference; not applied.

    # ---- MLP branch: LN2 fused into fc1, residual fused into fc2 epilogue ----
    x2d = x.reshape(B * L, C)
    h = matmul_fused(x2d, prm["fc1_w"], bias=prm["fc1_b"],
                     ln=(prm["norm2_g"], prm["norm2_b"]), activation="gelu")
    out = matmul_fused(h, prm["fc2_w"], bias=prm["fc2_b"], residual=x2d)
    return out.reshape(B, L, C)


def patch_merging(x, prm, res):
    Hs, Ws = res
    B, L, C = x.shape
    x = x.reshape(B, Hs, Ws, C)
    x0 = x[:, 0::2, 0::2, :]
    x1 = x[:, 1::2, 0::2, :]
    x2 = x[:, 0::2, 1::2, :]
    x3 = x[:, 1::2, 1::2, :]
    xc = (jnp.concatenate([x0, x1, x2, x3], axis=-1)
             .reshape(B * (Hs // 2) * (Ws // 2), 4 * C))
    # LayerNorm fused into the (bias-free) reduction matmul.
    y = matmul_fused(xc, prm["red_w"], ln=(prm["norm_g"], prm["norm_b"]))
    return y.reshape(B, (Hs // 2) * (Ws // 2), 2 * C)


def swin_forward(x, params, cfg, block_cfgs):
    # x is NCHW (B, 3, H, W); tokens internally are (B, L, C).
    p = cfg["patch_size"]
    B, Cin, H, W = x.shape
    Hp, Wp = H // p, W // p
    dim = cfg["dim"]

    # PatchEmbed: conv(k=stride=p) == per-patch linear projection on (c, i, j)-flattened patches.
    xp = (x.reshape(B, Cin, Hp, p, Wp, p)
           .transpose(0, 2, 4, 1, 3, 5)
           .reshape(B * Hp * Wp, Cin * p * p))
    xe = matmul_fused(xp, params["patch_w"], bias=params["patch_b"]).reshape(B, Hp * Wp, dim)
    xe = xe + params["pos_embed"]          # pos_drop has rate 0.0 -> identity

    res = (Hp, Wp)
    for il, layer in enumerate(params["layers"]):
        for bi, blk in enumerate(layer["blocks"]):
            xe = swin_block(xe, blk, block_cfgs[il][bi])
        if layer["downsample"] is not None:
            xe = patch_merging(xe, layer["downsample"], res)
            res = (res[0] // 2, res[1] // 2)

    B_, L_, Cf = xe.shape
    xe = layernorm(xe.reshape(B_ * L_, Cf), params["norm_g"], params["norm_b"]).reshape(B_, L_, Cf)
    # Mean-pool + classifier head in plain XLA: a (2, nf) @ (nf, 10) matmul is
    # too small for a Pallas launch (padding + masked stores dominate).
    feat = jnp.mean(xe, axis=1)            # AdaptiveAvgPool1d(1) over the token dim
    return feat @ params["head_w"] + params["head_b"]


if __name__ == "__main__":
    cfg = dict(img_size=32, patch_size=4, dim=32, depths=(2, 2), heads=(2, 4),
               window_size=4, mlp_ratio=4.0, num_classes=10)
    key = jax.random.PRNGKey(0)
    kx, kp = jax.random.split(key)
    params, block_cfgs = build_model(kp, cfg)
    x = jax.random.normal(kx, (2, 3, cfg["img_size"], cfg["img_size"]), jnp.float32)

    fwd = jax.jit(lambda xx, pp: swin_forward(xx, pp, cfg, block_cfgs))
    logits = fwd(x, params)
    jax.block_until_ready(logits)

    assert logits.shape == (2, cfg["num_classes"])
    assert bool(jnp.all(jnp.isfinite(logits)))
    print("KERNEL_OK")
</pallas_src>

<mosaic_0001>
module attributes {stable_mosaic.version = 11 : i64} {
  func.func @_fused_mm_kernel(%arg0: i32, %arg1: i32, %arg2: i32, %arg3: memref<64x48xf32, #tpu.memory_space<vmem>>, %arg4: memref<48x32xbf16, #tpu.memory_space<vmem>>, %arg5: memref<1x32xf32, #tpu.memory_space<vmem>>, %arg6: memref<64x32xf32, #tpu.memory_space<vmem>>) attributes {dimension_semantics = [#tpu.dimension_semantics<parallel>, #tpu.dimension_semantics<parallel>, #tpu.dimension_semantics<arbitrary>], iteration_bounds = array<i64: 2, 1, 1>, scalar_prefetch = 0 : i64, scratch_operands = 0 : i64, tpu.core_type = #tpu.core_type<tc>, window_params = [{transform_indices = @transform_0, window_bounds = array<i64: 64, 48>}, {transform_indices = @transform_1, window_bounds = array<i64: 48, 32>}, {transform_indices = @transform_2, window_bounds = array<i64: 1, 32>}, {transform_indices = @transform_3, window_bounds = array<i64: 64, 32>}]} {
    %c0 = arith.constant 0 : index
    %c0_0 = arith.constant 0 : index
    %0 = vector.load %arg3[%c0, %c0_0] : memref<64x48xf32, #tpu.memory_space<vmem>>, vector<64x48xf32>
    %1 = arith.truncf %0 : vector<64x48xf32> to vector<64x48xbf16>
    %c0_1 = arith.constant 0 : index
    %c0_2 = arith.constant 0 : index
    %2 = vector.load %arg4[%c0_1, %c0_2] : memref<48x32xbf16, #tpu.memory_space<vmem>>, vector<48x32xbf16>
    %cst = arith.constant dense<0.000000e+00> : vector<64x32xf32>
    %3 = tpu.matmul %1, %2, %cst {dimension_numbers = #tpu.dot_dimension_numbers<[1], [0], [0], [1], [0, 0, 1, 1], [], []>} : vector<64x48xbf16>, vector<48x32xbf16>, vector<64x32xf32> -> vector<64x32xf32>
    %c0_3 = arith.constant 0 : index
    %c0_4 = arith.constant 0 : index
    %4 = vector.load %arg5[%c0_3, %c0_4] : memref<1x32xf32, #tpu.memory_space<vmem>>, vector<1x32xf32>
    %5 = vector.broadcast %4 : vector<1x32xf32> to vector<64x32xf32>
    %6 = arith.addf %3, %5 : vector<64x32xf32>
    %c0_5 = arith.constant 0 : index
    %c0_6 = arith.constant 0 : index
    %7 = vector.load %arg6[%c0_5, %c0_6] : memref<64x32xf32, #tpu.memory_space<vmem>>, vector<64x32xf32>
    tpu.vector_store %arg6[%c0_5, %c0_6], %6 {strides = array<i32>} : memref<64x32xf32, #tpu.memory_space<vmem>>, vector<64x32xf32>,
    return
  }
  func.func @transform_0(%arg0: i32, %arg1: i32, %arg2: i32) -> (i32, i32) {
    %c0_i32 = arith.constant 0 : i32
    return %arg0, %arg2 : i32, i32
  }
  func.func @transform_1(%arg0: i32, %arg1: i32, %arg2: i32) -> (i32, i32) {
    %c0_i32 = arith.constant 0 : i32
    return %arg2, %arg1 : i32, i32
  }
  func.func @transform_2(%arg0: i32, %arg1: i32, %arg2: i32) -> (i32, i32) {
    %c0_i32 = arith.constant 0 : i32
    %c0_i32_0 = arith.constant 0 : i32
    return %c0_i32, %arg1 : i32, i32
  }
  func.func @transform_3(%arg0: i32, %arg1: i32, %arg2: i32) -> (i32, i32) {
    %c0_i32 = arith.constant 0 : i32
    return %arg0, %arg1 : i32, i32
  }
}

module attributes {stable_mosaic.version = 11 : i64} {
  func.func @_fused_mm_kernel(%arg0: i32, %arg1: i32, %arg2: i32, %arg3: memref<64x32xf32, #tpu.memory_space<vmem>>, %arg4: memref<32x96xbf16, #tpu.memory_space<vmem>>, %arg5: memref<1x32xf32, #tpu.memory_space<vmem>>, %arg6: memref<1x32xf32, #tpu.memory_space<vmem>>, %arg7: memref<1x96xf32, #tpu.memory_space<vmem>>, %arg8: memref<64x96xf32, #tpu.memory_space<vmem>>) attributes {dimension_semantics = [#tpu.dimension_semantics<parallel>, #tpu.dimension_semantics<parallel>, #tpu.dimension_semantics<arbitrary>], iteration_bounds = array<i64: 2, 1, 1>, scalar_prefetch = 0 : i64, scratch_operands = 0 : i64, tpu.core_type = #tpu.core_type<tc>, window_params = [{transform_indices = @transform_0, window_bounds = array<i64: 64, 32>}, {transform_indices = @transform_1, window_bounds = array<i64: 32, 96>}, {pipeline_mode = #tpu.pipeline_mode<synchronous>, transform_indices = @transform_2, window_bounds = array<i64: 1, 32>}, {pipeline_mode = #tpu.pipeline_mode<synchronous>, transform_indices = @transform_3, window_bounds = array<i64: 1, 32>}, {transform_indices = @transform_4, window_bounds = array<i64: 1, 96>}, {transform_indices = @transform_5, window_bounds = array<i64: 64, 96>}]} {
    %c0 = arith.constant 0 : index
    %c0_0 = arith.constant 0 : index
    %0 = vector.load %arg3[%c0, %c0_0] : memref<64x32xf32, #tpu.memory_space<vmem>>, vector<64x32xf32>
    %cst = arith.constant dense<0.000000e+00> : vector<64xf32>
    %1 = vector.multi_reduction <add>, %0, %cst [1] : vector<64x32xf32> to vector<64xf32>
    %2 = vector.shape_cast %1 : vector<64xf32> to vector<64x1xf32>
    %cst_1 = arith.constant 3.200000e+01 : f32
    %3 = vector.broadcast %cst_1 : f32 to vector<64x1xf32>
    %4 = arith.divf %2, %3 : vector<64x1xf32>
    %5 = vector.broadcast %4 : vector<64x1xf32> to vector<64x32xf32>
    %6 = arith.subf %0, %5 : vector<64x32xf32>
    %7 = arith.mulf %6, %6 : vector<64x32xf32>
    %cst_2 = arith.constant dense<0.000000e+00> : vector<64xf32>
    %8 = vector.multi_reduction <add>, %7, %cst_2 [1] : vector<64x32xf32> to vector<64xf32>
    %9 = vector.shape_cast %8 : vector<64xf32> to vector<64x1xf32>
    %cst_3 = arith.constant 3.200000e+01 : f32
    %10 = vector.broadcast %cst_3 : f32 to vector<64x1xf32>
    %11 = arith.divf %9, %10 : vector<64x1xf32>
    %cst_4 = arith.constant 9.99999974E-6 : f32
    %12 = vector.broadcast %cst_4 : f32 to vector<64x1xf32>
    %13 = arith.addf %11, %12 : vector<64x1xf32>
    %14 = math.rsqrt %13 : vector<64x1xf32>
    %15 = vector.broadcast %14 : vector<64x1xf32> to vector<64x32xf32>
    %16 = arith.mulf %6, %15 : vector<64x32xf32>
    %c0_5 = arith.constant 0 : index
    %c0_6 = arith.constant 0 : index
    %17 = vector.load %arg5[%c0_5, %c0_6] : memref<1x32xf32, #tpu.memory_space<vmem>>, vector<1x32xf32>
    %18 = vector.broadcast %17 : vector<1x32xf32> to vector<64x32xf32>
    %19 = arith.mulf %16, %18 : vector<64x32xf32>
    %c0_7 = arith.constant 0 : index
    %c0_8 = arith.constant 0 : index
    %20 = vector.load %arg6[%c0_7, %c0_8] : memref<1x32xf32, #tpu.memory_space<vmem>>, vector<1x32xf32>
    %21 = vector.broadcast %20 : vector<1x32xf32> to vector<64x32xf32>
    %22 = arith.addf %19, %21 : vector<64x32xf32>
    %23 = arith.truncf %22 : vector<64x32xf32> to vector<64x32xbf16>
    %c0_9 = arith.constant 0 : index
    %c0_10 = arith.constant 0 : index
    %24 = vector.load %arg4[%c0_9, %c0_10] : memref<32x96xbf16, #tpu.memory_space<vmem>>, vector<32x96xbf16>
    %cst_11 = arith.constant dense<0.000000e+00> : vector<64x96xf32>
    %25 = tpu.matmul %23, %24, %cst_11 {dimension_numbers = #tpu.dot_dimension_numbers<[1], [0], [0], [1], [0, 0, 1, 1], [], []>} : vector<64x32xbf16>, vector<32x96xbf16>, vector<64x96xf32> -> vector<64x96xf32>
    %c0_12 = arith.constant 0 : index
    %c0_13 = arith.constant 0 : index
    %26 = vector.load %arg7[%c0_12, %c0_13] : memref<1x96xf32, #tpu.memory_space<vmem>>, vector<1x96xf32>
    %27 = vector.broadcast %26 : vector<1x96xf32> to vector<64x96xf32>
    %28 = arith.addf %25, %27 : vector<64x96xf32>
    %c0_14 = arith.constant 0 : index
    %c0_15 = arith.constant 0 : index
    %29 = vector.load %arg8[%c0_14, %c0_15] : memref<64x96xf32, #tpu.memory_space<vmem>>, vector<64x96xf32>
    tpu.vector_store %arg8[%c0_14, %c0_15], %28 {strides = array<i32>} : memref<64x96xf32, #tpu.memory_space<vmem>>, vector<64x96xf32>,
    return
  }
  func.func @transform_0(%arg0: i32, %arg1: i32, %arg2: i32) -> (i32, i32) {
    %c0_i32 = arith.constant 0 : i32
    return %arg0, %arg2 : i32, i32
  }
  func.func @transform_1(%arg0: i32, %arg1: i32, %arg2: i32) -> (i32, i32) {
    %c0_i32 = arith.constant 0 : i32
    return %arg2, %arg1 : i32, i32
  }
  func.func @transform_2(%arg0: i32, %arg1: i32, %arg2: i32) -> (i32, i32) {
    %c0_i32 = arith.constant 0 : i32
    %c0_i32_0 = arith.constant 0 : i32
    %c0_i32_1 = arith.constant 0 : i32
    return %c0_i32, %c0_i32_0 : i32, i32
  }
  func.func @transform_3(%arg0: i32, %arg1: i32, %arg2: i32) -> (i32, i32) {
    %c0_i32 = arith.constant 0 : i32
    %c0_i32_0 = arith.constant 0 : i32
    %c0_i32_1 = arith.constant 0 : i32
    return %c0_i32, %c0_i32_0 : i32, i32
  }
  func.func @transform_4(%arg0: i32, %arg1: i32, %arg2: i32) -> (i32, i32) {
    %c0_i32 = arith.constant 0 : i32
    %c0_i32_0 = arith.constant 0 : i32
    return %c0_i32, %arg1 : i32, i32
  }
  func.func @transform_5(%arg0: i32, %arg1: i32, %arg2: i32) -> (i32, i32) {
    %c0_i32 = arith.constant 0 : i32
    return %arg0, %arg1 : i32, i32
  }
}

module attributes {stable_mosaic.version = 11 : i64} {
  func.func @_win_attn_kernel(%arg0: i32, %arg1: memref<3x8x16x16xf32, #tpu.memory_space<vmem>>, %arg2: memref<8x16x16xf32, #tpu.memory_space<vmem>>, %arg3: memref<8x16x16xf32, #tpu.memory_space<vmem>>) attributes {dimension_semantics = [#tpu.dimension_semantics<parallel>], iteration_bounds = array<i64: 2>, scalar_prefetch = 0 : i64, scratch_operands = 0 : i64, tpu.core_type = #tpu.core_type<tc>, window_params = [{transform_indices = @transform_0, window_bounds = array<i64: 3, 8, 16, 16>}, {pipeline_mode = #tpu.pipeline_mode<synchronous>, transform_indices = @transform_1, window_bounds = array<i64: 8, 16, 16>}, {transform_indices = @transform_2, window_bounds = array<i64: 8, 16, 16>}]} {
    %c0 = arith.constant 0 : index
    %c0_0 = arith.constant 0 : index
    %c0_1 = arith.constant 0 : index
    %c0_2 = arith.constant 0 : index
    %0 = vector.load %arg1[%c0, %c0_0, %c0_1, %c0_2] : memref<3x8x16x16xf32, #tpu.memory_space<vmem>>, vector<1x8x16x16xf32>
    %1 = vector.shape_cast %0 : vector<1x8x16x16xf32> to vector<8x16x16xf32>
    %2 = arith.truncf %1 : vector<8x16x16xf32> to vector<8x16x16xbf16>
    %c1 = arith.constant 1 : index
    %c0_3 = arith.constant 0 : index
    %c0_4 = arith.constant 0 : index
    %c0_5 = arith.constant 0 : index
    %3 = vector.load %arg1[%c1, %c0_3, %c0_4, %c0_5] : memref<3x8x16x16xf32, #tpu.memory_space<vmem>>, vector<1x8x16x16xf32>
    %4 = vector.shape_cast %3 : vector<1x8x16x16xf32> to vector<8x16x16xf32>
    %5 = arith.truncf %4 : vector<8x16x16xf32> to vector<8x16x16xbf16>
    %c2 = arith.constant 2 : index
    %c0_6 = arith.constant 0 : index
    %c0_7 = arith.constant 0 : index
    %c0_8 = arith.constant 0 : index
    %6 = vector.load %arg1[%c2, %c0_6, %c0_7, %c0_8] : memref<3x8x16x16xf32, #tpu.memory_space<vmem>>, vector<1x8x16x16xf32>
    %7 = vector.shape_cast %6 : vector<1x8x16x16xf32> to vector<8x16x16xf32>
    %8 = arith.truncf %7 : vector<8x16x16xf32> to vector<8x16x16xbf16>
    "tpu.trace_start"() <{level = 10 : i32, message = "bqd,bkd->bqk"}> : () -> ()
    %cst = arith.constant dense<0.000000e+00> : vector<8x16x16xf32>
    %9 = tpu.matmul %2, %5, %cst {dimension_numbers = #tpu.dot_dimension_numbers<[2], [2], [1], [1], [0, 0, 0, 1, 1, 1], [0], [0]>} : vector<8x16x16xbf16>, vector<8x16x16xbf16>, vector<8x16x16xf32> -> vector<8x16x16xf32>
    "tpu.trace_stop"() : () -> ()
    %cst_9 = arith.constant 2.500000e-01 : f32
    %10 = vector.broadcast %cst_9 : f32 to vector<8x16x16xf32>
    %11 = arith.mulf %9, %10 : vector<8x16x16xf32>
    %c0_10 = arith.constant 0 : index
    %c0_11 = arith.constant 0 : index
    %c0_12 = arith.constant 0 : index
    %12 = vector.load %arg2[%c0_10, %c0_11, %c0_12] : memref<8x16x16xf32, #tpu.memory_space<vmem>>, vector<8x16x16xf32>
    %13 = arith.addf %11, %12 : vector<8x16x16xf32>
    %cst_13 = arith.constant dense<0xFF800000> : vector<8x16xf32>
    %14 = vector.multi_reduction <maximumf>, %13, %cst_13 [2] : vector<8x16x16xf32> to vector<8x16xf32>
    %15 = vector.shape_cast %14 : vector<8x16xf32> to vector<8x16x1xf32>
    %16 = vector.broadcast %15 : vector<8x16x1xf32> to vector<8x16x16xf32>
    %17 = arith.subf %13, %16 : vector<8x16x16xf32>
    %18 = math.exp %17 : vector<8x16x16xf32>
    %cst_14 = arith.constant dense<0.000000e+00> : vector<8x16xf32>
    %19 = vector.multi_reduction <add>, %18, %cst_14 [2] : vector<8x16x16xf32> to vector<8x16xf32>
    %20 = vector.shape_cast %19 : vector<8x16xf32> to vector<8x16x1xf32>
    %21 = tpu.reciprocal %20 {approx = true} : vector<8x16x1xf32> -> vector<8x16x1xf32>
    %22 = vector.broadcast %21 : vector<8x16x1xf32> to vector<8x16x16xf32>
    %23 = arith.mulf %18, %22 : vector<8x16x16xf32>
    %24 = arith.truncf %23 : vector<8x16x16xf32> to vector<8x16x16xbf16>
    "tpu.trace_start"() <{level = 10 : i32, message = "bqk,bkd->bqd"}> : () -> ()
    %cst_15 = arith.constant dense<0.000000e+00> : vector<8x16x16xf32>
    %25 = tpu.matmul %24, %8, %cst_15 {dimension_numbers = #tpu.dot_dimension_numbers<[2], [1], [1], [2], [0, 0, 0, 1, 1, 2], [0], [0]>} : vector<8x16x16xbf16>, vector<8x16x16xbf16>, vector<8x16x16xf32> -> vector<8x16x16xf32>
    "tpu.trace_stop"() : () -> ()
    %c0_16 = arith.constant 0 : index
    %c0_17 = arith.constant 0 : index
    %c0_18 = arith.constant 0 : index
    %26 = vector.load %arg3[%c0_16, %c0_17, %c0_18] : memref<8x16x16xf32, #tpu.memory_space<vmem>>, vector<8x16x16xf32>
    tpu.vector_store %arg3[%c0_16, %c0_17, %c0_18], %25 {strides = array<i32>} : memref<8x16x16xf32, #tpu.memory_space<vmem>>, vector<8x16x16xf32>,
    return
  }
  func.func @transform_0(%arg0: i32) -> (i32, i32, i32, i32) {
    %c0_i32 = arith.constant 0 : i32
    %c0_i32_0 = arith.constant 0 : i32
    %c0_i32_1 = arith.constant 0 : i32
    %c0_i32_2 = arith.constant 0 : i32
    return %c0_i32, %arg0, %c0_i32_0, %c0_i32_1 : i32, i32, i32, i32
  }
  func.func @transform_1(%arg0: i32) -> (i32, i32, i32) {
    %c0_i32 = arith.constant 0 : i32
    %c0_i32_0 = arith.constant 0 : i32
    %c0_i32_1 = arith.constant 0 : i32
    %c0_i32_2 = arith.constant 0 : i32
    return %c0_i32, %c0_i32_0, %c0_i32_1 : i32, i32, i32
  }
  func.func @transform_2(%arg0: i32) -> (i32, i32, i32) {
    %c0_i32 = arith.constant 0 : i32
    %c0_i32_0 = arith.constant 0 : i32
    %c0_i32_1 = arith.constant 0 : i32
    return %arg0, %c0_i32, %c0_i32_0 : i32, i32, i32
  }
}

module attributes {stable_mosaic.version = 11 : i64} {
  func.func @_fused_mm_kernel(%arg0: i32, %arg1: i32, %arg2: i32, %arg3: memref<64x32xf32, #tpu.memory_space<vmem>>, %arg4: memref<32x32xbf16, #tpu.memory_space<vmem>>, %arg5: memref<1x32xf32, #tpu.memory_space<vmem>>, %arg6: memref<64x32xf32, #tpu.memory_space<vmem>>) attributes {dimension_semantics = [#tpu.dimension_semantics<parallel>, #tpu.dimension_semantics<parallel>, #tpu.dimension_semantics<arbitrary>], iteration_bounds = array<i64: 2, 1, 1>, scalar_prefetch = 0 : i64, scratch_operands = 0 : i64, tpu.core_type = #tpu.core_type<tc>, window_params = [{transform_indices = @transform_0, window_bounds = array<i64: 64, 32>}, {transform_indices = @transform_1, window_bounds = array<i64: 32, 32>}, {transform_indices = @transform_2, window_bounds = array<i64: 1, 32>}, {transform_indices = @transform_3, window_bounds = array<i64: 64, 32>}]} {
    %c0 = arith.constant 0 : index
    %c0_0 = arith.constant 0 : index
    %0 = vector.load %arg3[%c0, %c0_0] : memref<64x32xf32, #tpu.memory_space<vmem>>, vector<64x32xf32>
    %1 = arith.truncf %0 : vector<64x32xf32> to vector<64x32xbf16>
    %c0_1 = arith.constant 0 : index
    %c0_2 = arith.constant 0 : index
    %2 = vector.load %arg4[%c0_1, %c0_2] : memref<32x32xbf16, #tpu.memory_space<vmem>>, vector<32x32xbf16>
    %cst = arith.constant dense<0.000000e+00> : vector<64x32xf32>
    %3 = tpu.matmul %1, %2, %cst {dimension_numbers = #tpu.dot_dimension_numbers<[1], [0], [0], [1], [0, 0, 1, 1], [], []>} : vector<64x32xbf16>, vector<32x32xbf16>, vector<64x32xf32> -> vector<64x32xf32>
    %c0_3 = arith.constant 0 : index
    %c0_4 = arith.constant 0 : index
    %4 = vector.load %arg5[%c0_3, %c0_4] : memref<1x32xf32, #tpu.memory_space<vmem>>, vector<1x32xf32>
    %5 = vector.broadcast %4 : vector<1x32xf32> to vector<64x32xf32>
    %6 = arith.addf %3, %5 : vector<64x32xf32>
    %c0_5 = arith.constant 0 : index
    %c0_6 = arith.constant 0 : index
    %7 = vector.load %arg6[%c0_5, %c0_6] : memref<64x32xf32, #tpu.memory_space<vmem>>, vector<64x32xf32>
    tpu.vector_store %arg6[%c0_5, %c0_6], %6 {strides = array<i32>} : memref<64x32xf32, #tpu.memory_space<vmem>>, vector<64x32xf32>,
    return
  }
  func.func @transform_0(%arg0: i32, %arg1: i32, %arg2: i32) -> (i32, i32) {
    %c0_i32 = arith.constant 0 : i32
    return %arg0, %arg2 : i32, i32
  }
  func.func @transform_1(%arg0: i32, %arg1: i32, %arg2: i32) -> (i32, i32) {
    %c0_i32 = arith.constant 0 : i32
    return %arg2, %arg1 : i32, i32
  }
  func.func @transform_2(%arg0: i32, %arg1: i32, %arg2: i32) -> (i32, i32) {
    %c0_i32 = arith.constant 0 : i32
    %c0_i32_0 = arith.constant 0 : i32
    return %c0_i32, %arg1 : i32, i32
  }
  func.func @transform_3(%arg0: i32, %arg1: i32, %arg2: i32) -> (i32, i32) {
    %c0_i32 = arith.constant 0 : i32
    return %arg0, %arg1 : i32, i32
  }
}

module attributes {stable_mosaic.version = 11 : i64} {
  func.func @_fused_mm_kernel(%arg0: i32, %arg1: i32, %arg2: i32, %arg3: memref<64x32xf32, #tpu.memory_space<vmem>>, %arg4: memref<32x128xbf16, #tpu.memory_space<vmem>>, %arg5: memref<1x32xf32, #tpu.memory_space<vmem>>, %arg6: memref<1x32xf32, #tpu.memory_space<vmem>>, %arg7: memref<1x128xf32, #tpu.memory_space<vmem>>, %arg8: memref<64x128xf32, #tpu.memory_space<vmem>>) attributes {dimension_semantics = [#tpu.dimension_semantics<parallel>, #tpu.dimension_semantics<parallel>, #tpu.dimension_semantics<arbitrary>], iteration_bounds = array<i64: 2, 1, 1>, scalar_prefetch = 0 : i64, scratch_operands = 0 : i64, tpu.core_type = #tpu.core_type<tc>, window_params = [{transform_indices = @transform_0, window_bounds = array<i64: 64, 32>}, {transform_indices = @transform_1, window_bounds = array<i64: 32, 128>}, {pipeline_mode = #tpu.pipeline_mode<synchronous>, transform_indices = @transform_2, window_bounds = array<i64: 1, 32>}, {pipeline_mode = #tpu.pipeline_mode<synchronous>, transform_indices = @transform_3, window_bounds = array<i64: 1, 32>}, {transform_indices = @transform_4, window_bounds = array<i64: 1, 128>}, {transform_indices = @transform_5, window_bounds = array<i64: 64, 128>}]} {
    %c0 = arith.constant 0 : index
    %c0_0 = arith.constant 0 : index
    %0 = vector.load %arg3[%c0, %c0_0] : memref<64x32xf32, #tpu.memory_space<vmem>>, vector<64x32xf32>
    %cst = arith.constant dense<0.000000e+00> : vector<64xf32>
    %1 = vector.multi_reduction <add>, %0, %cst [1] : vector<64x32xf32> to vector<64xf32>
    %2 = vector.shape_cast %1 : vector<64xf32> to vector<64x1xf32>
    %cst_1 = arith.constant 3.200000e+01 : f32
    %3 = vector.broadcast %cst_1 : f32 to vector<64x1xf32>
    %4 = arith.divf %2, %3 : vector<64x1xf32>
    %5 = vector.broadcast %4 : vector<64x1xf32> to vector<64x32xf32>
    %6 = arith.subf %0, %5 : vector<64x32xf32>
    %7 = arith.mulf %6, %6 : vector<64x32xf32>
    %cst_2 = arith.constant dense<0.000000e+00> : vector<64xf32>
    %8 = vector.multi_reduction <add>, %7, %cst_2 [1] : vector<64x32xf32> to vector<64xf32>
    %9 = vector.shape_cast %8 : vector<64xf32> to vector<64x1xf32>
    %cst_3 = arith.constant 3.200000e+01 : f32
    %10 = vector.broadcast %cst_3 : f32 to vector<64x1xf32>
    %11 = arith.divf %9, %10 : vector<64x1xf32>
    %cst_4 = arith.constant 9.99999974E-6 : f32
    %12 = vector.broadcast %cst_4 : f32 to vector<64x1xf32>
    %13 = arith.addf %11, %12 : vector<64x1xf32>
    %14 = math.rsqrt %13 : vector<64x1xf32>
    %15 = vector.broadcast %14 : vector<64x1xf32> to vector<64x32xf32>
    %16 = arith.mulf %6, %15 : vector<64x32xf32>
    %c0_5 = arith.constant 0 : index
    %c0_6 = arith.constant 0 : index
    %17 = vector.load %arg5[%c0_5, %c0_6] : memref<1x32xf32, #tpu.memory_space<vmem>>, vector<1x32xf32>
    %18 = vector.broadcast %17 : vector<1x32xf32> to vector<64x32xf32>
    %19 = arith.mulf %16, %18 : vector<64x32xf32>
    %c0_7 = arith.constant 0 : index
    %c0_8 = arith.constant 0 : index
    %20 = vector.load %arg6[%c0_7, %c0_8] : memref<1x32xf32, #tpu.memory_space<vmem>>, vector<1x32xf32>
    %21 = vector.broadcast %20 : vector<1x32xf32> to vector<64x32xf32>
    %22 = arith.addf %19, %21 : vector<64x32xf32>
    %23 = arith.truncf %22 : vector<64x32xf32> to vector<64x32xbf16>
    %c0_9 = arith.constant 0 : index
    %c0_10 = arith.constant 0 : index
    %24 = vector.load %arg4[%c0_9, %c0_10] : memref<32x128xbf16, #tpu.memory_space<vmem>>, vector<32x128xbf16>
    %cst_11 = arith.constant dense<0.000000e+00> : vector<64x128xf32>
    %25 = tpu.matmul %23, %24, %cst_11 {dimension_numbers = #tpu.dot_dimension_numbers<[1], [0], [0], [1], [0, 0, 1, 1], [], []>} : vector<64x32xbf16>, vector<32x128xbf16>, vector<64x128xf32> -> vector<64x128xf32>
    %c0_12 = arith.constant 0 : index
    %c0_13 = arith.constant 0 : index
    %26 = vector.load %arg7[%c0_12, %c0_13] : memref<1x128xf32, #tpu.memory_space<vmem>>, vector<1x128xf32>
    %27 = vector.broadcast %26 : vector<1x128xf32> to vector<64x128xf32>
    %28 = arith.addf %25, %27 : vector<64x128xf32>
    %29 = arith.mulf %28, %28 : vector<64x128xf32>
    %30 = arith.mulf %28, %29 : vector<64x128xf32>
    %cst_14 = arith.constant 4.471500e-02 : f32
    %31 = vector.broadcast %cst_14 : f32 to vector<64x128xf32>
    %32 = arith.mulf %31, %30 : vector<64x128xf32>
    %33 = arith.addf %28, %32 : vector<64x128xf32>
    %cst_15 = arith.constant 0.797884583 : f32
    %34 = vector.broadcast %cst_15 : f32 to vector<64x128xf32>
    %35 = arith.mulf %34, %33 : vector<64x128xf32>
    %36 = math.tanh %35 : vector<64x128xf32>
    %cst_16 = arith.constant 1.000000e+00 : f32
    %37 = vector.broadcast %cst_16 : f32 to vector<64x128xf32>
    %38 = arith.addf %37, %36 : vector<64x128xf32>
    %cst_17 = arith.constant 5.000000e-01 : f32
    %39 = vector.broadcast %cst_17 : f32 to vector<64x128xf32>
    %40 = arith.mulf %39, %38 : vector<64x128xf32>
    %41 = arith.mulf %28, %40 : vector<64x128xf32>
    %c0_18 = arith.constant 0 : index
    %c0_19 = arith.constant 0 : index
    %42 = vector.load %arg8[%c0_18, %c0_19] : memref<64x128xf32, #tpu.memory_space<vmem>>, vector<64x128xf32>
    tpu.vector_store %arg8[%c0_18, %c0_19], %41 {strides = array<i32>} : memref<64x128xf32, #tpu.memory_space<vmem>>, vector<64x128xf32>,
    return
  }
  func.func @transform_0(%arg0: i32, %arg1: i32, %arg2: i32) -> (i32, i32) {
    %c0_i32 = arith.constant 0 : i32
    return %arg0, %arg2 : i32, i32
  }
  func.func @transform_1(%arg0: i32, %arg1: i32, %arg2: i32) -> (i32, i32) {
    %c0_i32 = arith.constant 0 : i32
    return %arg2, %arg1 : i32, i32
  }
  func.func @transform_2(%arg0: i32, %arg1: i32, %arg2: i32) -> (i32, i32) {
    %c0_i32 = arith.constant 0 : i32
    %c0_i32_0 = arith.constant 0 : i32
    %c0_i32_1 = arith.constant 0 : i32
    return %c0_i32, %c0_i32_0 : i32, i32
  }
  func.func @transform_3(%arg0: i32, %arg1: i32, %arg2: i32) -> (i32, i32) {
    %c0_i32 = arith.constant 0 : i32
    %c0_i32_0 = arith.constant 0 : i32
    %c0_i32_1 = arith.constant 0 : i32
    return %c0_i32, %c0_i32_0 : i32, i32
  }
  func.func @transform_4(%arg0: i32, %arg1: i32, %arg2: i32) -> (i32, i32) {
    %c0_i32 = arith.constant 0 : i32
    %c0_i32_0 = arith.constant 0 : i32
    return %c0_i32, %arg1 : i32, i32
  }
  func.func @transform_5(%arg0: i32, %arg1: i32, %arg2: i32) -> (i32, i32) {
    %c0_i32 = arith.constant 0 : i32
    return %arg0, %arg1 : i32, i32
  }
}

module attributes {stable_mosaic.version = 11 : i64} {
  func.func @_fused_mm_kernel(%arg0: i32, %arg1: i32, %arg2: i32, %arg3: memref<64x128xf32, #tpu.memory_space<vmem>>, %arg4: memref<128x32xbf16, #tpu.memory_space<vmem>>, %arg5: memref<1x32xf32, #tpu.memory_space<vmem>>, %arg6: memref<64x32xf32, #tpu.memory_space<vmem>>, %arg7: memref<64x32xf32, #tpu.memory_space<vmem>>) attributes {dimension_semantics = [#tpu.dimension_semantics<parallel>, #tpu.dimension_semantics<parallel>, #tpu.dimension_semantics<arbitrary>], iteration_bounds = array<i64: 2, 1, 1>, scalar_prefetch = 0 : i64, scratch_operands = 0 : i64, tpu.core_type = #tpu.core_type<tc>, window_params = [{transform_indices = @transform_0, window_bounds = array<i64: 64, 128>}, {transform_indices = @transform_1, window_bounds = array<i64: 128, 32>}, {transform_indices = @transform_2, window_bounds = array<i64: 1, 32>}, {transform_indices = @transform_3, window_bounds = array<i64: 64, 32>}, {transform_indices = @transform_4, window_bounds = array<i64: 64, 32>}]} {
    %c0 = arith.constant 0 : index
    %c0_0 = arith.constant 0 : index
    %0 = vector.load %arg3[%c0, %c0_0] : memref<64x128xf32, #tpu.memory_space<vmem>>, vector<64x128xf32>
    %1 = arith.truncf %0 : vector<64x128xf32> to vector<64x128xbf16>
    %c0_1 = arith.constant 0 : index
    %c0_2 = arith.constant 0 : index
    %2 = vector.load %arg4[%c0_1, %c0_2] : memref<128x32xbf16, #tpu.memory_space<vmem>>, vector<128x32xbf16>
    %cst = arith.constant dense<0.000000e+00> : vector<64x32xf32>
    %3 = tpu.matmul %1, %2, %cst {dimension_numbers = #tpu.dot_dimension_numbers<[1], [0], [0], [1], [0, 0, 1, 1], [], []>} : vector<64x128xbf16>, vector<128x32xbf16>, vector<64x32xf32> -> vector<64x32xf32>
    %c0_3 = arith.constant 0 : index
    %c0_4 = arith.constant 0 : index
    %4 = vector.load %arg5[%c0_3, %c0_4] : memref<1x32xf32, #tpu.memory_space<vmem>>, vector<1x32xf32>
    %5 = vector.broadcast %4 : vector<1x32xf32> to vector<64x32xf32>
    %6 = arith.addf %3, %5 : vector<64x32xf32>
    %c0_5 = arith.constant 0 : index
    %c0_6 = arith.constant 0 : index
    %7 = vector.load %arg6[%c0_5, %c0_6] : memref<64x32xf32, #tpu.memory_space<vmem>>, vector<64x32xf32>
    %8 = arith.addf %6, %7 : vector<64x32xf32>
    %c0_7 = arith.constant 0 : index
    %c0_8 = arith.constant 0 : index
    %9 = vector.load %arg7[%c0_7, %c0_8] : memref<64x32xf32, #tpu.memory_space<vmem>>, vector<64x32xf32>
    tpu.vector_store %arg7[%c0_7, %c0_8], %8 {strides = array<i32>} : memref<64x32xf32, #tpu.memory_space<vmem>>, vector<64x32xf32>,
    return
  }
  func.func @transform_0(%arg0: i32, %arg1: i32, %arg2: i32) -> (i32, i32) {
    %c0_i32 = arith.constant 0 : i32
    return %arg0, %arg2 : i32, i32
  }
  func.func @transform_1(%arg0: i32, %arg1: i32, %arg2: i32) -> (i32, i32) {
    %c0_i32 = arith.constant 0 : i32
    return %arg2, %arg1 : i32, i32
  }
  func.func @transform_2(%arg0: i32, %arg1: i32, %arg2: i32) -> (i32, i32) {
    %c0_i32 = arith.constant 0 : i32
    %c0_i32_0 = arith.constant 0 : i32
    return %c0_i32, %arg1 : i32, i32
  }
  func.func @transform_3(%arg0: i32, %arg1: i32, %arg2: i32) -> (i32, i32) {
    %c0_i32 = arith.constant 0 : i32
    return %arg0, %arg1 : i32, i32
  }
  func.func @transform_4(%arg0: i32, %arg1: i32, %arg2: i32) -> (i32, i32) {
    %c0_i32 = arith.constant 0 : i32
    return %arg0, %arg1 : i32, i32
  }
}

module attributes {stable_mosaic.version = 11 : i64} {
  func.func @_fused_mm_kernel(%arg0: i32, %arg1: i32, %arg2: i32, %arg3: memref<16x128xf32, #tpu.memory_space<vmem>>, %arg4: memref<128x64xbf16, #tpu.memory_space<vmem>>, %arg5: memref<1x128xf32, #tpu.memory_space<vmem>>, %arg6: memref<1x128xf32, #tpu.memory_space<vmem>>, %arg7: memref<16x64xf32, #tpu.memory_space<vmem>>) attributes {dimension_semantics = [#tpu.dimension_semantics<parallel>, #tpu.dimension_semantics<parallel>, #tpu.dimension_semantics<arbitrary>], iteration_bounds = array<i64: 2, 1, 1>, scalar_prefetch = 0 : i64, scratch_operands = 0 : i64, tpu.core_type = #tpu.core_type<tc>, window_params = [{transform_indices = @transform_0, window_bounds = array<i64: 16, 128>}, {transform_indices = @transform_1, window_bounds = array<i64: 128, 64>}, {pipeline_mode = #tpu.pipeline_mode<synchronous>, transform_indices = @transform_2, window_bounds = array<i64: 1, 128>}, {pipeline_mode = #tpu.pipeline_mode<synchronous>, transform_indices = @transform_3, window_bounds = array<i64: 1, 128>}, {transform_indices = @transform_4, window_bounds = array<i64: 16, 64>}]} {
    %c0 = arith.constant 0 : index
    %c0_0 = arith.constant 0 : index
    %0 = vector.load %arg3[%c0, %c0_0] : memref<16x128xf32, #tpu.memory_space<vmem>>, vector<16x128xf32>
    %cst = arith.constant dense<0.000000e+00> : vector<16xf32>
    %1 = vector.multi_reduction <add>, %0, %cst [1] : vector<16x128xf32> to vector<16xf32>
    %2 = vector.shape_cast %1 : vector<16xf32> to vector<16x1xf32>
    %cst_1 = arith.constant 1.280000e+02 : f32
    %3 = vector.broadcast %cst_1 : f32 to vector<16x1xf32>
    %4 = arith.divf %2, %3 : vector<16x1xf32>
    %5 = vector.broadcast %4 : vector<16x1xf32> to vector<16x128xf32>
    %6 = arith.subf %0, %5 : vector<16x128xf32>
    %7 = arith.mulf %6, %6 : vector<16x128xf32>
    %cst_2 = arith.constant dense<0.000000e+00> : vector<16xf32>
    %8 = vector.multi_reduction <add>, %7, %cst_2 [1] : vector<16x128xf32> to vector<16xf32>
    %9 = vector.shape_cast %8 : vector<16xf32> to vector<16x1xf32>
    %cst_3 = arith.constant 1.280000e+02 : f32
    %10 = vector.broadcast %cst_3 : f32 to vector<16x1xf32>
    %11 = arith.divf %9, %10 : vector<16x1xf32>
    %cst_4 = arith.constant 9.99999974E-6 : f32
    %12 = vector.broadcast %cst_4 : f32 to vector<16x1xf32>
    %13 = arith.addf %11, %12 : vector<16x1xf32>
    %14 = math.rsqrt %13 : vector<16x1xf32>
    %15 = vector.broadcast %14 : vector<16x1xf32> to vector<16x128xf32>
    %16 = arith.mulf %6, %15 : vector<16x128xf32>
    %c0_5 = arith.constant 0 : index
    %c0_6 = arith.constant 0 : index
    %17 = vector.load %arg5[%c0_5, %c0_6] : memref<1x128xf32, #tpu.memory_space<vmem>>, vector<1x128xf32>
    %18 = vector.broadcast %17 : vector<1x128xf32> to vector<16x128xf32>
    %19 = arith.mulf %16, %18 : vector<16x128xf32>
    %c0_7 = arith.constant 0 : index
    %c0_8 = arith.constant 0 : index
    %20 = vector.load %arg6[%c0_7, %c0_8] : memref<1x128xf32, #tpu.memory_space<vmem>>, vector<1x128xf32>
    %21 = vector.broadcast %20 : vector<1x128xf32> to vector<16x128xf32>
    %22 = arith.addf %19, %21 : vector<16x128xf32>
    %23 = arith.truncf %22 : vector<16x128xf32> to vector<16x128xbf16>
    %c0_9 = arith.constant 0 : index
    %c0_10 = arith.constant 0 : index
    %24 = vector.load %arg4[%c0_9, %c0_10] : memref<128x64xbf16, #tpu.memory_space<vmem>>, vector<128x64xbf16>
    %cst_11 = arith.constant dense<0.000000e+00> : vector<16x64xf32>
    %25 = tpu.matmul %23, %24, %cst_11 {dimension_numbers = #tpu.dot_dimension_numbers<[1], [0], [0], [1], [0, 0, 1, 1], [], []>} : vector<16x128xbf16>, vector<128x64xbf16>, vector<16x64xf32> -> vector<16x64xf32>
    %c0_12 = arith.constant 0 : index
    %c0_13 = arith.constant 0 : index
    %26 = vector.load %arg7[%c0_12, %c0_13] : memref<16x64xf32, #tpu.memory_space<vmem>>, vector<16x64xf32>
    tpu.vector_store %arg7[%c0_12, %c0_13], %25 {strides = array<i32>} : memref<16x64xf32, #tpu.memory_space<vmem>>, vector<16x64xf32>,
    return
  }
  func.func @transform_0(%arg0: i32, %arg1: i32, %arg2: i32) -> (i32, i32) {
    %c0_i32 = arith.constant 0 : i32
    return %arg0, %arg2 : i32, i32
  }
  func.func @transform_1(%arg0: i32, %arg1: i32, %arg2: i32) -> (i32, i32) {
    %c0_i32 = arith.constant 0 : i32
    return %arg2, %arg1 : i32, i32
  }
  func.func @transform_2(%arg0: i32, %arg1: i32, %arg2: i32) -> (i32, i32) {
    %c0_i32 = arith.constant 0 : i32
    %c0_i32_0 = arith.constant 0 : i32
    %c0_i32_1 = arith.constant 0 : i32
    return %c0_i32, %c0_i32_0 : i32, i32
  }
  func.func @transform_3(%arg0: i32, %arg1: i32, %arg2: i32) -> (i32, i32) {
    %c0_i32 = arith.constant 0 : i32
    %c0_i32_0 = arith.constant 0 : i32
    %c0_i32_1 = arith.constant 0 : i32
    return %c0_i32, %c0_i32_0 : i32, i32
  }
  func.func @transform_4(%arg0: i32, %arg1: i32, %arg2: i32) -> (i32, i32) {
    %c0_i32 = arith.constant 0 : i32
    return %arg0, %arg1 : i32, i32
  }
}

module attributes {stable_mosaic.version = 11 : i64} {
  func.func @_fused_mm_kernel(%arg0: i32, %arg1: i32, %arg2: i32, %arg3: memref<16x64xf32, #tpu.memory_space<vmem>>, %arg4: memref<64x192xbf16, #tpu.memory_space<vmem>>, %arg5: memref<1x64xf32, #tpu.memory_space<vmem>>, %arg6: memref<1x64xf32, #tpu.memory_space<vmem>>, %arg7: memref<1x192xf32, #tpu.memory_space<vmem>>, %arg8: memref<16x192xf32, #tpu.memory_space<vmem>>) attributes {dimension_semantics = [#tpu.dimension_semantics<parallel>, #tpu.dimension_semantics<parallel>, #tpu.dimension_semantics<arbitrary>], iteration_bounds = array<i64: 2, 1, 1>, scalar_prefetch = 0 : i64, scratch_operands = 0 : i64, tpu.core_type = #tpu.core_type<tc>, window_params = [{transform_indices = @transform_0, window_bounds = array<i64: 16, 64>}, {transform_indices = @transform_1, window_bounds = array<i64: 64, 192>}, {pipeline_mode = #tpu.pipeline_mode<synchronous>, transform_indices = @transform_2, window_bounds = array<i64: 1, 64>}, {pipeline_mode = #tpu.pipeline_mode<synchronous>, transform_indices = @transform_3, window_bounds = array<i64: 1, 64>}, {transform_indices = @transform_4, window_bounds = array<i64: 1, 192>}, {transform_indices = @transform_5, window_bounds = array<i64: 16, 192>}]} {
    %c0 = arith.constant 0 : index
    %c0_0 = arith.constant 0 : index
    %0 = vector.load %arg3[%c0, %c0_0] : memref<16x64xf32, #tpu.memory_space<vmem>>, vector<16x64xf32>
    %cst = arith.constant dense<0.000000e+00> : vector<16xf32>
    %1 = vector.multi_reduction <add>, %0, %cst [1] : vector<16x64xf32> to vector<16xf32>
    %2 = vector.shape_cast %1 : vector<16xf32> to vector<16x1xf32>
    %cst_1 = arith.constant 6.400000e+01 : f32
    %3 = vector.broadcast %cst_1 : f32 to vector<16x1xf32>
    %4 = arith.divf %2, %3 : vector<16x1xf32>
    %5 = vector.broadcast %4 : vector<16x1xf32> to vector<16x64xf32>
    %6 = arith.subf %0, %5 : vector<16x64xf32>
    %7 = arith.mulf %6, %6 : vector<16x64xf32>
    %cst_2 = arith.constant dense<0.000000e+00> : vector<16xf32>
    %8 = vector.multi_reduction <add>, %7, %cst_2 [1] : vector<16x64xf32> to vector<16xf32>
    %9 = vector.shape_cast %8 : vector<16xf32> to vector<16x1xf32>
    %cst_3 = arith.constant 6.400000e+01 : f32
    %10 = vector.broadcast %cst_3 : f32 to vector<16x1xf32>
    %11 = arith.divf %9, %10 : vector<16x1xf32>
    %cst_4 = arith.constant 9.99999974E-6 : f32
    %12 = vector.broadcast %cst_4 : f32 to vector<16x1xf32>
    %13 = arith.addf %11, %12 : vector<16x1xf32>
    %14 = math.rsqrt %13 : vector<16x1xf32>
    %15 = vector.broadcast %14 : vector<16x1xf32> to vector<16x64xf32>
    %16 = arith.mulf %6, %15 : vector<16x64xf32>
    %c0_5 = arith.constant 0 : index
    %c0_6 = arith.constant 0 : index
    %17 = vector.load %arg5[%c0_5, %c0_6] : memref<1x64xf32, #tpu.memory_space<vmem>>, vector<1x64xf32>
    %18 = vector.broadcast %17 : vector<1x64xf32> to vector<16x64xf32>
    %19 = arith.mulf %16, %18 : vector<16x64xf32>
    %c0_7 = arith.constant 0 : index
    %c0_8 = arith.constant 0 : index
    %20 = vector.load %arg6[%c0_7, %c0_8] : memref<1x64xf32, #tpu.memory_space<vmem>>, vector<1x64xf32>
    %21 = vector.broadcast %20 : vector<1x64xf32> to vector<16x64xf32>
    %22 = arith.addf %19, %21 : vector<16x64xf32>
    %23 = arith.truncf %22 : vector<16x64xf32> to vector<16x64xbf16>
    %c0_9 = arith.constant 0 : index
    %c0_10 = arith.constant 0 : index
    %24 = vector.load %arg4[%c0_9, %c0_10] : memref<64x192xbf16, #tpu.memory_space<vmem>>, vector<64x192xbf16>
    %cst_11 = arith.constant dense<0.000000e+00> : vector<16x192xf32>
    %25 = tpu.matmul %23, %24, %cst_11 {dimension_numbers = #tpu.dot_dimension_numbers<[1], [0], [0], [1], [0, 0, 1, 1], [], []>} : vector<16x64xbf16>, vector<64x192xbf16>, vector<16x192xf32> -> vector<16x192xf32>
    %c0_12 = arith.constant 0 : index
    %c0_13 = arith.constant 0 : index
    %26 = vector.load %arg7[%c0_12, %c0_13] : memref<1x192xf32, #tpu.memory_space<vmem>>, vector<1x192xf32>
    %27 = vector.broadcast %26 : vector<1x192xf32> to vector<16x192xf32>
    %28 = arith.addf %25, %27 : vector<16x192xf32>
    %c0_14 = arith.constant 0 : index
    %c0_15 = arith.constant 0 : index
    %29 = vector.load %arg8[%c0_14, %c0_15] : memref<16x192xf32, #tpu.memory_space<vmem>>, vector<16x192xf32>
    tpu.vector_store %arg8[%c0_14, %c0_15], %28 {strides = array<i32>} : memref<16x192xf32, #tpu.memory_space<vmem>>, vector<16x192xf32>,
    return
  }
  func.func @transform_0(%arg0: i32, %arg1: i32, %arg2: i32) -> (i32, i32) {
    %c0_i32 = arith.constant 0 : i32
    return %arg0, %arg2 : i32, i32
  }
  func.func @transform_1(%arg0: i32, %arg1: i32, %arg2: i32) -> (i32, i32) {
    %c0_i32 = arith.constant 0 : i32
    return %arg2, %arg1 : i32, i32
  }
  func.func @transform_2(%arg0: i32, %arg1: i32, %arg2: i32) -> (i32, i32) {
    %c0_i32 = arith.constant 0 : i32
    %c0_i32_0 = arith.constant 0 : i32
    %c0_i32_1 = arith.constant 0 : i32
    return %c0_i32, %c0_i32_0 : i32, i32
  }
  func.func @transform_3(%arg0: i32, %arg1: i32, %arg2: i32) -> (i32, i32) {
    %c0_i32 = arith.constant 0 : i32
    %c0_i32_0 = arith.constant 0 : i32
    %c0_i32_1 = arith.constant 0 : i32
    return %c0_i32, %c0_i32_0 : i32, i32
  }
  func.func @transform_4(%arg0: i32, %arg1: i32, %arg2: i32) -> (i32, i32) {
    %c0_i32 = arith.constant 0 : i32
    %c0_i32_0 = arith.constant 0 : i32
    return %c0_i32, %arg1 : i32, i32
  }
  func.func @transform_5(%arg0: i32, %arg1: i32, %arg2: i32) -> (i32, i32) {
    %c0_i32 = arith.constant 0 : i32
    return %arg0, %arg1 : i32, i32
  }
}

module attributes {stable_mosaic.version = 11 : i64} {
  func.func @_win_attn_kernel(%arg0: i32, %arg1: memref<3x4x16x16xf32, #tpu.memory_space<vmem>>, %arg2: memref<4x16x16xf32, #tpu.memory_space<vmem>>, %arg3: memref<4x16x16xf32, #tpu.memory_space<vmem>>) attributes {dimension_semantics = [#tpu.dimension_semantics<parallel>], iteration_bounds = array<i64: 2>, scalar_prefetch = 0 : i64, scratch_operands = 0 : i64, tpu.core_type = #tpu.core_type<tc>, window_params = [{transform_indices = @transform_0, window_bounds = array<i64: 3, 4, 16, 16>}, {pipeline_mode = #tpu.pipeline_mode<synchronous>, transform_indices = @transform_1, window_bounds = array<i64: 4, 16, 16>}, {transform_indices = @transform_2, window_bounds = array<i64: 4, 16, 16>}]} {
    %c0 = arith.constant 0 : index
    %c0_0 = arith.constant 0 : index
    %c0_1 = arith.constant 0 : index
    %c0_2 = arith.constant 0 : index
    %0 = vector.load %arg1[%c0, %c0_0, %c0_1, %c0_2] : memref<3x4x16x16xf32, #tpu.memory_space<vmem>>, vector<1x4x16x16xf32>
    %1 = vector.shape_cast %0 : vector<1x4x16x16xf32> to vector<4x16x16xf32>
    %2 = arith.truncf %1 : vector<4x16x16xf32> to vector<4x16x16xbf16>
    %c1 = arith.constant 1 : index
    %c0_3 = arith.constant 0 : index
    %c0_4 = arith.constant 0 : index
    %c0_5 = arith.constant 0 : index
    %3 = vector.load %arg1[%c1, %c0_3, %c0_4, %c0_5] : memref<3x4x16x16xf32, #tpu.memory_space<vmem>>, vector<1x4x16x16xf32>
    %4 = vector.shape_cast %3 : vector<1x4x16x16xf32> to vector<4x16x16xf32>
    %5 = arith.truncf %4 : vector<4x16x16xf32> to vector<4x16x16xbf16>
    %c2 = arith.constant 2 : index
    %c0_6 = arith.constant 0 : index
    %c0_7 = arith.constant 0 : index
    %c0_8 = arith.constant 0 : index
    %6 = vector.load %arg1[%c2, %c0_6, %c0_7, %c0_8] : memref<3x4x16x16xf32, #tpu.memory_space<vmem>>, vector<1x4x16x16xf32>
    %7 = vector.shape_cast %6 : vector<1x4x16x16xf32> to vector<4x16x16xf32>
    %8 = arith.truncf %7 : vector<4x16x16xf32> to vector<4x16x16xbf16>
    "tpu.trace_start"() <{level = 10 : i32, message = "bqd,bkd->bqk"}> : () -> ()
    %cst = arith.constant dense<0.000000e+00> : vector<4x16x16xf32>
    %9 = tpu.matmul %2, %5, %cst {dimension_numbers = #tpu.dot_dimension_numbers<[2], [2], [1], [1], [0, 0, 0, 1, 1, 1], [0], [0]>} : vector<4x16x16xbf16>, vector<4x16x16xbf16>, vector<4x16x16xf32> -> vector<4x16x16xf32>
    "tpu.trace_stop"() : () -> ()
    %cst_9 = arith.constant 2.500000e-01 : f32
    %10 = vector.broadcast %cst_9 : f32 to vector<4x16x16xf32>
    %11 = arith.mulf %9, %10 : vector<4x16x16xf32>
    %c0_10 = arith.constant 0 : index
    %c0_11 = arith.constant 0 : index
    %c0_12 = arith.constant 0 : index
    %12 = vector.load %arg2[%c0_10, %c0_11, %c0_12] : memref<4x16x16xf32, #tpu.memory_space<vmem>>, vector<4x16x16xf32>
    %13 = arith.addf %11, %12 : vector<4x16x16xf32>
    %cst_13 = arith.constant dense<0xFF800000> : vector<4x16xf32>
    %14 = vector.multi_reduction <maximumf>, %13, %cst_13 [2] : vector<4x16x16xf32> to vector<4x16xf32>
    %15 = vector.shape_cast %14 : vector<4x16xf32> to vector<4x16x1xf32>
    %16 = vector.broadcast %15 : vector<4x16x1xf32> to vector<4x16x16xf32>
    %17 = arith.subf %13, %16 : vector<4x16x16xf32>
    %18 = math.exp %17 : vector<4x16x16xf32>
    %cst_14 = arith.constant dense<0.000000e+00> : vector<4x16xf32>
    %19 = vector.multi_reduction <add>, %18, %cst_14 [2] : vector<4x16x16xf32> to vector<4x16xf32>
    %20 = vector.shape_cast %19 : vector<4x16xf32> to vector<4x16x1xf32>
    %21 = tpu.reciprocal %20 {approx = true} : vector<4x16x1xf32> -> vector<4x16x1xf32>
    %22 = vector.broadcast %21 : vector<4x16x1xf32> to vector<4x16x16xf32>
    %23 = arith.mulf %18, %22 : vector<4x16x16xf32>
    %24 = arith.truncf %23 : vector<4x16x16xf32> to vector<4x16x16xbf16>
    "tpu.trace_start"() <{level = 10 : i32, message = "bqk,bkd->bqd"}> : () -> ()
    %cst_15 = arith.constant dense<0.000000e+00> : vector<4x16x16xf32>
    %25 = tpu.matmul %24, %8, %cst_15 {dimension_numbers = #tpu.dot_dimension_numbers<[2], [1], [1], [2], [0, 0, 0, 1, 1, 2], [0], [0]>} : vector<4x16x16xbf16>, vector<4x16x16xbf16>, vector<4x16x16xf32> -> vector<4x16x16xf32>
    "tpu.trace_stop"() : () -> ()
    %c0_16 = arith.constant 0 : index
    %c0_17 = arith.constant 0 : index
    %c0_18 = arith.constant 0 : index
    %26 = vector.load %arg3[%c0_16, %c0_17, %c0_18] : memref<4x16x16xf32, #tpu.memory_space<vmem>>, vector<4x16x16xf32>
    tpu.vector_store %arg3[%c0_16, %c0_17, %c0_18], %25 {strides = array<i32>} : memref<4x16x16xf32, #tpu.memory_space<vmem>>, vector<4x16x16xf32>,
    return
  }
  func.func @transform_0(%arg0: i32) -> (i32, i32, i32, i32) {
    %c0_i32 = arith.constant 0 : i32
    %c0_i32_0 = arith.constant 0 : i32
    %c0_i32_1 = arith.constant 0 : i32
    %c0_i32_2 = arith.constant 0 : i32
    return %c0_i32, %arg0, %c0_i32_0, %c0_i32_1 : i32, i32, i32, i32
  }
  func.func @transform_1(%arg0: i32) -> (i32, i32, i32) {
    %c0_i32 = arith.constant 0 : i32
    %c0_i32_0 = arith.constant 0 : i32
    %c0_i32_1 = arith.constant 0 : i32
    %c0_i32_2 = arith.constant 0 : i32
    return %c0_i32, %c0_i32_0, %c0_i32_1 : i32, i32, i32
  }
  func.func @transform_2(%arg0: i32) -> (i32, i32, i32) {
    %c0_i32 = arith.constant 0 : i32
    %c0_i32_0 = arith.constant 0 : i32
    %c0_i32_1 = arith.constant 0 : i32
    return %arg0, %c0_i32, %c0_i32_0 : i32, i32, i32
  }
}

module attributes {stable_mosaic.version = 11 : i64} {
  func.func @_fused_mm_kernel(%arg0: i32, %arg1: i32, %arg2: i32, %arg3: memref<16x64xf32, #tpu.memory_space<vmem>>, %arg4: memref<64x64xbf16, #tpu.memory_space<vmem>>, %arg5: memref<1x64xf32, #tpu.memory_space<vmem>>, %arg6: memref<16x64xf32, #tpu.memory_space<vmem>>) attributes {dimension_semantics = [#tpu.dimension_semantics<parallel>, #tpu.dimension_semantics<parallel>, #tpu.dimension_semantics<arbitrary>], iteration_bounds = array<i64: 2, 1, 1>, scalar_prefetch = 0 : i64, scratch_operands = 0 : i64, tpu.core_type = #tpu.core_type<tc>, window_params = [{transform_indices = @transform_0, window_bounds = array<i64: 16, 64>}, {transform_indices = @transform_1, window_bounds = array<i64: 64, 64>}, {transform_indices = @transform_2, window_bounds = array<i64: 1, 64>}, {transform_indices = @transform_3, window_bounds = array<i64: 16, 64>}]} {
    %c0 = arith.constant 0 : index
    %c0_0 = arith.constant 0 : index
    %0 = vector.load %arg3[%c0, %c0_0] : memref<16x64xf32, #tpu.memory_space<vmem>>, vector<16x64xf32>
    %1 = arith.truncf %0 : vector<16x64xf32> to vector<16x64xbf16>
    %c0_1 = arith.constant 0 : index
    %c0_2 = arith.constant 0 : index
    %2 = vector.load %arg4[%c0_1, %c0_2] : memref<64x64xbf16, #tpu.memory_space<vmem>>, vector<64x64xbf16>
    %cst = arith.constant dense<0.000000e+00> : vector<16x64xf32>
    %3 = tpu.matmul %1, %2, %cst {dimension_numbers = #tpu.dot_dimension_numbers<[1], [0], [0], [1], [0, 0, 1, 1], [], []>} : vector<16x64xbf16>, vector<64x64xbf16>, vector<16x64xf32> -> vector<16x64xf32>
    %c0_3 = arith.constant 0 : index
    %c0_4 = arith.constant 0 : index
    %4 = vector.load %arg5[%c0_3, %c0_4] : memref<1x64xf32, #tpu.memory_space<vmem>>, vector<1x64xf32>
    %5 = vector.broadcast %4 : vector<1x64xf32> to vector<16x64xf32>
    %6 = arith.addf %3, %5 : vector<16x64xf32>
    %c0_5 = arith.constant 0 : index
    %c0_6 = arith.constant 0 : index
    %7 = vector.load %arg6[%c0_5, %c0_6] : memref<16x64xf32, #tpu.memory_space<vmem>>, vector<16x64xf32>
    tpu.vector_store %arg6[%c0_5, %c0_6], %6 {strides = array<i32>} : memref<16x64xf32, #tpu.memory_space<vmem>>, vector<16x64xf32>,
    return
  }
  func.func @transform_0(%arg0: i32, %arg1: i32, %arg2: i32) -> (i32, i32) {
    %c0_i32 = arith.constant 0 : i32
    return %arg0, %arg2 : i32, i32
  }
  func.func @transform_1(%arg0: i32, %arg1: i32, %arg2: i32) -> (i32, i32) {
    %c0_i32 = arith.constant 0 : i32
    return %arg2, %arg1 : i32, i32
  }
  func.func @transform_2(%arg0: i32, %arg1: i32, %arg2: i32) -> (i32, i32) {
    %c0_i32 = arith.constant 0 : i32
    %c0_i32_0 = arith.constant 0 : i32
    return %c0_i32, %arg1 : i32, i32
  }
  func.func @transform_3(%arg0: i32, %arg1: i32, %arg2: i32) -> (i32, i32) {
    %c0_i32 = arith.constant 0 : i32
    return %arg0, %arg1 : i32, i32
  }
}

module attributes {stable_mosaic.version = 11 : i64} {
  func.func @_fused_mm_kernel(%arg0: i32, %arg1: i32, %arg2: i32, %arg3: memref<16x64xf32, #tpu.memory_space<vmem>>, %arg4: memref<64x256xbf16, #tpu.memory_space<vmem>>, %arg5: memref<1x64xf32, #tpu.memory_space<vmem>>, %arg6: memref<1x64xf32, #tpu.memory_space<vmem>>, %arg7: memref<1x256xf32, #tpu.memory_space<vmem>>, %arg8: memref<16x256xf32, #tpu.memory_space<vmem>>) attributes {dimension_semantics = [#tpu.dimension_semantics<parallel>, #tpu.dimension_semantics<parallel>, #tpu.dimension_semantics<arbitrary>], iteration_bounds = array<i64: 2, 1, 1>, scalar_prefetch = 0 : i64, scratch_operands = 0 : i64, tpu.core_type = #tpu.core_type<tc>, window_params = [{transform_indices = @transform_0, window_bounds = array<i64: 16, 64>}, {transform_indices = @transform_1, window_bounds = array<i64: 64, 256>}, {pipeline_mode = #tpu.pipeline_mode<synchronous>, transform_indices = @transform_2, window_bounds = array<i64: 1, 64>}, {pipeline_mode = #tpu.pipeline_mode<synchronous>, transform_indices = @transform_3, window_bounds = array<i64: 1, 64>}, {transform_indices = @transform_4, window_bounds = array<i64: 1, 256>}, {transform_indices = @transform_5, window_bounds = array<i64: 16, 256>}]} {
    %c0 = arith.constant 0 : index
    %c0_0 = arith.constant 0 : index
    %0 = vector.load %arg3[%c0, %c0_0] : memref<16x64xf32, #tpu.memory_space<vmem>>, vector<16x64xf32>
    %cst = arith.constant dense<0.000000e+00> : vector<16xf32>
    %1 = vector.multi_reduction <add>, %0, %cst [1] : vector<16x64xf32> to vector<16xf32>
    %2 = vector.shape_cast %1 : vector<16xf32> to vector<16x1xf32>
    %cst_1 = arith.constant 6.400000e+01 : f32
    %3 = vector.broadcast %cst_1 : f32 to vector<16x1xf32>
    %4 = arith.divf %2, %3 : vector<16x1xf32>
    %5 = vector.broadcast %4 : vector<16x1xf32> to vector<16x64xf32>
    %6 = arith.subf %0, %5 : vector<16x64xf32>
    %7 = arith.mulf %6, %6 : vector<16x64xf32>
    %cst_2 = arith.constant dense<0.000000e+00> : vector<16xf32>
    %8 = vector.multi_reduction <add>, %7, %cst_2 [1] : vector<16x64xf32> to vector<16xf32>
    %9 = vector.shape_cast %8 : vector<16xf32> to vector<16x1xf32>
    %cst_3 = arith.constant 6.400000e+01 : f32
    %10 = vector.broadcast %cst_3 : f32 to vector<16x1xf32>
    %11 = arith.divf %9, %10 : vector<16x1xf32>
    %cst_4 = arith.constant 9.99999974E-6 : f32
    %12 = vector.broadcast %cst_4 : f32 to vector<16x1xf32>
    %13 = arith.addf %11, %12 : vector<16x1xf32>
    %14 = math.rsqrt %13 : vector<16x1xf32>
    %15 = vector.broadcast %14 : vector<16x1xf32> to vector<16x64xf32>
    %16 = arith.mulf %6, %15 : vector<16x64xf32>
    %c0_5 = arith.constant 0 : index
    %c0_6 = arith.constant 0 : index
    %17 = vector.load %arg5[%c0_5, %c0_6] : memref<1x64xf32, #tpu.memory_space<vmem>>, vector<1x64xf32>
    %18 = vector.broadcast %17 : vector<1x64xf32> to vector<16x64xf32>
    %19 = arith.mulf %16, %18 : vector<16x64xf32>
    %c0_7 = arith.constant 0 : index
    %c0_8 = arith.constant 0 : index
    %20 = vector.load %arg6[%c0_7, %c0_8] : memref<1x64xf32, #tpu.memory_space<vmem>>, vector<1x64xf32>
    %21 = vector.broadcast %20 : vector<1x64xf32> to vector<16x64xf32>
    %22 = arith.addf %19, %21 : vector<16x64xf32>
    %23 = arith.truncf %22 : vector<16x64xf32> to vector<16x64xbf16>
    %c0_9 = arith.constant 0 : index
    %c0_10 = arith.constant 0 : index
    %24 = vector.load %arg4[%c0_9, %c0_10] : memref<64x256xbf16, #tpu.memory_space<vmem>>, vector<64x256xbf16>
    %cst_11 = arith.constant dense<0.000000e+00> : vector<16x256xf32>
    %25 = tpu.matmul %23, %24, %cst_11 {dimension_numbers = #tpu.dot_dimension_numbers<[1], [0], [0], [1], [0, 0, 1, 1], [], []>} : vector<16x64xbf16>, vector<64x256xbf16>, vector<16x256xf32> -> vector<16x256xf32>
    %c0_12 = arith.constant 0 : index
    %c0_13 = arith.constant 0 : index
    %26 = vector.load %arg7[%c0_12, %c0_13] : memref<1x256xf32, #tpu.memory_space<vmem>>, vector<1x256xf32>
    %27 = vector.broadcast %26 : vector<1x256xf32> to vector<16x256xf32>
    %28 = arith.addf %25, %27 : vector<16x256xf32>
    %29 = arith.mulf %28, %28 : vector<16x256xf32>
    %30 = arith.mulf %28, %29 : vector<16x256xf32>
    %cst_14 = arith.constant 4.471500e-02 : f32
    %31 = vector.broadcast %cst_14 : f32 to vector<16x256xf32>
    %32 = arith.mulf %31, %30 : vector<16x256xf32>
    %33 = arith.addf %28, %32 : vector<16x256xf32>
    %cst_15 = arith.constant 0.797884583 : f32
    %34 = vector.broadcast %cst_15 : f32 to vector<16x256xf32>
    %35 = arith.mulf %34, %33 : vector<16x256xf32>
    %36 = math.tanh %35 : vector<16x256xf32>
    %cst_16 = arith.constant 1.000000e+00 : f32
    %37 = vector.broadcast %cst_16 : f32 to vector<16x256xf32>
    %38 = arith.addf %37, %36 : vector<16x256xf32>
    %cst_17 = arith.constant 5.000000e-01 : f32
    %39 = vector.broadcast %cst_17 : f32 to vector<16x256xf32>
    %40 = arith.mulf %39, %38 : vector<16x256xf32>
    %41 = arith.mulf %28, %40 : vector<16x256xf32>
    %c0_18 = arith.constant 0 : index
    %c0_19 = arith.constant 0 : index
    %42 = vector.load %arg8[%c0_18, %c0_19] : memref<16x256xf32, #tpu.memory_space<vmem>>, vector<16x256xf32>
    tpu.vector_store %arg8[%c0_18, %c0_19], %41 {strides = array<i32>} : memref<16x256xf32, #tpu.memory_space<vmem>>, vector<16x256xf32>,
    return
  }
  func.func @transform_0(%arg0: i32, %arg1: i32, %arg2: i32) -> (i32, i32) {
    %c0_i32 = arith.constant 0 : i32
    return %arg0, %arg2 : i32, i32
  }
  func.func @transform_1(%arg0: i32, %arg1: i32, %arg2: i32) -> (i32, i32) {
    %c0_i32 = arith.constant 0 : i32
    return %arg2, %arg1 : i32, i32
  }
  func.func @transform_2(%arg0: i32, %arg1: i32, %arg2: i32) -> (i32, i32) {
    %c0_i32 = arith.constant 0 : i32
    %c0_i32_0 = arith.constant 0 : i32
    %c0_i32_1 = arith.constant 0 : i32
    return %c0_i32, %c0_i32_0 : i32, i32
  }
  func.func @transform_3(%arg0: i32, %arg1: i32, %arg2: i32) -> (i32, i32) {
    %c0_i32 = arith.constant 0 : i32
    %c0_i32_0 = arith.constant 0 : i32
    %c0_i32_1 = arith.constant 0 : i32
    return %c0_i32, %c0_i32_0 : i32, i32
  }
  func.func @transform_4(%arg0: i32, %arg1: i32, %arg2: i32) -> (i32, i32) {
    %c0_i32 = arith.constant 0 : i32
    %c0_i32_0 = arith.constant 0 : i32
    return %c0_i32, %arg1 : i32, i32
  }
  func.func @transform_5(%arg0: i32, %arg1: i32, %arg2: i32) -> (i32, i32) {
    %c0_i32 = arith.constant 0 : i32
    return %arg0, %arg1 : i32, i32
  }
}

module attributes {stable_mosaic.version = 11 : i64} {
  func.func @_fused_mm_kernel(%arg0: i32, %arg1: i32, %arg2: i32, %arg3: memref<16x256xf32, #tpu.memory_space<vmem>>, %arg4: memref<256x64xbf16, #tpu.memory_space<vmem>>, %arg5: memref<1x64xf32, #tpu.memory_space<vmem>>, %arg6: memref<16x64xf32, #tpu.memory_space<vmem>>, %arg7: memref<16x64xf32, #tpu.memory_space<vmem>>) attributes {dimension_semantics = [#tpu.dimension_semantics<parallel>, #tpu.dimension_semantics<parallel>, #tpu.dimension_semantics<arbitrary>], iteration_bounds = array<i64: 2, 1, 1>, scalar_prefetch = 0 : i64, scratch_operands = 0 : i64, tpu.core_type = #tpu.core_type<tc>, window_params = [{transform_indices = @transform_0, window_bounds = array<i64: 16, 256>}, {transform_indices = @transform_1, window_bounds = array<i64: 256, 64>}, {transform_indices = @transform_2, window_bounds = array<i64: 1, 64>}, {transform_indices = @transform_3, window_bounds = array<i64: 16, 64>}, {transform_indices = @transform_4, window_bounds = array<i64: 16, 64>}]} {
    %c0 = arith.constant 0 : index
    %c0_0 = arith.constant 0 : index
    %0 = vector.load %arg3[%c0, %c0_0] : memref<16x256xf32, #tpu.memory_space<vmem>>, vector<16x256xf32>
    %1 = arith.truncf %0 : vector<16x256xf32> to vector<16x256xbf16>
    %c0_1 = arith.constant 0 : index
    %c0_2 = arith.constant 0 : index
    %2 = vector.load %arg4[%c0_1, %c0_2] : memref<256x64xbf16, #tpu.memory_space<vmem>>, vector<256x64xbf16>
    %cst = arith.constant dense<0.000000e+00> : vector<16x64xf32>
    %3 = tpu.matmul %1, %2, %cst {dimension_numbers = #tpu.dot_dimension_numbers<[1], [0], [0], [1], [0, 0, 1, 1], [], []>} : vector<16x256xbf16>, vector<256x64xbf16>, vector<16x64xf32> -> vector<16x64xf32>
    %c0_3 = arith.constant 0 : index
    %c0_4 = arith.constant 0 : index
    %4 = vector.load %arg5[%c0_3, %c0_4] : memref<1x64xf32, #tpu.memory_space<vmem>>, vector<1x64xf32>
    %5 = vector.broadcast %4 : vector<1x64xf32> to vector<16x64xf32>
    %6 = arith.addf %3, %5 : vector<16x64xf32>
    %c0_5 = arith.constant 0 : index
    %c0_6 = arith.constant 0 : index
    %7 = vector.load %arg6[%c0_5, %c0_6] : memref<16x64xf32, #tpu.memory_space<vmem>>, vector<16x64xf32>
    %8 = arith.addf %6, %7 : vector<16x64xf32>
    %c0_7 = arith.constant 0 : index
    %c0_8 = arith.constant 0 : index
    %9 = vector.load %arg7[%c0_7, %c0_8] : memref<16x64xf32, #tpu.memory_space<vmem>>, vector<16x64xf32>
    tpu.vector_store %arg7[%c0_7, %c0_8], %8 {strides = array<i32>} : memref<16x64xf32, #tpu.memory_space<vmem>>, vector<16x64xf32>,
    return
  }
  func.func @transform_0(%arg0: i32, %arg1: i32, %arg2: i32) -> (i32, i32) {
    %c0_i32 = arith.constant 0 : i32
    return %arg0, %arg2 : i32, i32
  }
  func.func @transform_1(%arg0: i32, %arg1: i32, %arg2: i32) -> (i32, i32) {
    %c0_i32 = arith.constant 0 : i32
    return %arg2, %arg1 : i32, i32
  }
  func.func @transform_2(%arg0: i32, %arg1: i32, %arg2: i32) -> (i32, i32) {
    %c0_i32 = arith.constant 0 : i32
    %c0_i32_0 = arith.constant 0 : i32
    return %c0_i32, %arg1 : i32, i32
  }
  func.func @transform_3(%arg0: i32, %arg1: i32, %arg2: i32) -> (i32, i32) {
    %c0_i32 = arith.constant 0 : i32
    return %arg0, %arg1 : i32, i32
  }
  func.func @transform_4(%arg0: i32, %arg1: i32, %arg2: i32) -> (i32, i32) {
    %c0_i32 = arith.constant 0 : i32
    return %arg0, %arg1 : i32, i32
  }
}

module attributes {stable_mosaic.version = 11 : i64} {
  func.func @_ln_kernel(%arg0: i32, %arg1: memref<16x64xf32, #tpu.memory_space<vmem>>, %arg2: memref<1x64xf32, #tpu.memory_space<vmem>>, %arg3: memref<1x64xf32, #tpu.memory_space<vmem>>, %arg4: memref<16x64xf32, #tpu.memory_space<vmem>>) attributes {dimension_semantics = [#tpu.dimension_semantics<parallel>], iteration_bounds = array<i64: 2>, scalar_prefetch = 0 : i64, scratch_operands = 0 : i64, tpu.core_type = #tpu.core_type<tc>, window_params = [{transform_indices = @transform_0, window_bounds = array<i64: 16, 64>}, {pipeline_mode = #tpu.pipeline_mode<synchronous>, transform_indices = @transform_1, window_bounds = array<i64: 1, 64>}, {pipeline_mode = #tpu.pipeline_mode<synchronous>, transform_indices = @transform_2, window_bounds = array<i64: 1, 64>}, {transform_indices = @transform_3, window_bounds = array<i64: 16, 64>}]} {
    %c0 = arith.constant 0 : index
    %c0_0 = arith.constant 0 : index
    %0 = vector.load %arg1[%c0, %c0_0] : memref<16x64xf32, #tpu.memory_space<vmem>>, vector<16x64xf32>
    %cst = arith.constant dense<0.000000e+00> : vector<16xf32>
    %1 = vector.multi_reduction <add>, %0, %cst [1] : vector<16x64xf32> to vector<16xf32>
    %2 = vector.shape_cast %1 : vector<16xf32> to vector<16x1xf32>
    %cst_1 = arith.constant 6.400000e+01 : f32
    %3 = vector.broadcast %cst_1 : f32 to vector<16x1xf32>
    %4 = arith.divf %2, %3 : vector<16x1xf32>
    %5 = vector.broadcast %4 : vector<16x1xf32> to vector<16x64xf32>
    %6 = arith.subf %0, %5 : vector<16x64xf32>
    %7 = arith.mulf %6, %6 : vector<16x64xf32>
    %cst_2 = arith.constant dense<0.000000e+00> : vector<16xf32>
    %8 = vector.multi_reduction <add>, %7, %cst_2 [1] : vector<16x64xf32> to vector<16xf32>
    %9 = vector.shape_cast %8 : vector<16xf32> to vector<16x1xf32>
    %cst_3 = arith.constant 6.400000e+01 : f32
    %10 = vector.broadcast %cst_3 : f32 to vector<16x1xf32>
    %11 = arith.divf %9, %10 : vector<16x1xf32>
    %cst_4 = arith.constant 9.99999974E-6 : f32
    %12 = vector.broadcast %cst_4 : f32 to vector<16x1xf32>
    %13 = arith.addf %11, %12 : vector<16x1xf32>
    %14 = math.rsqrt %13 : vector<16x1xf32>
    %15 = vector.broadcast %14 : vector<16x1xf32> to vector<16x64xf32>
    %16 = arith.mulf %6, %15 : vector<16x64xf32>
    %c0_5 = arith.constant 0 : index
    %c0_6 = arith.constant 0 : index
    %17 = vector.load %arg2[%c0_5, %c0_6] : memref<1x64xf32, #tpu.memory_space<vmem>>, vector<1x64xf32>
    %18 = vector.broadcast %17 : vector<1x64xf32> to vector<16x64xf32>
    %19 = arith.mulf %16, %18 : vector<16x64xf32>
    %c0_7 = arith.constant 0 : index
    %c0_8 = arith.constant 0 : index
    %20 = vector.load %arg3[%c0_7, %c0_8] : memref<1x64xf32, #tpu.memory_space<vmem>>, vector<1x64xf32>
    %21 = vector.broadcast %20 : vector<1x64xf32> to vector<16x64xf32>
    %22 = arith.addf %19, %21 : vector<16x64xf32>
    %c0_9 = arith.constant 0 : index
    %c0_10 = arith.constant 0 : index
    %23 = vector.load %arg4[%c0_9, %c0_10] : memref<16x64xf32, #tpu.memory_space<vmem>>, vector<16x64xf32>
    tpu.vector_store %arg4[%c0_9, %c0_10], %22 {strides = array<i32>} : memref<16x64xf32, #tpu.memory_space<vmem>>, vector<16x64xf32>,
    return
  }
  func.func @transform_0(%arg0: i32) -> (i32, i32) {
    %c0_i32 = arith.constant 0 : i32
    %c0_i32_0 = arith.constant 0 : i32
    return %arg0, %c0_i32 : i32, i32
  }
  func.func @transform_1(%arg0: i32) -> (i32, i32) {
    %c0_i32 = arith.constant 0 : i32
    %c0_i32_0 = arith.constant 0 : i32
    %c0_i32_1 = arith.constant 0 : i32
    return %c0_i32, %c0_i32_0 : i32, i32
  }
  func.func @transform_2(%arg0: i32) -> (i32, i32) {
    %c0_i32 = arith.constant 0 : i32
    %c0_i32_0 = arith.constant 0 : i32
    %c0_i32_1 = arith.constant 0 : i32
    return %c0_i32, %c0_i32_0 : i32, i32
  }
  func.func @transform_3(%arg0: i32) -> (i32, i32) {
    %c0_i32 = arith.constant 0 : i32
    %c0_i32_0 = arith.constant 0 : i32
    return %arg0, %c0_i32 : i32, i32
  }
}

</mosaic_0001>

<bundles_post_ra>
// kernel: _lambda_.23
= control target key start
LH: loop header
LB: loop body
LE: loop exit
PB: predicated region body
PF: predicated region fallthrough
CT: control target
= control target key end

     0   :  { %s620_s12 = smov 0   ;;  %s622_s13 = smov 0   ;;  %s680_s0 = inlined_call_operand.vmem [shape: f32[128,48], index: 0, kind: input, shape index: {}]   ;;  %s681_s1 = inlined_call_operand.vmem [shape: bf16[48,32], index: 1, kind: input, shape index: {}]   ;;  %s682_s2 = inlined_call_operand.vmem [shape: f32[1,32], index: 2, kind: input, shape index: {}]   ;;  %s683_s3 = inlined_call_operand.vmem [shape: f32[128,32], index: 3, kind: output, shape index: {}]  }
   0x1   :  { %s624_s14 = smov 0  }
   0x2 LB: > { %s32_s15 = sadd.s32 1, %s594_s13  ;;  %p507_p0 = scmp.ge.s32.totalorder %s598_s14, 1  ;;  %s598_s14 = sphi %s624_s14, %s13_s14   ;;  %s594_s13 = sphi %s622_s13, %s685_s13   ;;  %s590_s12 = sphi %s620_s12, %s684_s12  }
   0x3   : > { %p34_p1 = scmp.ge.s32.totalorder %s32_s15, 2  ;;  %p188_p2 = scmp.lt.s32.totalorder %s598_s14, 3 }
   0x5   : > { %s687_s15 = smov (%p34_p1, %s32_s15), 0  ;;  %p189_p3 = pnand %p507_p0, %p188_p2 }
   0x6   : > { %v573_v0 = vld [vmem:[%s681_s1] sm:$0xff] (!%p189_p3)   ;;  %s508_s18 = sshll.u32 (!%p189_p3), %s590_s12, 3  ;;  %v574_v1 = vld [vmem:[%s681_s1 + $0x8] sm:$0xff] (!%p189_p3)   ;;  %v575_v2 = vld [vmem:[%s681_s1 + $0x10] sm:$0xff] (!%p189_p3)   ;;  %vm303_vm0 = vcmask (!%p189_p3), 392192   ;;  %vm381_vm1 = vcmask (!%p189_p3), 261120  }
   0x7   : > { %192 = sbr.rel (%p189_p3) target bundleno = 240 (0xf0), region = 32  ;;  %p230_p4 = scmp.lt.s32.totalorder (!%p189_p3), %s508_s18, 15  ;;  %529 = vmatprep.subr.bf16.mxu0 (!%p189_p3), %v573_v0  ;;  %543 = vmatprep.subr.bf16.mxu1 (!%p189_p3), %v573_v0  ;;  %v512_v15 = vld [vmem:[%s682_s2] ss:$0 sm:$0xff] (!%p189_p3) }
   0x8   : > { %530 = vmatpush3.bf16.msra.mxu0 (!%p189_p3), %v573_v0  ;;  %546 = vmatpush3.bf16.msra.mxu1 (!%p189_p3), %v573_v0 }
   0x9   : > { %531 = vmatprep.subr.bf16.mxu0 (!%p189_p3), %v574_v1  ;;  %544 = vmatprep.subr.bf16.mxu1 (!%p189_p3), %v574_v1 }
   0xc   : > { %532 = vmatpush3.bf16.msra.mxu0 (!%p189_p3), %v574_v1  ;;  %547 = vmatpush3.bf16.msra.mxu1 (!%p189_p3), %v574_v1 }
   0xd   : > { %533 = vmatprep.subr.bf16.mxu0 (!%p189_p3), %v575_v2  ;;  %545 = vmatprep.subr.bf16.mxu1 (!%p189_p3), %v575_v2 }
   0xe   : > { %s689_s18 = smov (!%p230_p4, %s508_s18), 15 }
   0xf   : > { %s509_s23 = sshll.u32 %s689_s18, 3 }
  0x10   : > { %s236_s26 = scalar_lea.vmem %s680_s0, %s509_s23  ;;  %534 = vmatpush3.bf16.msra.mxu0 %v575_v2  ;;  %548 = vmatpush3.bf16.msra.mxu1 %v575_v2  ;;  %s257_s4 = scalar_lea.vmem %s683_s3, %s509_s23 }
  0x11   : > { %v260_v3 = vld [vmem:[%s236_s26] sm:$0xff]  ;;  %v261_v4 = vld [vmem:[%s236_s26 + $0x8] sm:$0xff]  ;;  %v262_v8 = vld [vmem:[%s236_s26 + $0x10] sm:$0xff] }
  0x12   : > { %v264_v5 = vld [vmem:[%s236_s26 + $0x20] sm:$0xff]  ;;  %v268_v6 = vpack.c.bf16 %v261_v4, %v260_v3  ;;  %v265_v7 = vld [vmem:[%s236_s26 + $0x28] sm:$0xff]  ;;  %v263_v9 = vld [vmem:[%s236_s26 + $0x18] sm:$0xff] }
  0x13   : > { %v270_v10 = vpack.c.bf16 %v265_v7, %v264_v5  ;;  %v266_v11 = vld [vmem:[%s236_s26 + $0x30] sm:$0xff]  ;;  %v267_v12 = vld [vmem:[%s236_s26 + $0x38] sm:$0xff]  ;;  %v269_v13 = vpack.c.bf16 %v263_v9, %v262_v8 }
  0x14   : > { %535 = vmatprep.mubr.msk.bf16.mxu0 %vm303_vm0, %v268_v6  ;;  %v271_v14 = vpack.c.bf16 %v267_v12, %v266_v11 }
  0x15   : > { %539 = vmatprep.mubr.msk.bf16.mxu1 %vm303_vm0, %v270_v10  ;;  %536 = vmatmul.mubr.msk.bf16.vlgmr.msra.gmra.mrb[0].mxu0 %vm303_vm0, %v269_v13 }
  0x16   : > { %540 = vmatmul.mubr.msk.bf16.vlgmr.msra.gmra.mrb[0].mxu1 %vm303_vm0, %v271_v14 }
  0xe8   : > { %v537_v16 = vpop.f32.mrb[0].mxu0 }
  0xe9   : > { %v541_v17 = vpop.f32.mrb[0].mxu1  ;;  %v359_v18 = vadd.f32 %v537_v16, %v512_v15  ;;  %v350_v20 = vpop.f32.mrb[1].mxu0 }
  0xea   : > { %v375_v19 = vadd.f32 %v541_v17, %v512_v15  ;;  %v366_v21 = vpop.f32.mrb[1].mxu1  ;;  %v351_v22 = vadd.f32 %v512_v15, %v350_v20  ;;  %v538_v24 = vpop.f32.mrb[2].mxu0 }
  0xeb   : > { %v367_v23 = vadd.f32 %v512_v15, %v366_v21  ;;  %v542_v25 = vpop.f32.mrb[2].mxu1  ;;  %384 = vst.msk [vmem:[%s257_s4 + $0x10] sm:$0xff] %vm381_vm1, %v359_v18  ;;  %v362_v26 = vadd.f32 %v538_v24, %v512_v15  ;;  %v353_v28 = vpop.f32.mrb[3].mxu0 }
  0xec   : > { %388 = vst.msk [vmem:[%s257_s4 + $0x30] sm:$0xff] %vm381_vm1, %v375_v19  ;;  %v378_v27 = vadd.f32 %v542_v25, %v512_v15  ;;  %v369_v29 = vpop.f32.mrb[3].mxu1  ;;  %382 = vst.msk [vmem:[%s257_s4] sm:$0xff] %vm381_vm1, %v351_v22  ;;  %v354_v30 = vadd.f32 %v512_v15, %v353_v28 }
  0xed   : > { %386 = vst.msk [vmem:[%s257_s4 + $0x20] sm:$0xff] %vm381_vm1, %v367_v23  ;;  %v370_v31 = vadd.f32 %v512_v15, %v369_v29  ;;  %385 = vst.msk [vmem:[%s257_s4 + $0x18] sm:$0xff] %vm381_vm1, %v362_v26 }
  0xee   : > { %389 = vst.msk [vmem:[%s257_s4 + $0x38] sm:$0xff] %vm381_vm1, %v378_v27  ;;  %383 = vst.msk [vmem:[%s257_s4 + $0x8] sm:$0xff] %vm381_vm1, %v354_v30 }
  0xef   : > { %387 = vst.msk [vmem:[%s257_s4 + $0x28] sm:$0xff] %vm381_vm1, %v370_v31 }
  0xf0 PF: > { %s13_s14 = sadd.s32 1, %s598_s14   ;;  %s684_s12 = smov %s594_s13 }
  0xf1   : > { %p10_p5 = scmp.ge.s32.totalorder %s13_s14, 4   ;;  %s685_s13 = smov %s687_s15 }
  0xf3   :  { %12 = sbr.rel (!%p10_p5) target bundleno = 2 (0x2), region = 68 }

// kernel: _lambda_.24
= control target key start
LH: loop header
LB: loop body
LE: loop exit
PB: predicated region body
PF: predicated region fallthrough
CT: control target
= control target key end

     0   :  { %s822_s18 = smov 0   ;;  %s824_s19 = smov 0   ;;  %s945_s0 = inlined_call_operand.vmem [shape: f32[128,32], index: 0, kind: input, shape index: {}]   ;;  %s946_s1 = inlined_call_operand.vmem [shape: bf16[32,96], index: 1, kind: input, shape index: {}]   ;;  %s947_s2 = inlined_call_operand.vmem [shape: f32[1,32], index: 2, kind: input, shape index: {}]   ;;  %s948_s3 = inlined_call_operand.vmem [shape: f32[1,32], index: 3, kind: input, shape index: {}]   ;;  %s949_s4 = inlined_call_operand.vmem [shape: f32[1,96], index: 4, kind: input, shape index: {}]   ;;  %s950_s5 = inlined_call_operand.vmem [shape: f32[128,96], index: 5, kind: output, shape index: {}]  }
   0x1   :  { %s826_s20 = smov 0  }
   0x2 LB: > { %s34_s21 = sadd.s32 1, %s786_s19  ;;  %p688_p0 = scmp.ge.s32.totalorder %s790_s20, 1  ;;  %s790_s20 = sphi %s826_s20, %s15_s20   ;;  %s786_s19 = sphi %s824_s19, %s952_s19   ;;  %s782_s18 = sphi %s822_s18, %s951_s18  }
   0x3   : > { %p36_p1 = scmp.ge.s32.totalorder %s34_s21, 2  ;;  %p238_p2 = scmp.lt.s32.totalorder %s790_s20, 3 }
   0x5   : > { %s954_s21 = smov (%p36_p1, %s34_s21), 0  ;;  %p239_p3 = pnand %p688_p0, %p238_p2 }
   0x6   : > { %s689_s22 = sshll.u32 (!%p239_p3), %s782_s18, 3  ;;  %vm322_vm0 = vcmask (!%p239_p3), 261120   ;;  %v750_v56 = vld [vmem:[%s946_s1] sm:$0xff] (!%p239_p3)   ;;  %v751_v57 = vld [vmem:[%s946_s1 + $0x8] sm:$0xff] (!%p239_p3)   ;;  %vm562_vm1 = vcmask (!%p239_p3), 785408  }
   0x7   : > { %242 = sbr.rel (%p239_p3) target bundleno = 567 (0x237), region = 40  ;;  %p284_p4 = scmp.lt.s32.totalorder (!%p239_p3), %s689_s22, 15  ;;  %710 = vmatprep.subr.bf16.mxu0 (!%p239_p3), %v750_v56  ;;  %722 = vmatprep.subr.bf16.mxu1 (!%p239_p3), %v750_v56 }
   0x8   : > { %711 = vmatpush3.bf16.msra.mxu0 (!%p239_p3), %v750_v56  ;;  %724 = vmatpush3.bf16.msra.mxu1 (!%p239_p3), %v750_v56 }
   0x9   : > { %712 = vmatprep.subr.bf16.mxu0 (!%p239_p3), %v751_v57  ;;  %723 = vmatprep.subr.bf16.mxu1 (!%p239_p3), %v751_v57 }
   0xc   : > { %713 = vmatpush3.bf16.msra.mxu0 (!%p239_p3), %v751_v57  ;;  %725 = vmatpush3.bf16.msra.mxu1 (!%p239_p3), %v751_v57 }
   0xe   : > { %s956_s22 = smov (!%p284_p4, %s689_s22), 15 }
   0xf   : > { %s690_s23 = sshll.u32 %s956_s22, 3 }
  0x10   : > { %s290_s26 = scalar_lea.vmem %s945_s0, %s690_s23  ;;  %s311_s14 = scalar_lea.vmem %s950_s5, %s690_s23 }
  0x11   : > { %v314_v0 = vld [vmem:[%s290_s26] sm:$0xff]  ;;  %v315_v2 = vld [vmem:[%s290_s26 + $0x8] sm:$0xff]  ;;  %v316_v8 = vld [vmem:[%s290_s26 + $0x10] sm:$0xff] }
  0x12   : > { %v318_v1 = vld [vmem:[%s290_s26 + $0x20] sm:$0xff]  ;;  %v323_v3 = vsel %vm322_vm0, %v314_v0, 0.0  ;;  %v319_v5 = vld [vmem:[%s290_s26 + $0x28] sm:$0xff]  ;;  %v326_v6 = vsel %vm322_vm0, %v315_v2, 0.0  ;;  %v317_v9 = vld [vmem:[%s290_s26 + $0x18] sm:$0xff]  ;;  %v329_v10 = vsel %vm322_vm0, %v316_v8, 0.0 }
  0x13   : > { %v335_v4 = vsel %vm322_vm0, %v318_v1, 0.0  ;;  %324 = vadd.xlane.f32.xlu0 %v323_v3  ;;  %v338_v7 = vsel %vm322_vm0, %v319_v5, 0.0  ;;  %v332_v11 = vsel %vm322_vm0, %v317_v9, 0.0  ;;  %v320_v12 = vld [vmem:[%s290_s26 + $0x30] sm:$0xff]  ;;  %v321_v13 = vld [vmem:[%s290_s26 + $0x38] sm:$0xff] }
  0x14   : > { %336 = vadd.xlane.f32.xlu1 %v335_v4  ;;  %v341_v14 = vsel %vm322_vm0, %v320_v12, 0.0  ;;  %v344_v15 = vsel %vm322_vm0, %v321_v13, 0.0 }
  0x17   : > { %327 = vadd.xlane.f32.xlu0 %v326_v6 }
  0x18   : > { %339 = vadd.xlane.f32.xlu1 %v338_v7 }
  0x1b   : > { %330 = vadd.xlane.f32.xlu0 %v329_v10 }
  0x1c   : > { %333 = vadd.xlane.f32.xlu1 %v332_v11 }
  0x1f   : > { %342 = vadd.xlane.f32.xlu0 %v341_v14 }
  0x20   : > { %345 = vadd.xlane.f32.xlu1 %v344_v15 }
  0xa0   : > { %v325_v16 = vpop.xlane.xlu0 %324 }
  0xa1   : > { %v337_v17 = vpop.xlane.xlu1 %336  ;;  %v348_v18 = vmul.f32 0.03125, %v325_v16 }
  0xa2   : > { %v352_v19 = vmul.f32 0.03125, %v337_v17 }
  0xa3   : > { %v856_v20 = vsub.f32 %v314_v0, %v348_v18 }
  0xa4   : > { %v858_v21 = vsub.f32 %v318_v1, %v352_v19  ;;  %v328_v22 = vpop.xlane.xlu0 %327  ;;  %v693_v19 = vld [vmem:[%s947_s2] ss:$0 sm:$0xff] }
  0xa5   : > { %v340_v23 = vpop.xlane.xlu1 %339  ;;  %v349_v24 = vmul.f32 0.03125, %v328_v22  ;;  %v364_v26 = vmul.f32 %v856_v20, %v856_v20 }
  0xa6   : > { %v353_v25 = vmul.f32 0.03125, %v340_v23  ;;  %v368_v27 = vmul.f32 %v858_v21, %v858_v21 }
  0xa7   : > { %v864_v28 = vsub.f32 %v315_v2, %v349_v24  ;;  %v372_v30 = vsel %vm322_vm0, %v364_v26, 0.0 }
  0xa8   : > { %v866_v29 = vsub.f32 %v319_v5, %v353_v25  ;;  %373 = vadd.xlane.f32.xlu0 %v372_v30  ;;  %v331_v31 = vpop.xlane.xlu0 %330  ;;  %v384_v33 = vsel %vm322_vm0, %v368_v27, 0.0  ;;  %v694_v27 = vld [vmem:[%s948_s3] ss:$0 sm:$0xff] }
  0xa9   : > { %v334_v32 = vpop.xlane.xlu1 %333  ;;  %v350_v34 = vmul.f32 0.03125, %v331_v31  ;;  %v365_v36 = vmul.f32 %v864_v28, %v864_v28 }
  0xaa   : > { %v351_v35 = vmul.f32 0.03125, %v334_v32  ;;  %v369_v37 = vmul.f32 %v866_v29, %v866_v29 }
  0xab   : > { %v874_v38 = vsub.f32 %v316_v8, %v350_v34  ;;  %v375_v40 = vsel %vm322_vm0, %v365_v36, 0.0 }
  0xac   : > { %v876_v39 = vsub.f32 %v317_v9, %v351_v35  ;;  %385 = vadd.xlane.f32.xlu0 %v384_v33  ;;  %376 = vadd.xlane.f32.xlu1 %v375_v40  ;;  %v343_v41 = vpop.xlane.xlu0 %342  ;;  %v387_v43 = vsel %vm322_vm0, %v369_v37, 0.0 }
  0xad   : > { %v346_v42 = vpop.xlane.xlu1 %345  ;;  %v354_v44 = vmul.f32 0.03125, %v343_v41  ;;  %v366_v46 = vmul.f32 %v874_v38, %v874_v38 }
  0xae   : > { %v355_v45 = vmul.f32 0.03125, %v346_v42  ;;  %v367_v47 = vmul.f32 %v876_v39, %v876_v39 }
  0xaf   : > { %v884_v48 = vsub.f32 %v320_v12, %v354_v44  ;;  %v378_v50 = vsel %vm322_vm0, %v366_v46, 0.0 }
  0xb0   : > { %v886_v49 = vsub.f32 %v321_v13, %v355_v45  ;;  %388 = vadd.xlane.f32.xlu1 %v387_v43  ;;  %379 = vadd.xlane.f32.xlu0 %v378_v50  ;;  %v381_v51 = vsel %vm322_vm0, %v367_v47, 0.0 }
  0xb1   : > { %v370_v52 = vmul.f32 %v884_v48, %v884_v48 }
  0xb2   : > { %v371_v53 = vmul.f32 %v886_v49, %v886_v49 }
  0xb3   : > { %v390_v54 = vsel %vm322_vm0, %v370_v52, 0.0 }
  0xb4   : > { %382 = vadd.xlane.f32.xlu1 %v381_v51  ;;  %391 = vadd.xlane.f32.xlu0 %v390_v54  ;;  %v393_v55 = vsel %vm322_vm0, %v371_v53, 0.0 }
  0xb8   : > { %394 = vadd.xlane.f32.xlu1 %v393_v55 }
 0x135   : > { %v374_v58 = vpop.xlane.xlu0 %373 }
 0x136   : > { %v396_v59 = vmul.f32 0.03125, %v374_v58 }
 0x138   : > { %v404_v60 = vadd.f32 1e-05, %v396_v59 }
 0x139   : > { %v377_v61 = vpop.xlane.xlu1 %376  ;;  %v386_v62 = vpop.xlane.xlu0 %385 }
 0x13a   : > { %752 = vrsqrt.f32 %v404_v60  ;;  %v397_v63 = vmul.f32 0.03125, %v377_v61  ;;  %v400_v0 = vmul.f32 0.03125, %v386_v62 }
 0x13c   : > { %v405_v1 = vadd.f32 1e-05, %v397_v63  ;;  %v408_v2 = vadd.f32 1e-05, %v400_v0 }
 0x13d   : > { %v389_v3 = vpop.xlane.xlu1 %388  ;;  %v380_v4 = vpop.xlane.xlu0 %379 }
 0x13e   : > { %754 = vrsqrt.f32 %v405_v1  ;;  %v401_v5 = vmul.f32 0.03125, %v389_v3  ;;  %v398_v6 = vmul.f32 0.03125, %v380_v4 }
 0x13f   : > { %756 = vrsqrt.f32 %v408_v2 }
 0x140   : > { %v409_v7 = vadd.f32 1e-05, %v401_v5  ;;  %v406_v8 = vadd.f32 1e-05, %v398_v6 }
 0x141   : > { %v383_v9 = vpop.xlane.xlu1 %382  ;;  %v392_v10 = vpop.xlane.xlu0 %391 }
 0x142   : > { %758 = vrsqrt.f32 %v409_v7  ;;  %v399_v11 = vmul.f32 0.03125, %v383_v9  ;;  %v402_v12 = vmul.f32 0.03125, %v392_v10 }
 0x143   : > { %760 = vrsqrt.f32 %v406_v8 }
 0x144   : > { %v753_v13 = vpop.eup %752  ;;  %v407_v14 = vadd.f32 1e-05, %v399_v11  ;;  %v410_v15 = vadd.f32 1e-05, %v402_v12 }
 0x145   : > { %v395_v16 = vpop.xlane.xlu1 %394  ;;  %v420_v17 = vmul.f32 %v753_v13, %v856_v20 }
 0x146   : > { %762 = vrsqrt.f32 %v407_v14  ;;  %v403_v18 = vmul.f32 0.03125, %v395_v16 }
 0x147   : > { %764 = vrsqrt.f32 %v410_v15  ;;  %v435_v26 = vmul.f32 %v693_v19, %v420_v17 }
 0x148   : > { %v755_v22 = vpop.eup %754  ;;  %v411_v23 = vadd.f32 1e-05, %v403_v18 }
 0x149   : > { %v757_v24 = vpop.eup %756  ;;  %v421_v25 = vmul.f32 %v755_v22, %v864_v28  ;;  %v450_v33 = vadd.f32 %v694_v27, %v435_v26 }
 0x14a   : > { %766 = vrsqrt.f32 %v411_v23  ;;  %v424_v20 = vmul.f32 %v757_v24, %v858_v21 }
 0x14b   : > { %v436_v30 = vmul.f32 %v693_v19, %v421_v25 }
 0x14c   : > { %v759_v31 = vpop.eup %758  ;;  %v439_v36 = vmul.f32 %v693_v19, %v424_v20 }
 0x14d   : > { %v761_v32 = vpop.eup %760  ;;  %v451_v34 = vadd.f32 %v694_v27, %v436_v30  ;;  %v425_v35 = vmul.f32 %v759_v31, %v866_v29 }
 0x14e   : > { %v422_v37 = vmul.f32 %v761_v32, %v874_v38  ;;  %v454_v44 = vadd.f32 %v694_v27, %v439_v36 }
 0x14f   : > { %v458_v40 = vpack.c.bf16 %v451_v34, %v450_v33  ;;  %v440_v28 = vmul.f32 %v693_v19, %v425_v35 }
 0x150   : > { %v763_v41 = vpop.eup %762  ;;  %v437_v45 = vmul.f32 %v693_v19, %v422_v37 }
 0x151   : > { %v765_v42 = vpop.eup %764  ;;  %v423_v43 = vmul.f32 %v763_v41, %v876_v39  ;;  %714 = vmatprep.mubr.msk.bf16.mxu0 %vm322_vm0, %v458_v40  ;;  %v455_v21 = vadd.f32 %v694_v27, %v440_v28 }
 0x152   : > { %v426_v46 = vmul.f32 %v765_v42, %v884_v48  ;;  %v452_v38 = vadd.f32 %v694_v27, %v437_v45  ;;  %v695_v48 = vld [vmem:[%s949_s4] ss:$0 sm:$0xff] }
 0x153   : > { %v460_v47 = vpack.c.bf16 %v455_v21, %v454_v44  ;;  %v438_v50 = vmul.f32 %v693_v19, %v423_v43 }
 0x154   : > { %v767_v29 = vpop.eup %766  ;;  %v441_v53 = vmul.f32 %v693_v19, %v426_v46 }
 0x155   : > { %v427_v51 = vmul.f32 %v767_v29, %v886_v49  ;;  %718 = vmatprep.mubr.msk.bf16.mxu1 %vm322_vm0, %v460_v47  ;;  %v453_v52 = vadd.f32 %v694_v27, %v438_v50 }
 0x156   : > { %v456_v55 = vadd.f32 %v694_v27, %v441_v53 }
 0x157   : > { %v459_v54 = vpack.c.bf16 %v453_v52, %v452_v38  ;;  %v442_v39 = vmul.f32 %v693_v19, %v427_v51 }
 0x159   : > { %715 = vmatmul.mubr.msk.bf16.vlgmr.msra.gmra.mrb[0].mxu0 %vm322_vm0, %v459_v54  ;;  %v457_v56 = vadd.f32 %v694_v27, %v442_v39 }
 0x15b   : > { %v461_v57 = vpack.c.bf16 %v457_v56, %v456_v55 }
 0x15d   : > { %719 = vmatmul.mubr.msk.bf16.vlgmr.msra.gmra.mrb[0].mxu1 %vm322_vm0, %v461_v57 }
 0x22c   : > { %v716_v49 = vpop.f32.mrb[0].mxu0 }
 0x22d   : > { %v540_v58 = vadd.f32 %v716_v49, %v695_v48  ;;  %v531_v59 = vpop.f32.mrb[1].mxu0 }
 0x22e   : > { %v532_v60 = vadd.f32 %v695_v48, %v531_v59  ;;  %v717_v61 = vpop.f32.mrb[2].mxu0 }
 0x22f   : > { %565 = vst.msk [vmem:[%s311_s14 + $0x10] sm:$0xff] %vm562_vm1, %v540_v58  ;;  %v543_v62 = vadd.f32 %v717_v61, %v695_v48  ;;  %v534_v63 = vpop.f32.mrb[3].mxu0 }
 0x230   : > { %563 = vst.msk [vmem:[%s311_s14] sm:$0xff] %vm562_vm1, %v532_v60  ;;  %v535_v0 = vadd.f32 %v695_v48, %v534_v63  ;;  %v720_v1 = vpop.f32.mrb[0].mxu1 }
 0x231   : > { %566 = vst.msk [vmem:[%s311_s14 + $0x18] sm:$0xff] %vm562_vm1, %v543_v62  ;;  %v556_v2 = vadd.f32 %v720_v1, %v695_v48  ;;  %v547_v3 = vpop.f32.mrb[1].mxu1 }
 0x232   : > { %564 = vst.msk [vmem:[%s311_s14 + $0x8] sm:$0xff] %vm562_vm1, %v535_v0  ;;  %v548_v4 = vadd.f32 %v695_v48, %v547_v3  ;;  %v721_v5 = vpop.f32.mrb[2].mxu1 }
 0x233   : > { %569 = vst.msk [vmem:[%s311_s14 + $0x30] sm:$0xff] %vm562_vm1, %v556_v2  ;;  %v559_v6 = vadd.f32 %v721_v5, %v695_v48  ;;  %v550_v7 = vpop.f32.mrb[3].mxu1 }
 0x234   : > { %567 = vst.msk [vmem:[%s311_s14 + $0x20] sm:$0xff] %vm562_vm1, %v548_v4  ;;  %v551_v8 = vadd.f32 %v695_v48, %v550_v7 }
 0x235   : > { %570 = vst.msk [vmem:[%s311_s14 + $0x38] sm:$0xff] %vm562_vm1, %v559_v6 }
 0x236   : > { %568 = vst.msk [vmem:[%s311_s14 + $0x28] sm:$0xff] %vm562_vm1, %v551_v8 }
 0x237 PF: > { %s15_s20 = sadd.s32 1, %s790_s20   ;;  %s951_s18 = smov %s786_s19 }
 0x238   : > { %p12_p5 = scmp.ge.s32.totalorder %s15_s20, 4   ;;  %s952_s19 = smov %s954_s21 }
 0x23a   :  { %14 = sbr.rel (!%p12_p5) target bundleno = 2 (0x2), region = 76 }

// kernel: _lambda_.26
= control target key start
LH: loop header
LB: loop body
LE: loop exit
PB: predicated region body
PF: predicated region fallthrough
CT: control target
= control target key end

     0   :  { %s604_s12 = smov 0   ;;  %s606_s13 = smov 0   ;;  %s658_s0 = inlined_call_operand.vmem [shape: f32[128,32], index: 0, kind: input, shape index: {}]   ;;  %s659_s1 = inlined_call_operand.vmem [shape: bf16[32,32], index: 1, kind: input, shape index: {}]   ;;  %s660_s2 = inlined_call_operand.vmem [shape: f32[1,32], index: 2, kind: input, shape index: {}]   ;;  %s661_s3 = inlined_call_operand.vmem [shape: f32[128,32], index: 3, kind: output, shape index: {}]  }
   0x1   :  { %s608_s14 = smov 0  }
   0x2 LB: > { %s32_s15 = sadd.s32 1, %s578_s13  ;;  %p498_p0 = scmp.ge.s32.totalorder %s582_s14, 1  ;;  %s582_s14 = sphi %s608_s14, %s13_s14   ;;  %s578_s13 = sphi %s606_s13, %s663_s13   ;;  %s574_s12 = sphi %s604_s12, %s662_s12  }
   0x3   : > { %p34_p1 = scmp.ge.s32.totalorder %s32_s15, 2  ;;  %p188_p2 = scmp.lt.s32.totalorder %s582_s14, 3 }
   0x5   : > { %s665_s15 = smov (%p34_p1, %s32_s15), 0  ;;  %p189_p3 = pnand %p498_p0, %p188_p2 }
   0x6   : > { %v558_v0 = vld [vmem:[%s659_s1] sm:$0xff] (!%p189_p3)   ;;  %s499_s18 = sshll.u32 (!%p189_p3), %s574_s12, 3  ;;  %v559_v1 = vld [vmem:[%s659_s1 + $0x8] sm:$0xff] (!%p189_p3)   ;;  %vm295_vm0 = vcmask (!%p189_p3), 261120  }
   0x7   : > { %192 = sbr.rel (%p189_p3) target bundleno = 240 (0xf0), region = 32  ;;  %p230_p4 = scmp.lt.s32.totalorder (!%p189_p3), %s499_s18, 15  ;;  %518 = vmatprep.subr.bf16.mxu0 (!%p189_p3), %v558_v0  ;;  %530 = vmatprep.subr.bf16.mxu1 (!%p189_p3), %v558_v0  ;;  %v503_v14 = vld [vmem:[%s660_s2] ss:$0 sm:$0xff] (!%p189_p3) }
   0x8   : > { %519 = vmatpush3.bf16.msra.mxu0 (!%p189_p3), %v558_v0  ;;  %532 = vmatpush3.bf16.msra.mxu1 (!%p189_p3), %v558_v0 }
   0x9   : > { %520 = vmatprep.subr.bf16.mxu0 (!%p189_p3), %v559_v1  ;;  %531 = vmatprep.subr.bf16.mxu1 (!%p189_p3), %v559_v1 }
   0xc   : > { %521 = vmatpush3.bf16.msra.mxu0 (!%p189_p3), %v559_v1  ;;  %533 = vmatpush3.bf16.msra.mxu1 (!%p189_p3), %v559_v1 }
   0xe   : > { %s667_s18 = smov (!%p230_p4, %s499_s18), 15 }
   0xf   : > { %s500_s21 = sshll.u32 %s667_s18, 3 }
  0x10   : > { %s236_s24 = scalar_lea.vmem %s658_s0, %s500_s21  ;;  %s257_s29 = scalar_lea.vmem %s661_s3, %s500_s21 }
  0x11   : > { %v260_v2 = vld [vmem:[%s236_s24] sm:$0xff]  ;;  %v261_v3 = vld [vmem:[%s236_s24 + $0x8] sm:$0xff]  ;;  %v262_v7 = vld [vmem:[%s236_s24 + $0x10] sm:$0xff] }
  0x12   : > { %v264_v4 = vld [vmem:[%s236_s24 + $0x20] sm:$0xff]  ;;  %v268_v5 = vpack.c.bf16 %v261_v3, %v260_v2  ;;  %v265_v6 = vld [vmem:[%s236_s24 + $0x28] sm:$0xff]  ;;  %v263_v8 = vld [vmem:[%s236_s24 + $0x18] sm:$0xff] }
  0x13   : > { %v270_v9 = vpack.c.bf16 %v265_v6, %v264_v4  ;;  %v269_v10 = vpack.c.bf16 %v263_v8, %v262_v7  ;;  %v266_v11 = vld [vmem:[%s236_s24 + $0x30] sm:$0xff]  ;;  %v267_v12 = vld [vmem:[%s236_s24 + $0x38] sm:$0xff] }
  0x14   : > { %522 = vmatprep.mubr.msk.bf16.mxu0 %vm295_vm0, %v268_v5  ;;  %v271_v13 = vpack.c.bf16 %v267_v12, %v266_v11 }
  0x15   : > { %526 = vmatprep.mubr.msk.bf16.mxu1 %vm295_vm0, %v270_v9  ;;  %523 = vmatmul.mubr.msk.bf16.vlgmr.msra.gmra.mrb[0].mxu0 %vm295_vm0, %v269_v10 }
  0x16   : > { %527 = vmatmul.mubr.msk.bf16.vlgmr.msra.gmra.mrb[0].mxu1 %vm295_vm0, %v271_v13 }
  0xe8   : > { %v524_v15 = vpop.f32.mrb[0].mxu0 }
  0xe9   : > { %v351_v16 = vadd.f32 %v524_v15, %v503_v14  ;;  %v528_v17 = vpop.f32.mrb[0].mxu1  ;;  %v342_v18 = vpop.f32.mrb[1].mxu0 }
  0xea   : > { %v367_v19 = vadd.f32 %v528_v17, %v503_v14  ;;  %v343_v20 = vadd.f32 %v503_v14, %v342_v18  ;;  %v358_v21 = vpop.f32.mrb[1].mxu1  ;;  %v525_v22 = vpop.f32.mrb[2].mxu0 }
  0xeb   : > { %375 = vst.msk [vmem:[%s257_s29 + $0x10] sm:$0xff] %vm295_vm0, %v351_v16  ;;  %v359_v23 = vadd.f32 %v503_v14, %v358_v21  ;;  %v354_v24 = vadd.f32 %v525_v22, %v503_v14  ;;  %v529_v25 = vpop.f32.mrb[2].mxu1  ;;  %v345_v26 = vpop.f32.mrb[3].mxu0 }
  0xec   : > { %379 = vst.msk [vmem:[%s257_s29 + $0x30] sm:$0xff] %vm295_vm0, %v367_v19  ;;  %373 = vst.msk [vmem:[%s257_s29] sm:$0xff] %vm295_vm0, %v343_v20  ;;  %v370_v27 = vadd.f32 %v529_v25, %v503_v14  ;;  %v346_v28 = vadd.f32 %v503_v14, %v345_v26  ;;  %v361_v29 = vpop.f32.mrb[3].mxu1 }
  0xed   : > { %377 = vst.msk [vmem:[%s257_s29 + $0x20] sm:$0xff] %vm295_vm0, %v359_v23  ;;  %376 = vst.msk [vmem:[%s257_s29 + $0x18] sm:$0xff] %vm295_vm0, %v354_v24  ;;  %v362_v30 = vadd.f32 %v503_v14, %v361_v29 }
  0xee   : > { %380 = vst.msk [vmem:[%s257_s29 + $0x38] sm:$0xff] %vm295_vm0, %v370_v27  ;;  %374 = vst.msk [vmem:[%s257_s29 + $0x8] sm:$0xff] %vm295_vm0, %v346_v28 }
  0xef   : > { %378 = vst.msk [vmem:[%s257_s29 + $0x28] sm:$0xff] %vm295_vm0, %v362_v30 }
  0xf0 PF: > { %s13_s14 = sadd.s32 1, %s582_s14   ;;  %s662_s12 = smov %s578_s13 }
  0xf1   : > { %p10_p5 = scmp.ge.s32.totalorder %s13_s14, 4   ;;  %s663_s13 = smov %s665_s15 }
  0xf3   :  { %12 = sbr.rel (!%p10_p5) target bundleno = 2 (0x2), region = 68 }

// kernel: _lambda_.25
= control target key start
LH: loop header
LB: loop body
LE: loop exit
PB: predicated region body
PF: predicated region fallthrough
CT: control target
= control target key end

     0   :  { %s1813_s9 = smov 0   ;;  %s1815_s10 = smov 0   ;;  %s2329_s0 = inlined_call_operand.vmem [shape: f32[3,16,16,16], index: 0, kind: input, shape index: {}]   ;;  %s2330_s1 = inlined_call_operand.vmem [shape: f32[8,16,16], index: 1, kind: input, shape index: {}]   ;;  %s2331_s2 = inlined_call_operand.vmem [shape: f32[16,16,16], index: 2, kind: output, shape index: {}]  }
   0x1   :  { %s1817_s11 = smov 0  }
   0x2 LB: > { %s1488_s12 = sadd.s32 4294967295, %s1794_s11   ;;  %s1830_s13 = sadd.s32 1, %s1794_s11   ;;  %s1794_s11 = sphi %s1817_s11, %s2334_s11   ;;  %s1790_s10 = sphi %s1815_s10, %s2333_s10   ;;  %s1786_s9 = sphi %s1813_s9, %s2332_s9  }
   0x3   : > { %s16_s14 = ssub.s32 %s1794_s11, %s1830_s13  ;;  %s19_s15 = sadd.s32 1, %s1790_s10 }
   0x4   : > { %p17_p0 = scmp.eq.s32.totalorder %s16_s14, 0  ;;  %p26_p1 = scmp.ne.s32.totalorder %s1790_s10, %s1786_s9 }
   0x5   : > { %p27_p2 = scmp.eq.s32.totalorder %s1794_s11, 0  ;;  %p1491_p4 = scmp.ge.s32.totalorder %s1794_s11, 2 }
   0x6   : > { %s1839_s16 = scalar_select %p17_p0, %s1790_s10, %s19_s15  }
   0x7   : > { %p28_p3 = por %p27_p2, %p26_p1  ;;  %102 = sbr.rel (%p1491_p4) target bundleno = 43 (0x2b), region = 20 }
   0xe   : > { %105 = sbr.rel (!%p28_p3) target bundleno = 43 (0x2b), region = 24  ;;  %s107_s17 = sand.u32 (%p28_p3), 1, %s1790_s10  }
   0xf   : > { %s1550_s18 = sshll.u32 (%p28_p3), %s1794_s11, 7  ;;  %s1680_s19 = smul.u32 (%p28_p3), 384, %s107_s17 }
  0x10   : > { %s1847_s22 = scalar_lea.vmem (%p28_p3), %s2329_s0, %s1550_s18 }
  0x11   : > { %v235_v0 = vld [vmem:[%s1847_s22] sm:$0xff] (%p28_p3)  ;;  %v237_v1 = vld [vmem:[%s1847_s22 + $0x8] sm:$0xff] (%p28_p3)  ;;  %v239_v2 = vld [vmem:[%s1847_s22 + $0x10] sm:$0xff] (%p28_p3)  ;;  %s1855_s23 = scalar_lea.vmem (%p28_p3), [#allocation2], %s1680_s19 }
  0x12   : > { %v241_v3 = vld [vmem:[%s1847_s22 + $0x18] sm:$0xff] (%p28_p3)  ;;  %v243_v4 = vld [vmem:[%s1847_s22 + $0x20] sm:$0xff] (%p28_p3)  ;;  %v245_v5 = vld [vmem:[%s1847_s22 + $0x28] sm:$0xff] (%p28_p3)  ;;  %236 = vst [vmem:[%s1855_s23] sm:$0xff] (%p28_p3), %v235_v0 }
  0x13   : > { %238 = vst [vmem:[%s1855_s23 + $0x8] sm:$0xff] (%p28_p3), %v237_v1  ;;  %240 = vst [vmem:[%s1855_s23 + $0x10] sm:$0xff] (%p28_p3), %v239_v2  ;;  %v247_v6 = vld [vmem:[%s1847_s22 + $0x30] sm:$0xff] (%p28_p3)  ;;  %v249_v7 = vld [vmem:[%s1847_s22 + $0x38] sm:$0xff] (%p28_p3) }
  0x14   : > { %242 = vst [vmem:[%s1855_s23 + $0x18] sm:$0xff] (%p28_p3), %v241_v3  ;;  %244 = vst [vmem:[%s1855_s23 + $0x20] sm:$0xff] (%p28_p3), %v243_v4  ;;  %v251_v8 = vld [vmem:[%s1847_s22 + $0x40] sm:$0xff] (%p28_p3)  ;;  %v253_v9 = vld [vmem:[%s1847_s22 + $0x48] sm:$0xff] (%p28_p3) }
  0x15   : > { %246 = vst [vmem:[%s1855_s23 + $0x28] sm:$0xff] %v245_v5  ;;  %248 = vst [vmem:[%s1855_s23 + $0x30] sm:$0xff] %v247_v6  ;;  %v255_v10 = vld [vmem:[%s1847_s22 + $0x50] sm:$0xff]  ;;  %v257_v11 = vld [vmem:[%s1847_s22 + $0x58] sm:$0xff] }
  0x16   : > { %250 = vst [vmem:[%s1855_s23 + $0x38] sm:$0xff] %v249_v7  ;;  %252 = vst [vmem:[%s1855_s23 + $0x40] sm:$0xff] %v251_v8  ;;  %v259_v12 = vld [vmem:[%s1847_s22 + $0x60] sm:$0xff]  ;;  %v261_v13 = vld [vmem:[%s1847_s22 + $0x68] sm:$0xff] }
  0x17   : > { %254 = vst [vmem:[%s1855_s23 + $0x48] sm:$0xff] %v253_v9  ;;  %256 = vst [vmem:[%s1855_s23 + $0x50] sm:$0xff] %v255_v10  ;;  %v263_v14 = vld [vmem:[%s1847_s22 + $0x70] sm:$0xff]  ;;  %v265_v15 = vld [vmem:[%s1847_s22 + $0x78] sm:$0xff] }
  0x18   : > { %258 = vst [vmem:[%s1855_s23 + $0x58] sm:$0xff] %v257_v11  ;;  %260 = vst [vmem:[%s1855_s23 + $0x60] sm:$0xff] %v259_v12  ;;  %v267_v16 = vld [vmem:[%s1847_s22 + $0x100] sm:$0xff]  ;;  %v269_v17 = vld [vmem:[%s1847_s22 + $0x108] sm:$0xff] }
  0x19   : > { %262 = vst [vmem:[%s1855_s23 + $0x68] sm:$0xff] %v261_v13  ;;  %264 = vst [vmem:[%s1855_s23 + $0x70] sm:$0xff] %v263_v14  ;;  %v271_v18 = vld [vmem:[%s1847_s22 + $0x110] sm:$0xff]  ;;  %v273_v19 = vld [vmem:[%s1847_s22 + $0x118] sm:$0xff] }
  0x1a   : > { %266 = vst [vmem:[%s1855_s23 + $0x78] sm:$0xff] %v265_v15  ;;  %268 = vst [vmem:[%s1855_s23 + $0x80] sm:$0xff] %v267_v16  ;;  %v275_v20 = vld [vmem:[%s1847_s22 + $0x120] sm:$0xff]  ;;  %v277_v21 = vld [vmem:[%s1847_s22 + $0x128] sm:$0xff] }
  0x1b   : > { %270 = vst [vmem:[%s1855_s23 + $0x88] sm:$0xff] %v269_v17  ;;  %272 = vst [vmem:[%s1855_s23 + $0x90] sm:$0xff] %v271_v18  ;;  %v279_v22 = vld [vmem:[%s1847_s22 + $0x130] sm:$0xff]  ;;  %v281_v23 = vld [vmem:[%s1847_s22 + $0x138] sm:$0xff] }
  0x1c   : > { %274 = vst [vmem:[%s1855_s23 + $0x98] sm:$0xff] %v273_v19  ;;  %276 = vst [vmem:[%s1855_s23 + $0xa0] sm:$0xff] %v275_v20  ;;  %v283_v24 = vld [vmem:[%s1847_s22 + $0x140] sm:$0xff]  ;;  %v285_v25 = vld [vmem:[%s1847_s22 + $0x148] sm:$0xff] }
  0x1d   : > { %278 = vst [vmem:[%s1855_s23 + $0xa8] sm:$0xff] %v277_v21  ;;  %280 = vst [vmem:[%s1855_s23 + $0xb0] sm:$0xff] %v279_v22  ;;  %v287_v26 = vld [vmem:[%s1847_s22 + $0x150] sm:$0xff]  ;;  %v289_v27 = vld [vmem:[%s1847_s22 + $0x158] sm:$0xff] }
  0x1e   : > { %282 = vst [vmem:[%s1855_s23 + $0xb8] sm:$0xff] %v281_v23  ;;  %284 = vst [vmem:[%s1855_s23 + $0xc0] sm:$0xff] %v283_v24  ;;  %v291_v28 = vld [vmem:[%s1847_s22 + $0x160] sm:$0xff]  ;;  %v293_v29 = vld [vmem:[%s1847_s22 + $0x168] sm:$0xff] }
  0x1f   : > { %286 = vst [vmem:[%s1855_s23 + $0xc8] sm:$0xff] %v285_v25  ;;  %288 = vst [vmem:[%s1855_s23 + $0xd0] sm:$0xff] %v287_v26  ;;  %v295_v30 = vld [vmem:[%s1847_s22 + $0x170] sm:$0xff]  ;;  %v297_v31 = vld [vmem:[%s1847_s22 + $0x178] sm:$0xff] }
  0x20   : > { %290 = vst [vmem:[%s1855_s23 + $0xd8] sm:$0xff] %v289_v27  ;;  %292 = vst [vmem:[%s1855_s23 + $0xe0] sm:$0xff] %v291_v28  ;;  %v299_v32 = vld [vmem:[%s1847_s22 + $0x200] sm:$0xff]  ;;  %v301_v33 = vld [vmem:[%s1847_s22 + $0x208] sm:$0xff] }
  0x21   : > { %294 = vst [vmem:[%s1855_s23 + $0xe8] sm:$0xff] %v293_v29  ;;  %296 = vst [vmem:[%s1855_s23 + $0xf0] sm:$0xff] %v295_v30  ;;  %v303_v34 = vld [vmem:[%s1847_s22 + $0x210] sm:$0xff]  ;;  %v305_v35 = vld [vmem:[%s1847_s22 + $0x218] sm:$0xff] }
  0x22   : > { %298 = vst [vmem:[%s1855_s23 + $0xf8] sm:$0xff] %v297_v31  ;;  %300 = vst [vmem:[%s1855_s23 + $0x100] sm:$0xff] %v299_v32  ;;  %v307_v36 = vld [vmem:[%s1847_s22 + $0x220] sm:$0xff]  ;;  %v309_v37 = vld [vmem:[%s1847_s22 + $0x228] sm:$0xff] }
  0x23   : > { %302 = vst [vmem:[%s1855_s23 + $0x108] sm:$0xff] %v301_v33  ;;  %304 = vst [vmem:[%s1855_s23 + $0x110] sm:$0xff] %v303_v34  ;;  %v311_v38 = vld [vmem:[%s1847_s22 + $0x230] sm:$0xff]  ;;  %v313_v39 = vld [vmem:[%s1847_s22 + $0x238] sm:$0xff] }
  0x24   : > { %306 = vst [vmem:[%s1855_s23 + $0x118] sm:$0xff] %v305_v35  ;;  %308 = vst [vmem:[%s1855_s23 + $0x120] sm:$0xff] %v307_v36  ;;  %v315_v40 = vld [vmem:[%s1847_s22 + $0x240] sm:$0xff]  ;;  %v317_v41 = vld [vmem:[%s1847_s22 + $0x248] sm:$0xff] }
  0x25   : > { %310 = vst [vmem:[%s1855_s23 + $0x128] sm:$0xff] %v309_v37  ;;  %312 = vst [vmem:[%s1855_s23 + $0x130] sm:$0xff] %v311_v38  ;;  %v319_v42 = vld [vmem:[%s1847_s22 + $0x250] sm:$0xff]  ;;  %v321_v43 = vld [vmem:[%s1847_s22 + $0x258] sm:$0xff] }
  0x26   : > { %314 = vst [vmem:[%s1855_s23 + $0x138] sm:$0xff] %v313_v39  ;;  %316 = vst [vmem:[%s1855_s23 + $0x140] sm:$0xff] %v315_v40  ;;  %v323_v44 = vld [vmem:[%s1847_s22 + $0x260] sm:$0xff]  ;;  %v325_v45 = vld [vmem:[%s1847_s22 + $0x268] sm:$0xff] }
  0x27   : > { %318 = vst [vmem:[%s1855_s23 + $0x148] sm:$0xff] %v317_v41  ;;  %320 = vst [vmem:[%s1855_s23 + $0x150] sm:$0xff] %v319_v42  ;;  %v327_v46 = vld [vmem:[%s1847_s22 + $0x270] sm:$0xff]  ;;  %v329_v47 = vld [vmem:[%s1847_s22 + $0x278] sm:$0xff] }
  0x28   : > { %322 = vst [vmem:[%s1855_s23 + $0x158] sm:$0xff] %v321_v43  ;;  %324 = vst [vmem:[%s1855_s23 + $0x160] sm:$0xff] %v323_v44 }
  0x29   : > { %326 = vst [vmem:[%s1855_s23 + $0x168] sm:$0xff] %v325_v45  ;;  %328 = vst [vmem:[%s1855_s23 + $0x170] sm:$0xff] %v327_v46 }
  0x2a   : > { %330 = vst [vmem:[%s1855_s23 + $0x178] sm:$0xff] %v329_v47 }
  0x2b PF: > { %p1495_p5 = scmp.ge.s32.totalorder %s1794_s11, 1  ;;  %p335_p6 = scmp.lt.s32.totalorder %s1794_s11, 3 }
  0x2d   : > { %p336_p7 = pnand %p1495_p5, %p335_p6 }
  0x2e   : > { %s342_s24 = sand.u32 (!%p336_p7), 1, %s1786_s9   ;;  %v1796_v48 = vmov (!%p336_p7), 0.0   ;;  %vm1797_vm0 = vmmov (!%p336_p7), 0   ;;  %vm447_vm1 = vcmask (!%p336_p7), 130048   ;;  %v840_v42 = vld [vmem:[%s2330_s1] sm:$0xff] (!%p336_p7)  ;;  %v842_v46 = vld [vmem:[%s2330_s1 + $0x10] sm:$0xff] (!%p336_p7) }
  0x2f   : > { %339 = sbr.rel (%p336_p7) target bundleno = 841 (0x349), region = 62  ;;  %1584 = vmatprep.subr.bf16.mxu0 (!%p336_p7), %v1796_v48  ;;  %1590 = vmatprep.subr.bf16.mxu1 (!%p336_p7), %v1796_v48 }
  0x30   : > { %s1681_s25 = smul.u32 (!%p336_p7), 384, %s342_s24  ;;  %1586 = vmatprep.mubr.msk.bf16.mxu0 (!%p336_p7), %vm1797_vm0, %v1796_v48  ;;  %1592 = vmatprep.mubr.msk.bf16.mxu1 (!%p336_p7), %vm1797_vm0, %v1796_v48 }
  0x32   : > { %s1956_s26 = scalar_lea.vmem (!%p336_p7), [#allocation2], %s1681_s25 }
  0x33   : > { %v1499_v49 = vld [vmem:[%s1956_s26 + $0x80] sm:$0xff] (!%p336_p7)  ;;  %v1500_v50 = vld [vmem:[%s1956_s26 + $0x88] sm:$0xff] (!%p336_p7)  ;;  %v1501_v51 = vld [vmem:[%s1956_s26 + $0x90] sm:$0xff] (!%p336_p7) }
  0x34   : > { %v414_v52 = vpack.c.bf16 (!%p336_p7), %v1500_v50, %v1499_v49  ;;  %v1502_v53 = vld [vmem:[%s1956_s26 + $0x98] sm:$0xff] (!%p336_p7)  ;;  %v1503_v55 = vld [vmem:[%s1956_s26 + $0xa0] sm:$0xff] (!%p336_p7)  ;;  %v1504_v57 = vld [vmem:[%s1956_s26 + $0xa8] sm:$0xff] (!%p336_p7) }
  0x35   : > { %v415_v54 = vpack.c.bf16 (!%p336_p7), %v1502_v53, %v1501_v51  ;;  %v1505_v58 = vld [vmem:[%s1956_s26 + $0xb0] sm:$0xff] (!%p336_p7)  ;;  %v1506_v59 = vld [vmem:[%s1956_s26 + $0xb8] sm:$0xff] (!%p336_p7)  ;;  %v373_v61 = vld [vmem:[%s1956_s26] sm:$0xff] (!%p336_p7)  ;;  %v416_v1 = vpack.c.bf16 (!%p336_p7), %v1504_v57, %v1503_v55 }
  0x36   : > { %v452_v56 = vsel %vm447_vm1, %v414_v52, 0  ;;  %v374_v62 = vld [vmem:[%s1956_s26 + $0x8] sm:$0xff]  ;;  %v375_v63 = vld [vmem:[%s1956_s26 + $0x10] sm:$0xff]  ;;  %v376_v0 = vld [vmem:[%s1956_s26 + $0x18] sm:$0xff]  ;;  %v417_v2 = vpack.c.bf16 %v1506_v59, %v1505_v58 }
  0x37   : > { %1585 = vmatpush3.bf16.xpose.msra.mxu0 %v452_v56  ;;  %v499_v60 = vsel %vm447_vm1, %v415_v54, 0  ;;  %v389_v3 = vpack.c.bf16 %v374_v62, %v373_v61  ;;  %v390_v4 = vpack.c.bf16 %v376_v0, %v375_v63  ;;  %v546_v5 = vsel %vm447_vm1, %v416_v1, 0  ;;  %v1507_v7 = vld [vmem:[%s1956_s26 + $0xc0] sm:$0xff]  ;;  %v1508_v8 = vld [vmem:[%s1956_s26 + $0xc8] sm:$0xff]  ;;  %v1509_v9 = vld [vmem:[%s1956_s26 + $0xd0] sm:$0xff] }
  0x38   : > { %1591 = vmatpush3.bf16.xpose.msra.mxu1 %v499_v60  ;;  %1596 = vmatprep.subr.bf16.mxu0 %v1796_v48  ;;  %v593_v6 = vsel %vm447_vm1, %v417_v2, 0  ;;  %v1510_v10 = vld [vmem:[%s1956_s26 + $0xd8] sm:$0xff]  ;;  %v377_v11 = vld [vmem:[%s1956_s26 + $0x20] sm:$0xff]  ;;  %v378_v12 = vld [vmem:[%s1956_s26 + $0x28] sm:$0xff]  ;;  %v418_v13 = vpack.c.bf16 %v1508_v8, %v1507_v7 }
  0x39   : > { %1602 = vmatprep.subr.bf16.mxu1 %v1796_v48  ;;  %v379_v14 = vld [vmem:[%s1956_s26 + $0x30] sm:$0xff]  ;;  %v380_v15 = vld [vmem:[%s1956_s26 + $0x38] sm:$0xff]  ;;  %v419_v16 = vpack.c.bf16 %v1510_v10, %v1509_v9  ;;  %v391_v17 = vpack.c.bf16 %v378_v12, %v377_v11  ;;  %v1511_v21 = vld [vmem:[%s1956_s26 + $0xe0] sm:$0xff] }
  0x3a   : > { %v392_v18 = vpack.c.bf16 %v380_v15, %v379_v14  ;;  %v640_v19 = vsel %vm447_vm1, %v418_v13, 0  ;;  %v1512_v22 = vld [vmem:[%s1956_s26 + $0xe8] sm:$0xff]  ;;  %v1513_v23 = vld [vmem:[%s1956_s26 + $0xf0] sm:$0xff]  ;;  %v1514_v24 = vld [vmem:[%s1956_s26 + $0xf8] sm:$0xff] }
  0x3b   : > { %v687_v20 = vsel %vm447_vm1, %v419_v16, 0  ;;  %v381_v25 = vld [vmem:[%s1956_s26 + $0x40] sm:$0xff]  ;;  %v382_v26 = vld [vmem:[%s1956_s26 + $0x48] sm:$0xff]  ;;  %v420_v27 = vpack.c.bf16 %v1512_v22, %v1511_v21  ;;  %v383_v28 = vld [vmem:[%s1956_s26 + $0x50] sm:$0xff]  ;;  %v421_v30 = vpack.c.bf16 %v1514_v24, %v1513_v23 }
  0x3c   : > { %v384_v29 = vld [vmem:[%s1956_s26 + $0x58] sm:$0xff]  ;;  %v393_v31 = vpack.c.bf16 %v382_v26, %v381_v25  ;;  %v385_v35 = vld [vmem:[%s1956_s26 + $0x60] sm:$0xff]  ;;  %v386_v36 = vld [vmem:[%s1956_s26 + $0x68] sm:$0xff] }
  0x3d   : > { %v394_v32 = vpack.c.bf16 %v384_v29, %v383_v28  ;;  %v734_v33 = vsel %vm447_vm1, %v420_v27, 0  ;;  %v781_v34 = vsel %vm447_vm1, %v421_v30, 0  ;;  %v387_v37 = vld [vmem:[%s1956_s26 + $0x70] sm:$0xff]  ;;  %v388_v38 = vld [vmem:[%s1956_s26 + $0x78] sm:$0xff]  ;;  %v395_v39 = vpack.c.bf16 %v386_v36, %v385_v35  ;;  %v841_v51 = vld [vmem:[%s2330_s1 + $0x8] sm:$0xff] }
  0x3e   : > { %1587 = vmatmul.mubr.msk.bf16.vlgmr.msra.gmra.mrb[0].mxu0 %vm447_vm1, %v389_v3  ;;  %v396_v40 = vpack.c.bf16 %v388_v38, %v387_v37  ;;  %v843_v56 = vld [vmem:[%s2330_s1 + $0x18] sm:$0xff]  ;;  %v844_v2 = vld [vmem:[%s2330_s1 + $0x20] sm:$0xff]  ;;  %v846_v7 = vld [vmem:[%s2330_s1 + $0x30] sm:$0xff] }
  0x3f   : > { %1593 = vmatmul.mubr.msk.bf16.vlgmr.msra.gmra.mrb[0].mxu1 %vm447_vm1, %v390_v4  ;;  %1597 = vmatpush3.bf16.xpose.msra.mxu0 %v546_v5  ;;  %v845_v11 = vld [vmem:[%s2330_s1 + $0x28] sm:$0xff]  ;;  %v847_v16 = vld [vmem:[%s2330_s1 + $0x38] sm:$0xff]  ;;  %v848_v26 = vld [vmem:[%s2330_s1 + $0x40] sm:$0xff] }
  0x40   : > { %1603 = vmatpush3.bf16.xpose.msra.mxu1 %v593_v6  ;;  %1598 = vmatprep.mubr.msk.bf16.mxu0 %vm1797_vm0, %v1796_v48  ;;  %v849_v35 = vld [vmem:[%s2330_s1 + $0x48] sm:$0xff] }
  0x41   : > { %1608 = vmatprep.subr.bf16.mxu0 %v1796_v48  ;;  %1604 = vmatprep.mubr.msk.bf16.mxu1 %vm1797_vm0, %v1796_v48 }
  0x42   : > { %1614 = vmatprep.subr.bf16.mxu1 %v1796_v48 }
  0x46   : > { %1599 = vmatmul.mubr.msk.bf16.vlgmr.msra.gmra.mrb[4].mxu0 %vm447_vm1, %v391_v17 }
  0x47   : > { %1609 = vmatpush3.bf16.xpose.msra.mxu0 %v640_v19  ;;  %1605 = vmatmul.mubr.msk.bf16.vlgmr.msra.gmra.mrb[4].mxu1 %vm447_vm1, %v392_v18 }
  0x48   : > { %1615 = vmatpush3.bf16.xpose.msra.mxu1 %v687_v20  ;;  %1610 = vmatprep.mubr.msk.bf16.mxu0 %vm1797_vm0, %v1796_v48 }
  0x49   : > { %1620 = vmatprep.subr.bf16.mxu0 %v1796_v48  ;;  %1616 = vmatprep.mubr.msk.bf16.mxu1 %vm1797_vm0, %v1796_v48 }
  0x4a   : > { %1626 = vmatprep.subr.bf16.mxu1 %v1796_v48 }
  0x4e   : > { %1611 = vmatmul.mubr.msk.bf16.vlgmr.msra.gmra.mrb[8].mxu0 %vm447_vm1, %v393_v31  ;;  %v850_v31 = vld [vmem:[%s2330_s1 + $0x50] sm:$0xff] }
  0x4f   : > { %1621 = vmatpush3.bf16.xpose.msra.mxu0 %v734_v33  ;;  %1617 = vmatmul.mubr.msk.bf16.vlgmr.msra.gmra.mrb[8].mxu1 %vm447_vm1, %v394_v32 }
  0x50   : > { %1627 = vmatpush3.bf16.xpose.msra.mxu1 %v781_v34  ;;  %1622 = vmatprep.mubr.msk.bf16.mxu0 %vm1797_vm0, %v1796_v48 }
  0x51   : > { %1628 = vmatprep.mubr.msk.bf16.mxu1 %vm1797_vm0, %v1796_v48  ;;  %1632 = vmatprep.subr.bf16.mxu0 %v1796_v48 }
  0x52   : > { %1638 = vmatprep.subr.bf16.mxu1 %v1796_v48 }
  0x56   : > { %1623 = vmatmul.mubr.msk.bf16.vlgmr.msra.gmra.mrb[12].mxu0 %vm447_vm1, %v395_v39 }
  0x57   : > { %1629 = vmatmul.mubr.msk.bf16.vlgmr.msra.gmra.mrb[12].mxu1 %vm447_vm1, %v396_v40  ;;  %1634 = vmatprep.mubr.msk.bf16.mxu0 %vm1797_vm0, %v1796_v48  ;;  %v851_v40 = vld [vmem:[%s2330_s1 + $0x58] sm:$0xff] }
  0x58   : > { %1640 = vmatprep.mubr.msk.bf16.mxu1 %vm1797_vm0, %v1796_v48 }
 0x111   : > { %v488_v41 = vpop.f32.mrb[0].mxu0 }
 0x112   : > { %v824_v43 = vmul.f32 0.25, %v488_v41  ;;  %v535_v44 = vpop.f32.mrb[0].mxu1  ;;  %v1588_v45 = vpop.f32.mrb[1].mxu0 }
 0x113   : > { %v826_v47 = vmul.f32 0.25, %v535_v44  ;;  %v491_v49 = vpop.f32.mrb[2].mxu0  ;;  %v1594_v50 = vpop.f32.mrb[1].mxu1 }
 0x114   : > { %v825_v52 = vmul.f32 0.25, %v491_v49  ;;  %v1589_v53 = vpop.f32.mrb[3].mxu0  ;;  %v538_v54 = vpop.f32.mrb[2].mxu1  ;;  %v2039_v55 = vadd.f32 %v840_v42, %v824_v43 }
 0x115   : > { %v827_v57 = vmul.f32 0.25, %v538_v54  ;;  %v1595_v58 = vpop.f32.mrb[3].mxu1  ;;  %v2044_v59 = vadd.f32 %v842_v46, %v826_v47 }
 0x116   : > { %v872_v60 = vsel %vm447_vm1, %v2039_v55, -inf  ;;  %v2048_v61 = vadd.f32 %v841_v51, %v825_v52  ;;  %v852_v51 = vld [vmem:[%s2330_s1 + $0x60] sm:$0xff] }
 0x117   : > { %v878_v62 = vsel %vm447_vm1, %v2044_v59, -inf  ;;  %873 = vmax.xlane.f32.xlu0 %v872_v60  ;;  %v2052_v63 = vadd.f32 %v843_v56, %v827_v57  ;;  %v854_v57 = vld [vmem:[%s2330_s1 + $0x70] sm:$0xff] }
 0x118   : > { %879 = vmax.xlane.f32.xlu1 %v878_v62  ;;  %v875_v5 = vsel %vm447_vm1, %v2048_v61, -inf }
 0x119   : > { %v582_v0 = vpop.f32.mrb[4].mxu0  ;;  %v881_v1 = vsel %vm447_vm1, %v2052_v63, -inf }
 0x11a   : > { %v828_v3 = vmul.f32 0.25, %v582_v0  ;;  %v1600_v4 = vpop.f32.mrb[5].mxu0  ;;  %v629_v6 = vpop.f32.mrb[4].mxu1  ;;  %v853_v0 = vld [vmem:[%s2330_s1 + $0x68] sm:$0xff] }
 0x11b   : > { %876 = vmax.xlane.f32.xlu0 %v875_v5  ;;  %v585_v8 = vpop.f32.mrb[6].mxu0  ;;  %v830_v9 = vmul.f32 0.25, %v629_v6  ;;  %v1606_v10 = vpop.f32.mrb[5].mxu1  ;;  %v855_v5 = vld [vmem:[%s2330_s1 + $0x78] sm:$0xff] }
 0x11c   : > { %882 = vmax.xlane.f32.xlu1 %v881_v1  ;;  %v829_v12 = vmul.f32 0.25, %v585_v8  ;;  %v1601_v13 = vpop.f32.mrb[7].mxu0  ;;  %v632_v14 = vpop.f32.mrb[6].mxu1  ;;  %v2067_v15 = vadd.f32 %v844_v2, %v828_v3 }
 0x11d   : > { %v831_v17 = vmul.f32 0.25, %v632_v14  ;;  %v1607_v18 = vpop.f32.mrb[7].mxu1  ;;  %v2072_v19 = vadd.f32 %v846_v7, %v830_v9 }
 0x11e   : > { %v884_v20 = vsel %vm447_vm1, %v2067_v15, -inf  ;;  %v2076_v21 = vadd.f32 %v845_v11, %v829_v12 }
 0x11f   : > { %885 = vmax.xlane.f32.xlu0 %v884_v20  ;;  %v2078_v22 = vadd.f32 %v847_v16, %v831_v17  ;;  %v890_v24 = vsel %vm447_vm1, %v2072_v19, -inf }
 0x120   : > { %v887_v23 = vsel %vm447_vm1, %v2076_v21, -inf }
 0x121   : > { %888 = vmax.xlane.f32.xlu1 %v887_v23  ;;  %v676_v25 = vpop.f32.mrb[8].mxu0  ;;  %v893_v30 = vsel %vm447_vm1, %v2078_v22, -inf }
 0x122   : > { %v832_v27 = vmul.f32 0.25, %v676_v25  ;;  %v1612_v28 = vpop.f32.mrb[9].mxu0  ;;  %v723_v29 = vpop.f32.mrb[8].mxu1 }
 0x123   : > { %891 = vmax.xlane.f32.xlu0 %v890_v24  ;;  %v679_v32 = vpop.f32.mrb[10].mxu0  ;;  %v834_v33 = vmul.f32 0.25, %v723_v29  ;;  %v1618_v34 = vpop.f32.mrb[9].mxu1 }
 0x124   : > { %v833_v36 = vmul.f32 0.25, %v679_v32  ;;  %v1613_v37 = vpop.f32.mrb[11].mxu0  ;;  %v726_v38 = vpop.f32.mrb[10].mxu1  ;;  %v2095_v39 = vadd.f32 %v848_v26, %v832_v27 }
 0x125   : > { %894 = vmax.xlane.f32.xlu1 %v893_v30  ;;  %v835_v41 = vmul.f32 0.25, %v726_v38  ;;  %v1619_v42 = vpop.f32.mrb[11].mxu1  ;;  %v2100_v43 = vadd.f32 %v850_v31, %v834_v33 }
 0x126   : > { %v896_v44 = vsel %vm447_vm1, %v2095_v39, -inf  ;;  %v2104_v45 = vadd.f32 %v849_v35, %v833_v36 }
 0x127   : > { %897 = vmax.xlane.f32.xlu0 %v896_v44  ;;  %v2106_v46 = vadd.f32 %v851_v40, %v835_v41  ;;  %v902_v49 = vsel %vm447_vm1, %v2100_v43, -inf }
 0x128   : > { %v899_v47 = vsel %vm447_vm1, %v2104_v45, -inf }
 0x129   : > { %900 = vmax.xlane.f32.xlu1 %v899_v47  ;;  %v770_v50 = vpop.f32.mrb[12].mxu0  ;;  %v905_v56 = vsel %vm447_vm1, %v2106_v46, -inf }
 0x12a   : > { %v836_v52 = vmul.f32 0.25, %v770_v50  ;;  %v1624_v53 = vpop.f32.mrb[13].mxu0  ;;  %v817_v54 = vpop.f32.mrb[12].mxu1 }
 0x12b   : > { %903 = vmax.xlane.f32.xlu0 %v902_v49  ;;  %v773_v58 = vpop.f32.mrb[14].mxu0  ;;  %v838_v60 = vmul.f32 0.25, %v817_v54  ;;  %v1630_v62 = vpop.f32.mrb[13].mxu1 }
 0x12c   : > { %v837_v1 = vmul.f32 0.25, %v773_v58  ;;  %v1625_v2 = vpop.f32.mrb[15].mxu0  ;;  %v820_v3 = vpop.f32.mrb[14].mxu1  ;;  %v2123_v4 = vadd.f32 %v852_v51, %v836_v52 }
 0x12d   : > { %906 = vmax.xlane.f32.xlu1 %v905_v56  ;;  %v839_v6 = vmul.f32 0.25, %v820_v3  ;;  %v1631_v7 = vpop.f32.mrb[15].mxu1  ;;  %v2128_v8 = vadd.f32 %v854_v57, %v838_v60 }
 0x12e   : > { %v908_v9 = vsel %vm447_vm1, %v2123_v4, -inf  ;;  %v2132_v10 = vadd.f32 %v853_v0, %v837_v1 }
 0x12f   : > { %909 = vmax.xlane.f32.xlu0 %v908_v9  ;;  %v2134_v11 = vadd.f32 %v855_v5, %v839_v6  ;;  %v914_v13 = vsel %vm447_vm1, %v2128_v8, -inf }
 0x130   : > { %v911_v12 = vsel %vm447_vm1, %v2132_v10, -inf }
 0x131   : > { %912 = vmax.xlane.f32.xlu1 %v911_v12  ;;  %v917_v14 = vsel %vm447_vm1, %v2134_v11, -inf }
 0x133   : > { %915 = vmax.xlane.f32.xlu0 %v914_v13 }
 0x135   : > { %918 = vmax.xlane.f32.xlu1 %v917_v14 }
 0x1a4   : > { %v874_v16 = vpop.xlane.xlu0 %873 }
 0x1a5   : > { %v880_v17 = vpop.xlane.xlu1 %879  ;;  %v920_v18 = vsub.f32 %v2039_v55, %v874_v16 }
 0x1a6   : > { %v922_v20 = vsub.f32 %v2044_v59, %v880_v17 }
 0x1a7   : > { %v936_v23 = vmul.f32 1.442695, %v920_v18 }
 0x1a8   : > { %v940_v24 = vmul.f32 1.442695, %v922_v20  ;;  %v877_v25 = vpop.xlane.xlu0 %876 }
 0x1a9   : > { %1708 = vpow2.f32 %v936_v23  ;;  %v883_v26 = vpop.xlane.xlu1 %882  ;;  %v921_v27 = vsub.f32 %v2048_v61, %v877_v25 }
 0x1aa   : > { %v923_v28 = vsub.f32 %v2052_v63, %v883_v26  ;;  %1710 = vpow2.f32 %v940_v24 }
 0x1ab   : > { %v938_v29 = vmul.f32 1.442695, %v921_v27 }
 0x1ac   : > { %v942_v30 = vmul.f32 1.442695, %v923_v28  ;;  %v886_v31 = vpop.xlane.xlu0 %885 }
 0x1ad   : > { %1712 = vpow2.f32 %v938_v29  ;;  %v924_v32 = vsub.f32 %v2067_v15, %v886_v31 }
 0x1ae   : > { %v889_v33 = vpop.xlane.xlu1 %888  ;;  %1714 = vpow2.f32 %v942_v30 }
 0x1af   : > { %v944_v55 = vmul.f32 1.442695, %v924_v32  ;;  %v925_v59 = vsub.f32 %v2076_v21, %v889_v33 }
 0x1b0   : > { %v892_v34 = vpop.xlane.xlu0 %891 }
 0x1b1   : > { %1716 = vpow2.f32 %v944_v55  ;;  %v946_v35 = vmul.f32 1.442695, %v925_v59  ;;  %v926_v36 = vsub.f32 %v2072_v19, %v892_v34  ;;  %v1515_v59 = vld [vmem:[%s1956_s26 + $0x100] sm:$0xff]  ;;  %v1516_v34 = vld [vmem:[%s1956_s26 + $0x108] sm:$0xff] }
 0x1b2   : > { %v895_v61 = vpop.xlane.xlu1 %894 }
 0x1b3   : > { %v2149_v37 = vpop.eup %1708  ;;  %1718 = vpow2.f32 %v946_v35  ;;  %v948_v63 = vmul.f32 1.442695, %v926_v36  ;;  %v927_v38 = vsub.f32 %v2078_v22, %v895_v61  ;;  %v439_v35 = vpack.c.bf16 %v1516_v34, %v1515_v59  ;;  %v1517_v61 = vld [vmem:[%s1956_s26 + $0x110] sm:$0xff] }
 0x1b4   : > { %v898_v40 = vpop.xlane.xlu0 %897  ;;  %v968_v15 = vsel %vm447_vm1, %v2149_v37, 0.0  ;;  %v2154_v41 = vpop.eup %1710 }
 0x1b5   : > { %1720 = vpow2.f32 %v948_v63  ;;  %v950_v21 = vmul.f32 1.442695, %v927_v38  ;;  %v928_v42 = vsub.f32 %v2095_v39, %v898_v40  ;;  %969 = vadd.xlane.f32.xlu0 %v968_v15  ;;  %v974_v22 = vsel %vm447_vm1, %v2154_v41, 0.0  ;;  %1633 = vmatpush3.bf16.msra.mxu0 %v439_v35  ;;  %v1518_v63 = vld [vmem:[%s1956_s26 + $0x118] sm:$0xff]  ;;  %v1527_v35 = vld [vmem:[%s1956_s26 + $0x160] sm:$0xff] }
 0x1b6   : > { %v901_v44 = vpop.xlane.xlu1 %900  ;;  %1644 = vmatprep.subr.bf16.mxu0 %v1796_v48  ;;  %v440_v38 = vpack.c.bf16 %v1518_v63, %v1517_v61 }
 0x1b7   : > { %v2157_v19 = vpop.eup %1712  ;;  %1722 = vpow2.f32 %v950_v21  ;;  %v952_v47 = vmul.f32 1.442695, %v928_v42  ;;  %v929_v49 = vsub.f32 %v2104_v45, %v901_v44 }
 0x1b8   : > { %v904_v50 = vpop.xlane.xlu0 %903  ;;  %v971_v51 = vsel %vm447_vm1, %v2157_v19, 0.0  ;;  %v2164_v52 = vpop.eup %1714  ;;  %1639 = vmatpush3.bf16.msra.mxu1 %v440_v38 }
 0x1b9   : > { %1724 = vpow2.f32 %v952_v47  ;;  %v954_v53 = vmul.f32 1.442695, %v929_v49  ;;  %v930_v39 = vsub.f32 %v2100_v43, %v904_v50  ;;  %975 = vadd.xlane.f32.xlu0 %v974_v22  ;;  %972 = vadd.xlane.f32.xlu1 %v971_v51  ;;  %v977_v62 = vsel %vm447_vm1, %v2164_v52, 0.0  ;;  %v1519_v22 = vld [vmem:[%s1956_s26 + $0x120] sm:$0xff]  ;;  %v1520_v51 = vld [vmem:[%s1956_s26 + $0x128] sm:$0xff] }
 0x1ba   : > { %v907_v54 = vpop.xlane.xlu1 %906  ;;  %1650 = vmatprep.subr.bf16.mxu1 %v1796_v48 }
 0x1bb   : > { %v2167_v56 = vpop.eup %1716  ;;  %1726 = vpow2.f32 %v954_v53  ;;  %v956_v45 = vmul.f32 1.442695, %v930_v39  ;;  %v931_v57 = vsub.f32 %v2106_v46, %v907_v54 }
 0x1bc   : > { %v910_v58 = vpop.xlane.xlu0 %909  ;;  %v980_v60 = vsel %vm447_vm1, %v2167_v56, 0.0 }
 0x1bd   : > { %v2174_v0 = vpop.eup %1718  ;;  %1728 = vpow2.f32 %v956_v45  ;;  %v958_v43 = vmul.f32 1.442695, %v931_v57  ;;  %v932_v1 = vsub.f32 %v2123_v4, %v910_v58  ;;  %981 = vadd.xlane.f32.xlu0 %v980_v60  ;;  %978 = vadd.xlane.f32.xlu1 %v977_v62  ;;  %v441_v60 = vpack.c.bf16 %v1520_v51, %v1519_v22 }
 0x1be   : > { %v913_v2 = vpop.xlane.xlu1 %912  ;;  %v983_v9 = vsel %vm447_vm1, %v2174_v0, 0.0 }
 0x1bf   : > { %v2177_v3 = vpop.eup %1720  ;;  %1730 = vpow2.f32 %v958_v43  ;;  %v960_v46 = vmul.f32 1.442695, %v932_v1  ;;  %v933_v5 = vsub.f32 %v2132_v10, %v913_v2  ;;  %v1521_v43 = vld [vmem:[%s1956_s26 + $0x130] sm:$0xff]  ;;  %v1522_v1 = vld [vmem:[%s1956_s26 + $0x138] sm:$0xff] }
 0x1c0   : > { %v916_v6 = vpop.xlane.xlu0 %915  ;;  %v986_v7 = vsel %vm447_vm1, %v2177_v3, 0.0 }
 0x1c1   : > { %v2184_v12 = vpop.eup %1722  ;;  %1732 = vpow2.f32 %v960_v46  ;;  %v962_v4 = vmul.f32 1.442695, %v933_v5  ;;  %v934_v13 = vsub.f32 %v2128_v8, %v916_v6  ;;  %987 = vadd.xlane.f32.xlu0 %v986_v7  ;;  %984 = vadd.xlane.f32.xlu1 %v983_v9 }
 0x1c2   : > { %v919_v14 = vpop.xlane.xlu1 %918  ;;  %v989_v20 = vsel %vm447_vm1, %v2184_v12, 0.0 }
 0x1c3   : > { %v2187_v16 = vpop.eup %1724  ;;  %1734 = vpow2.f32 %v962_v4  ;;  %v964_v10 = vmul.f32 1.442695, %v934_v13  ;;  %v935_v17 = vsub.f32 %v2134_v11, %v919_v14  ;;  %v1523_v4 = vld [vmem:[%s1956_s26 + $0x140] sm:$0xff]  ;;  %v1524_v13 = vld [vmem:[%s1956_s26 + $0x148] sm:$0xff] }
 0x1c4   : > { %v992_v18 = vsel %vm447_vm1, %v2187_v16, 0.0 }
 0x1c5   : > { %v2194_v23 = vpop.eup %1726  ;;  %1736 = vpow2.f32 %v964_v10  ;;  %v966_v24 = vmul.f32 1.442695, %v935_v17  ;;  %993 = vadd.xlane.f32.xlu0 %v992_v18  ;;  %990 = vadd.xlane.f32.xlu1 %v989_v20  ;;  %v443_v20 = vpack.c.bf16 %v1524_v13, %v1523_v4 }
 0x1c6   : > { %v995_v11 = vsel %vm447_vm1, %v2194_v23, 0.0 }
 0x1c7   : > { %v2196_v8 = vpop.eup %1728  ;;  %1738 = vpow2.f32 %v966_v24 }
 0x1c8   : > { %v998_v25 = vsel %vm447_vm1, %v2196_v8, 0.0 }
 0x1c9   : > { %v2202_v26 = vpop.eup %1730  ;;  %999 = vadd.xlane.f32.xlu0 %v998_v25  ;;  %996 = vadd.xlane.f32.xlu1 %v995_v11  ;;  %v1525_v25 = vld [vmem:[%s1956_s26 + $0x150] sm:$0xff]  ;;  %v1526_v11 = vld [vmem:[%s1956_s26 + $0x158] sm:$0xff] }
 0x1ca   : > { %v1001_v29 = vsel %vm447_vm1, %v2202_v26, 0.0  ;;  %v444_v59 = vpack.c.bf16 %v1526_v11, %v1525_v25 }
 0x1cb   : > { %v2204_v27 = vpop.eup %1732 }
 0x1cc   : > { %v1004_v28 = vsel %vm447_vm1, %v2204_v27, 0.0 }
 0x1cd   : > { %v2210_v30 = vpop.eup %1734  ;;  %1005 = vadd.xlane.f32.xlu0 %v1004_v28  ;;  %1002 = vadd.xlane.f32.xlu1 %v1001_v29 }
 0x1ce   : > { %v1007_v33 = vsel %vm447_vm1, %v2210_v30, 0.0 }
 0x1cf   : > { %v2212_v31 = vpop.eup %1736 }
 0x1d0   : > { %v1010_v32 = vsel %vm447_vm1, %v2212_v31, 0.0 }
 0x1d1   : > { %v2218_v55 = vpop.eup %1738  ;;  %1011 = vadd.xlane.f32.xlu0 %v1010_v32  ;;  %1008 = vadd.xlane.f32.xlu1 %v1007_v33 }
 0x1d2   : > { %v1013_v36 = vsel %vm447_vm1, %v2218_v55, 0.0 }
 0x1d5   : > { %1014 = vadd.xlane.f32.xlu1 %v1013_v36  ;;  %v1528_v36 = vld [vmem:[%s1956_s26 + $0x168] sm:$0xff] }
 0x242   : > { %v970_v40 = vpop.xlane.xlu0 %969 }
 0x243   : > { %1740 = vrcp.f32 %v970_v40  ;;  %v445_v40 = vpack.c.bf16 %v1528_v36, %v1527_v35 }
 0x246   : > { %v976_v15 = vpop.xlane.xlu0 %975  ;;  %v973_v21 = vpop.xlane.xlu1 %972 }
 0x247   : > { %1742 = vrcp.f32 %v973_v21  ;;  %v1529_v21 = vld [vmem:[%s1956_s26 + $0x170] sm:$0xff] }
 0x248   : > { %1744 = vrcp.f32 %v976_v15 }
 0x24a   : > { %v982_v42 = vpop.xlane.xlu0 %981  ;;  %v979_v44 = vpop.xlane.xlu1 %978 }
 0x24b   : > { %1746 = vrcp.f32 %v979_v44 }
 0x24c   : > { %1748 = vrcp.f32 %v982_v42  ;;  %v1530_v42 = vld [vmem:[%s1956_s26 + $0x178] sm:$0xff]  ;;  %s1496_s26 = sshll.u32 %s1488_s12, 3 }
 0x24d   : > { %v1741_v50 = vpop.eup %1740  ;;  %p366_p8 = scmp.lt.s32.totalorder %s1496_s26, 15 }
 0x24e   : > { %v988_v47 = vpop.xlane.xlu0 %987  ;;  %v985_v49 = vpop.xlane.xlu1 %984  ;;  %v1032_v45 = vmul.f32 %v1741_v50, %v2149_v37 }
 0x24f   : > { %1750 = vrcp.f32 %v985_v49  ;;  %v446_v49 = vpack.c.bf16 %v1530_v42, %v1529_v21  ;;  %s2336_s26 = smov (!%p366_p8, %s1496_s26), 15 }
 0x250   : > { %1752 = vrcp.f32 %v988_v47  ;;  %s1551_s9 = sshll.u32 %s2336_s26, 4 }
 0x251   : > { %v1743_v53 = vpop.eup %1742  ;;  %s2285_s17 = scalar_lea.vmem %s2331_s2, %s1551_s9 }
 0x252   : > { %v994_v39 = vpop.xlane.xlu0 %993  ;;  %v991_v54 = vpop.xlane.xlu1 %990  ;;  %v1033_v57 = vmul.f32 %v1743_v53, %v2157_v19  ;;  %v442_v19 = vpack.c.bf16 %v1522_v1, %v1521_v43 }
 0x253   : > { %v1745_v58 = vpop.eup %1744  ;;  %1754 = vrcp.f32 %v991_v54 }
 0x254   : > { %v1048_v62 = vpack.c.bf16 %v1033_v57, %v1032_v45  ;;  %1756 = vrcp.f32 %v994_v39  ;;  %v1034_v6 = vmul.f32 %v1745_v58, %v2154_v41 }
 0x255   : > { %v1747_v2 = vpop.eup %1746 }
 0x256   : > { %v1000_v46 = vpop.xlane.xlu0 %999  ;;  %v997_v5 = vpop.xlane.xlu1 %996  ;;  %v1035_v7 = vmul.f32 %v1747_v2, %v2164_v52  ;;  %1635 = vmatmul.mubr.msk.bf16.vlgmr.msra.gmra.mrb[16].mxu0 %vm447_vm1, %v1048_v62 }
 0x257   : > { %v1749_v37 = vpop.eup %1748  ;;  %1758 = vrcp.f32 %v997_v5  ;;  %1645 = vmatpush3.bf16.msra.mxu0 %v441_v60  ;;  %1646 = vmatprep.mubr.msk.bf16.mxu0 %vm1797_vm0, %v1796_v48 }
 0x258   : > { %v1049_v9 = vpack.c.bf16 %v1035_v7, %v1034_v6  ;;  %1656 = vmatprep.subr.bf16.mxu0 %v1796_v48  ;;  %1760 = vrcp.f32 %v1000_v46  ;;  %v1036_v10 = vmul.f32 %v1749_v37, %v2167_v56 }
 0x259   : > { %v1751_v14 = vpop.eup %1750 }
 0x25a   : > { %v1006_v41 = vpop.xlane.xlu0 %1005  ;;  %v1003_v52 = vpop.xlane.xlu1 %1002  ;;  %v1037_v17 = vmul.f32 %v1751_v14, %v2174_v0  ;;  %1641 = vmatmul.mubr.msk.bf16.vlgmr.msra.gmra.mrb[16].mxu1 %vm447_vm1, %v1049_v9 }
 0x25b   : > { %v1753_v18 = vpop.eup %1752  ;;  %1651 = vmatpush3.bf16.msra.mxu1 %v442_v19  ;;  %1762 = vrcp.f32 %v1003_v52  ;;  %1652 = vmatprep.mubr.msk.bf16.mxu1 %vm1797_vm0, %v1796_v48 }
 0x25c   : > { %v1050_v24 = vpack.c.bf16 %v1037_v17, %v1036_v10  ;;  %1662 = vmatprep.subr.bf16.mxu1 %v1796_v48  ;;  %1764 = vrcp.f32 %v1006_v41  ;;  %v1038_v29 = vmul.f32 %v1753_v18, %v2177_v3 }
 0x25d   : > { %v1755_v28 = vpop.eup %1754 }
 0x25e   : > { %v1012_v56 = vpop.xlane.xlu0 %1011  ;;  %v1009_v0 = vpop.xlane.xlu1 %1008  ;;  %v1039_v32 = vmul.f32 %v1755_v28, %v2184_v12  ;;  %1647 = vmatmul.mubr.msk.bf16.vlgmr.msra.gmra.mrb[20].mxu0 %vm447_vm1, %v1050_v24 }
 0x25f   : > { %v1757_v33 = vpop.eup %1756  ;;  %1766 = vrcp.f32 %v1009_v0  ;;  %1657 = vmatpush3.bf16.msra.mxu0 %v443_v20  ;;  %1658 = vmatprep.mubr.msk.bf16.mxu0 %vm1797_vm0, %v1796_v48 }
 0x260   : > { %1768 = vrcp.f32 %v1012_v56  ;;  %v1051_v34 = vpack.c.bf16 %v1039_v32, %v1038_v29  ;;  %1668 = vmatprep.subr.bf16.mxu0 %v1796_v48  ;;  %v1040_v12 = vmul.f32 %v1757_v33, %v2187_v16 }
 0x261   : > { %v1759_v3 = vpop.eup %1758 }
 0x262   : > { %v1015_v61 = vpop.xlane.xlu1 %1014  ;;  %v1041_v63 = vmul.f32 %v1759_v3, %v2194_v23  ;;  %1653 = vmatmul.mubr.msk.bf16.vlgmr.msra.gmra.mrb[20].mxu1 %vm447_vm1, %v1051_v34  ;;  %v1761_v38 = vpop.eup %1760 }
 0x263   : > { %1770 = vrcp.f32 %v1015_v61  ;;  %1663 = vmatpush3.bf16.msra.mxu1 %v444_v59  ;;  %1664 = vmatprep.mubr.msk.bf16.mxu1 %vm1797_vm0, %v1796_v48  ;;  %v1042_v47 = vmul.f32 %v1761_v38, %v2196_v8 }
 0x264   : > { %v1052_v15 = vpack.c.bf16 %v1041_v63, %v1040_v12  ;;  %1674 = vmatprep.subr.bf16.mxu1 %v1796_v48 }
 0x265   : > { %v1763_v44 = vpop.eup %1762 }
 0x266   : > { %v1043_v16 = vmul.f32 %v1763_v44, %v2202_v26  ;;  %1659 = vmatmul.mubr.msk.bf16.vlgmr.msra.gmra.mrb[24].mxu0 %vm447_vm1, %v1052_v15  ;;  %v1765_v23 = vpop.eup %1764 }
 0x267   : > { %1669 = vmatpush3.bf16.msra.mxu0 %v445_v40  ;;  %1670 = vmatprep.mubr.msk.bf16.mxu0 %vm1797_vm0, %v1796_v48  ;;  %v1044_v53 = vmul.f32 %v1765_v23, %v2204_v27 }
 0x268   : > { %v1053_v50 = vpack.c.bf16 %v1043_v16, %v1042_v47 }
 0x269   : > { %v1767_v22 = vpop.eup %1766 }
 0x26a   : > { %v1769_v51 = vpop.eup %1768  ;;  %v1045_v39 = vmul.f32 %v1767_v22, %v2210_v30  ;;  %1665 = vmatmul.mubr.msk.bf16.vlgmr.msra.gmra.mrb[24].mxu1 %vm447_vm1, %v1053_v50 }
 0x26b   : > { %1675 = vmatpush3.bf16.msra.mxu1 %v446_v49  ;;  %1676 = vmatprep.mubr.msk.bf16.mxu1 %vm1797_vm0, %v1796_v48  ;;  %v1046_v54 = vmul.f32 %v1769_v51, %v2212_v31 }
 0x26c   : > { %v1054_v26 = vpack.c.bf16 %v1045_v39, %v1044_v53 }
 0x26d   : > { %v1771_v8 = vpop.eup %1770 }
 0x26e   : > { %v1047_v45 = vmul.f32 %v1771_v8, %v2218_v55  ;;  %1671 = vmatmul.mubr.msk.bf16.vlgmr.msra.gmra.mrb[28].mxu0 %vm447_vm1, %v1054_v26 }
 0x270   : > { %v1055_v57 = vpack.c.bf16 %v1047_v45, %v1046_v54 }
 0x272   : > { %1677 = vmatmul.mubr.msk.bf16.vlgmr.msra.gmra.mrb[28].mxu1 %vm447_vm1, %v1055_v57 }
 0x329   : > { %v1093_v48 = vpop.f32.mrb[16].mxu0 }
 0x32a   : > { %1408 = vst.msk [vmem:[%s2285_s17] sm:$0xff] %vm447_vm1, %v1093_v48  ;;  %v1636_v27 = vpop.f32.mrb[17].mxu0 }
 0x32b   : > { %v1096_v30 = vpop.f32.mrb[18].mxu0 }
 0x32c   : > { %1409 = vst.msk [vmem:[%s2285_s17 + $0x8] sm:$0xff] %vm447_vm1, %v1096_v30  ;;  %v1637_v31 = vpop.f32.mrb[19].mxu0 }
 0x32d   : > { %v1137_v55 = vpop.f32.mrb[16].mxu1 }
 0x32e   : > { %1410 = vst.msk [vmem:[%s2285_s17 + $0x10] sm:$0xff] %vm447_vm1, %v1137_v55  ;;  %v1642_v58 = vpop.f32.mrb[17].mxu1 }
 0x32f   : > { %v1140_v60 = vpop.f32.mrb[18].mxu1 }
 0x330   : > { %1411 = vst.msk [vmem:[%s2285_s17 + $0x18] sm:$0xff] %vm447_vm1, %v1140_v60  ;;  %v1643_v62 = vpop.f32.mrb[19].mxu1 }
 0x331   : > { %v1181_v43 = vpop.f32.mrb[20].mxu0 }
 0x332   : > { %1412 = vst.msk [vmem:[%s2285_s17 + $0x20] sm:$0xff] %vm447_vm1, %v1181_v43  ;;  %v1648_v1 = vpop.f32.mrb[21].mxu0 }
 0x333   : > { %v1184_v2 = vpop.f32.mrb[22].mxu0 }
 0x334   : > { %1413 = vst.msk [vmem:[%s2285_s17 + $0x28] sm:$0xff] %vm447_vm1, %v1184_v2  ;;  %v1649_v46 = vpop.f32.mrb[23].mxu0 }
 0x335   : > { %v1225_v5 = vpop.f32.mrb[20].mxu1 }
 0x336   : > { %1414 = vst.msk [vmem:[%s2285_s17 + $0x30] sm:$0xff] %vm447_vm1, %v1225_v5  ;;  %v1654_v6 = vpop.f32.mrb[21].mxu1 }
 0x337   : > { %v1228_v7 = vpop.f32.mrb[22].mxu1 }
 0x338   : > { %1415 = vst.msk [vmem:[%s2285_s17 + $0x38] sm:$0xff] %vm447_vm1, %v1228_v7  ;;  %v1655_v37 = vpop.f32.mrb[23].mxu1 }
 0x339   : > { %v1269_v19 = vpop.f32.mrb[24].mxu0 }
 0x33a   : > { %1416 = vst.msk [vmem:[%s2285_s17 + $0x40] sm:$0xff] %vm447_vm1, %v1269_v19  ;;  %v1660_v9 = vpop.f32.mrb[25].mxu0 }
 0x33b   : > { %v1272_v4 = vpop.f32.mrb[26].mxu0 }
 0x33c   : > { %1417 = vst.msk [vmem:[%s2285_s17 + $0x48] sm:$0xff] %vm447_vm1, %v1272_v4  ;;  %v1661_v13 = vpop.f32.mrb[27].mxu0 }
 0x33d   : > { %v1313_v14 = vpop.f32.mrb[24].mxu1 }
 0x33e   : > { %1418 = vst.msk [vmem:[%s2285_s17 + $0x50] sm:$0xff] %vm447_vm1, %v1313_v14  ;;  %v1666_v41 = vpop.f32.mrb[25].mxu1 }
 0x33f   : > { %v1316_v52 = vpop.f32.mrb[26].mxu1 }
 0x340   : > { %1419 = vst.msk [vmem:[%s2285_s17 + $0x58] sm:$0xff] %vm447_vm1, %v1316_v52  ;;  %v1667_v10 = vpop.f32.mrb[27].mxu1 }
 0x341   : > { %v1357_v17 = vpop.f32.mrb[28].mxu0 }
 0x342   : > { %1420 = vst.msk [vmem:[%s2285_s17 + $0x60] sm:$0xff] %vm447_vm1, %v1357_v17  ;;  %v1672_v18 = vpop.f32.mrb[29].mxu0 }
 0x343   : > { %v1360_v20 = vpop.f32.mrb[30].mxu0 }
 0x344   : > { %1421 = vst.msk [vmem:[%s2285_s17 + $0x68] sm:$0xff] %vm447_vm1, %v1360_v20  ;;  %v1673_v24 = vpop.f32.mrb[31].mxu0 }
 0x345   : > { %v1401_v25 = vpop.f32.mrb[28].mxu1 }
 0x346   : > { %1422 = vst.msk [vmem:[%s2285_s17 + $0x70] sm:$0xff] %vm447_vm1, %v1401_v25  ;;  %v1678_v11 = vpop.f32.mrb[29].mxu1 }
 0x347   : > { %v1404_v28 = vpop.f32.mrb[30].mxu1 }
 0x348   : > { %1423 = vst.msk [vmem:[%s2285_s17 + $0x78] sm:$0xff] %vm447_vm1, %v1404_v28  ;;  %v1679_v56 = vpop.f32.mrb[31].mxu1 }
 0x349 PF: > { %p9_p9 = scmp.ge.s32.totalorder %s1830_s13, 4   ;;  %s2332_s9 = smov %s1790_s10 }
 0x34a   : > { %s2333_s10 = smov %s1839_s16  ;;  %s2334_s11 = smov %s1830_s13 }
 0x34b   :  { %11 = sbr.rel (!%p9_p9) target bundleno = 2 (0x2), region = 103 }

// kernel: _lambda_.28
= control target key start
LH: loop header
LB: loop body
LE: loop exit
PB: predicated region body
PF: predicated region fallthrough
CT: control target
= control target key end

     0   :  { %s776_s15 = smov 0   ;;  %s778_s16 = smov 0   ;;  %s872_s0 = inlined_call_operand.vmem [shape: f32[128,128], index: 0, kind: input, shape index: {}]   ;;  %s873_s1 = inlined_call_operand.vmem [shape: bf16[128,32], index: 1, kind: input, shape index: {}]   ;;  %s874_s2 = inlined_call_operand.vmem [shape: f32[1,32], index: 2, kind: input, shape index: {}]   ;;  %s875_s3 = inlined_call_operand.vmem [shape: f32[128,32], index: 3, kind: input, shape index: {}]   ;;  %s876_s4 = inlined_call_operand.vmem [shape: f32[128,32], index: 4, kind: output, shape index: {}]  }
   0x1   :  { %s780_s17 = smov 0  }
   0x2 LB: > { %s33_s18 = sadd.s32 1, %s745_s16  ;;  %p625_p0 = scmp.ge.s32.totalorder %s749_s17, 1  ;;  %s749_s17 = sphi %s780_s17, %s14_s17   ;;  %s745_s16 = sphi %s778_s16, %s878_s16   ;;  %s741_s15 = sphi %s776_s15, %s877_s15  }
   0x3   : > { %p35_p1 = scmp.ge.s32.totalorder %s33_s18, 2  ;;  %p229_p2 = scmp.lt.s32.totalorder %s749_s17, 3 }
   0x5   : > { %s880_s18 = smov (%p35_p1, %s33_s18), 0  ;;  %p230_p3 = pnand %p625_p0, %p229_p2 }
   0x6   : > { %v719_v0 = vld [vmem:[%s873_s1] sm:$0xff] (!%p230_p3)   ;;  %s626_s21 = sshll.u32 (!%p230_p3), %s741_s15, 3  ;;  %v720_v1 = vld [vmem:[%s873_s1 + $0x8] sm:$0xff] (!%p230_p3)   ;;  %v721_v2 = vld [vmem:[%s873_s1 + $0x10] sm:$0xff] (!%p230_p3)   ;;  %vm484_vm0 = vcmask (!%p230_p3), 261120  }
   0x7   : > { %233 = sbr.rel (%p230_p3) target bundleno = 260 (0x104), region = 36  ;;  %p281_p4 = scmp.lt.s32.totalorder (!%p230_p3), %s626_s21, 15  ;;  %655 = vmatprep.subr.bf16.mxu0 (!%p230_p3), %v719_v0  ;;  %679 = vmatprep.subr.bf16.mxu1 (!%p230_p3), %v719_v0  ;;  %v722_v3 = vld [vmem:[%s873_s1 + $0x18] sm:$0xff] (!%p230_p3)   ;;  %v723_v10 = vld [vmem:[%s873_s1 + $0x20] sm:$0xff] (!%p230_p3)   ;;  %v724_v11 = vld [vmem:[%s873_s1 + $0x28] sm:$0xff] (!%p230_p3)  }
   0x8   : > { %656 = vmatpush3.bf16.msra.mxu0 (!%p230_p3), %v719_v0  ;;  %687 = vmatpush3.bf16.msra.mxu1 (!%p230_p3), %v719_v0  ;;  %v725_v12 = vld [vmem:[%s873_s1 + $0x30] sm:$0xff] (!%p230_p3)   ;;  %v726_v13 = vld [vmem:[%s873_s1 + $0x38] sm:$0xff] (!%p230_p3)   ;;  %v632_v20 = vld [vmem:[%s874_s2] ss:$0 sm:$0xff] (!%p230_p3) }
   0x9   : > { %657 = vmatprep.subr.bf16.mxu0 (!%p230_p3), %v720_v1  ;;  %680 = vmatprep.subr.bf16.mxu1 (!%p230_p3), %v720_v1 }
   0xc   : > { %658 = vmatpush3.bf16.msra.mxu0 (!%p230_p3), %v720_v1  ;;  %688 = vmatpush3.bf16.msra.mxu1 (!%p230_p3), %v720_v1 }
   0xd   : > { %659 = vmatprep.subr.bf16.mxu0 (!%p230_p3), %v721_v2  ;;  %681 = vmatprep.subr.bf16.mxu1 (!%p230_p3), %v721_v2 }
   0xe   : > { %s882_s21 = smov (!%p281_p4, %s626_s21), 15 }
   0xf   : > { %s803_s26 = sshll.u32 %s882_s21, 3 }
  0x10   : > { %s809_s29 = scalar_lea.vmem %s872_s0, %s803_s26  ;;  %660 = vmatpush3.bf16.msra.mxu0 %v721_v2  ;;  %689 = vmatpush3.bf16.msra.mxu1 %v721_v2  ;;  %s308_s19 = scalar_lea.vmem %s875_s3, %s803_s26 }
  0x11   : > { %v320_v4 = vld [vmem:[%s809_s29] sm:$0xff]  ;;  %v321_v5 = vld [vmem:[%s809_s29 + $0x8] sm:$0xff]  ;;  %661 = vmatprep.subr.bf16.mxu0 %v722_v3  ;;  %682 = vmatprep.subr.bf16.mxu1 %v722_v3  ;;  %v322_v14 = vld [vmem:[%s809_s29 + $0x10] sm:$0xff]  ;;  %s845_s24 = scalar_lea.vmem %s876_s4, %s803_s26 }
  0x12   : > { %v324_v6 = vld [vmem:[%s809_s29 + $0x20] sm:$0xff]  ;;  %v328_v7 = vpack.c.bf16 %v321_v5, %v320_v4  ;;  %v325_v8 = vld [vmem:[%s809_s29 + $0x28] sm:$0xff]  ;;  %v323_v15 = vld [vmem:[%s809_s29 + $0x18] sm:$0xff] }
  0x13   : > { %v330_v9 = vpack.c.bf16 %v325_v8, %v324_v6  ;;  %v326_v16 = vld [vmem:[%s809_s29 + $0x30] sm:$0xff]  ;;  %v327_v17 = vld [vmem:[%s809_s29 + $0x38] sm:$0xff]  ;;  %v329_v18 = vpack.c.bf16 %v323_v15, %v322_v14  ;;  %v468_v28 = vld [vmem:[%s308_s19] sm:$0xff] }
  0x14   : > { %671 = vmatprep.mubr.bf16.mxu0 %v328_v7  ;;  %662 = vmatpush3.bf16.msra.mxu0 %v722_v3  ;;  %v331_v19 = vpack.c.bf16 %v327_v17, %v326_v16  ;;  %v470_v22 = vld [vmem:[%s308_s19 + $0x10] sm:$0xff]  ;;  %v472_v30 = vld [vmem:[%s308_s19 + $0x20] sm:$0xff]  ;;  %v471_v34 = vld [vmem:[%s308_s19 + $0x18] sm:$0xff] }
  0x15   : > { %675 = vmatprep.mubr.bf16.mxu1 %v330_v9  ;;  %690 = vmatpush3.bf16.msra.mxu1 %v722_v3  ;;  %v474_v24 = vld [vmem:[%s308_s19 + $0x30] sm:$0xff]  ;;  %v475_v36 = vld [vmem:[%s308_s19 + $0x38] sm:$0xff]  ;;  %v469_v42 = vld [vmem:[%s308_s19 + $0x8] sm:$0xff] }
  0x16   : > { %663 = vmatprep.subr.bf16.mxu0 %v723_v10  ;;  %683 = vmatprep.subr.bf16.mxu1 %v723_v10  ;;  %v473_v44 = vld [vmem:[%s308_s19 + $0x28] sm:$0xff] }
  0x18   : > { %664 = vmatpush3.bf16.msra.mxu0 %v723_v10 }
  0x19   : > { %691 = vmatpush3.bf16.msra.mxu1 %v723_v10  ;;  %665 = vmatprep.subr.bf16.mxu0 %v724_v11 }
  0x1a   : > { %684 = vmatprep.subr.bf16.mxu1 %v724_v11 }
  0x1c   : > { %666 = vmatpush3.bf16.msra.mxu0 %v724_v11 }
  0x1d   : > { %692 = vmatpush3.bf16.msra.mxu1 %v724_v11  ;;  %667 = vmatprep.subr.bf16.mxu0 %v725_v12 }
  0x1e   : > { %685 = vmatprep.subr.bf16.mxu1 %v725_v12 }
  0x20   : > { %668 = vmatpush3.bf16.msra.mxu0 %v725_v12 }
  0x21   : > { %693 = vmatpush3.bf16.msra.mxu1 %v725_v12  ;;  %669 = vmatprep.subr.bf16.mxu0 %v726_v13 }
  0x22   : > { %686 = vmatprep.subr.bf16.mxu1 %v726_v13 }
  0x24   : > { %670 = vmatpush3.bf16.msra.mxu0 %v726_v13 }
  0x25   : > { %694 = vmatpush3.bf16.msra.mxu1 %v726_v13 }
  0x27   : > { %672 = vmatmul.mubr.bf16.vlgmr.msra.gmra.mrb[0].mxu0 %v329_v18 }
  0x28   : > { %676 = vmatmul.mubr.bf16.vlgmr.msra.gmra.mrb[0].mxu1 %v331_v19 }
  0xfa   : > { %v673_v21 = vpop.f32.mrb[0].mxu0 }
  0xfb   : > { %v677_v23 = vpop.f32.mrb[0].mxu1  ;;  %v446_v25 = vadd.f32 %v673_v21, %v632_v20  ;;  %v437_v27 = vpop.f32.mrb[1].mxu0 }
  0xfc   : > { %v462_v26 = vadd.f32 %v677_v23, %v632_v20  ;;  %v453_v29 = vpop.f32.mrb[1].mxu1  ;;  %v438_v31 = vadd.f32 %v632_v20, %v437_v27  ;;  %v674_v33 = vpop.f32.mrb[2].mxu0 }
  0xfd   : > { %v454_v32 = vadd.f32 %v632_v20, %v453_v29  ;;  %v678_v35 = vpop.f32.mrb[2].mxu1  ;;  %v478_v37 = vadd.f32 %v470_v22, %v446_v25  ;;  %v449_v39 = vadd.f32 %v674_v33, %v632_v20  ;;  %v440_v41 = vpop.f32.mrb[3].mxu0 }
  0xfe   : > { %v482_v38 = vadd.f32 %v474_v24, %v462_v26  ;;  %v465_v40 = vadd.f32 %v678_v35, %v632_v20  ;;  %v456_v43 = vpop.f32.mrb[3].mxu1  ;;  %v476_v45 = vadd.f32 %v468_v28, %v438_v31  ;;  %v441_v47 = vadd.f32 %v632_v20, %v440_v41 }
  0xff   : > { %v480_v46 = vadd.f32 %v472_v30, %v454_v32  ;;  %v457_v48 = vadd.f32 %v632_v20, %v456_v43  ;;  %487 = vst.msk [vmem:[%s845_s24 + $0x10] sm:$0xff] %vm484_vm0, %v478_v37  ;;  %v479_v49 = vadd.f32 %v471_v34, %v449_v39 }
 0x100   : > { %491 = vst.msk [vmem:[%s845_s24 + $0x30] sm:$0xff] %vm484_vm0, %v482_v38  ;;  %v483_v50 = vadd.f32 %v475_v36, %v465_v40  ;;  %485 = vst.msk [vmem:[%s845_s24] sm:$0xff] %vm484_vm0, %v476_v45  ;;  %v477_v51 = vadd.f32 %v469_v42, %v441_v47 }
 0x101   : > { %489 = vst.msk [vmem:[%s845_s24 + $0x20] sm:$0xff] %vm484_vm0, %v480_v46  ;;  %v481_v52 = vadd.f32 %v473_v44, %v457_v48  ;;  %488 = vst.msk [vmem:[%s845_s24 + $0x18] sm:$0xff] %vm484_vm0, %v479_v49 }
 0x102   : > { %492 = vst.msk [vmem:[%s845_s24 + $0x38] sm:$0xff] %vm484_vm0, %v483_v50  ;;  %486 = vst.msk [vmem:[%s845_s24 + $0x8] sm:$0xff] %vm484_vm0, %v477_v51 }
 0x103   : > { %490 = vst.msk [vmem:[%s845_s24 + $0x28] sm:$0xff] %vm484_vm0, %v481_v52 }
 0x104 PF: > { %s14_s17 = sadd.s32 1, %s749_s17   ;;  %s877_s15 = smov %s745_s16 }
 0x105   : > { %p11_p5 = scmp.ge.s32.totalorder %s14_s17, 4   ;;  %s878_s16 = smov %s880_s18 }
 0x107   :  { %13 = sbr.rel (!%p11_p5) target bundleno = 2 (0x2), region = 75 }

// kernel: _lambda_.27
= control target key start
LH: loop header
LB: loop body
LE: loop exit
PB: predicated region body
PF: predicated region fallthrough
CT: control target
= control target key end

     0   :  { %s909_s18 = smov 0   ;;  %s911_s19 = smov 0   ;;  %s1090_s0 = inlined_call_operand.vmem [shape: f32[128,32], index: 0, kind: input, shape index: {}]   ;;  %s1091_s1 = inlined_call_operand.vmem [shape: bf16[32,128], index: 1, kind: input, shape index: {}]   ;;  %s1092_s2 = inlined_call_operand.vmem [shape: f32[1,32], index: 2, kind: input, shape index: {}]   ;;  %s1093_s3 = inlined_call_operand.vmem [shape: f32[1,32], index: 3, kind: input, shape index: {}]   ;;  %s1094_s4 = inlined_call_operand.vmem [shape: f32[1,128], index: 4, kind: input, shape index: {}]   ;;  %s1095_s5 = inlined_call_operand.vmem [shape: f32[128,128], index: 5, kind: output, shape index: {}]  }
   0x1   :  { %s913_s20 = smov 0  }
   0x2 LB: > { %s34_s21 = sadd.s32 1, %s873_s19  ;;  %p759_p0 = scmp.ge.s32.totalorder %s877_s20, 1  ;;  %s877_s20 = sphi %s913_s20, %s15_s20   ;;  %s873_s19 = sphi %s911_s19, %s1097_s19   ;;  %s869_s18 = sphi %s909_s18, %s1096_s18  }
   0x3   : > { %p36_p1 = scmp.ge.s32.totalorder %s34_s21, 2  ;;  %p238_p2 = scmp.lt.s32.totalorder %s877_s20, 3 }
   0x5   : > { %s1099_s21 = smov (%p36_p1, %s34_s21), 0  ;;  %p239_p3 = pnand %p759_p0, %p238_p2 }
   0x6   : > { %s760_s22 = sshll.u32 (!%p239_p3), %s869_s18, 3  ;;  %vm322_vm0 = vcmask (!%p239_p3), 261120   ;;  %v821_v56 = vld [vmem:[%s1091_s1] sm:$0xff] (!%p239_p3)   ;;  %v822_v57 = vld [vmem:[%s1091_s1 + $0x8] sm:$0xff] (!%p239_p3)  }
   0x7   : > { %242 = sbr.rel (%p239_p3) target bundleno = 594 (0x252), region = 40  ;;  %p284_p4 = scmp.lt.s32.totalorder (!%p239_p3), %s760_s22, 15  ;;  %781 = vmatprep.subr.bf16.mxu0 (!%p239_p3), %v821_v56  ;;  %793 = vmatprep.subr.bf16.mxu1 (!%p239_p3), %v821_v56 }
   0x8   : > { %782 = vmatpush3.bf16.msra.mxu0 (!%p239_p3), %v821_v56  ;;  %795 = vmatpush3.bf16.msra.mxu1 (!%p239_p3), %v821_v56 }
   0x9   : > { %783 = vmatprep.subr.bf16.mxu0 (!%p239_p3), %v822_v57  ;;  %794 = vmatprep.subr.bf16.mxu1 (!%p239_p3), %v822_v57 }
   0xc   : > { %784 = vmatpush3.bf16.msra.mxu0 (!%p239_p3), %v822_v57  ;;  %796 = vmatpush3.bf16.msra.mxu1 (!%p239_p3), %v822_v57 }
   0xe   : > { %s1101_s22 = smov (!%p284_p4, %s760_s22), 15 }
   0xf   : > { %s761_s23 = sshll.u32 %s1101_s22, 3 }
  0x10   : > { %s290_s26 = scalar_lea.vmem %s1090_s0, %s761_s23  ;;  %s1063_s14 = scalar_lea.vmem %s1095_s5, %s761_s23 }
  0x11   : > { %v314_v0 = vld [vmem:[%s290_s26] sm:$0xff]  ;;  %v315_v2 = vld [vmem:[%s290_s26 + $0x8] sm:$0xff]  ;;  %v316_v8 = vld [vmem:[%s290_s26 + $0x10] sm:$0xff] }
  0x12   : > { %v318_v1 = vld [vmem:[%s290_s26 + $0x20] sm:$0xff]  ;;  %v323_v3 = vsel %vm322_vm0, %v314_v0, 0.0  ;;  %v319_v5 = vld [vmem:[%s290_s26 + $0x28] sm:$0xff]  ;;  %v326_v6 = vsel %vm322_vm0, %v315_v2, 0.0  ;;  %v317_v9 = vld [vmem:[%s290_s26 + $0x18] sm:$0xff]  ;;  %v329_v10 = vsel %vm322_vm0, %v316_v8, 0.0 }
  0x13   : > { %v335_v4 = vsel %vm322_vm0, %v318_v1, 0.0  ;;  %324 = vadd.xlane.f32.xlu0 %v323_v3  ;;  %v338_v7 = vsel %vm322_vm0, %v319_v5, 0.0  ;;  %v332_v11 = vsel %vm322_vm0, %v317_v9, 0.0  ;;  %v320_v12 = vld [vmem:[%s290_s26 + $0x30] sm:$0xff]  ;;  %v321_v13 = vld [vmem:[%s290_s26 + $0x38] sm:$0xff] }
  0x14   : > { %336 = vadd.xlane.f32.xlu1 %v335_v4  ;;  %v341_v14 = vsel %vm322_vm0, %v320_v12, 0.0  ;;  %v344_v15 = vsel %vm322_vm0, %v321_v13, 0.0 }
  0x17   : > { %327 = vadd.xlane.f32.xlu0 %v326_v6 }
  0x18   : > { %339 = vadd.xlane.f32.xlu1 %v338_v7 }
  0x1b   : > { %330 = vadd.xlane.f32.xlu0 %v329_v10 }
  0x1c   : > { %333 = vadd.xlane.f32.xlu1 %v332_v11 }
  0x1f   : > { %342 = vadd.xlane.f32.xlu0 %v341_v14 }
  0x20   : > { %345 = vadd.xlane.f32.xlu1 %v344_v15 }
  0xa0   : > { %v325_v16 = vpop.xlane.xlu0 %324 }
  0xa1   : > { %v337_v17 = vpop.xlane.xlu1 %336  ;;  %v348_v18 = vmul.f32 0.03125, %v325_v16 }
  0xa2   : > { %v352_v19 = vmul.f32 0.03125, %v337_v17 }
  0xa3   : > { %v943_v20 = vsub.f32 %v314_v0, %v348_v18 }
  0xa4   : > { %v945_v21 = vsub.f32 %v318_v1, %v352_v19  ;;  %v328_v22 = vpop.xlane.xlu0 %327  ;;  %v764_v19 = vld [vmem:[%s1092_s2] ss:$0 sm:$0xff] }
  0xa5   : > { %v340_v23 = vpop.xlane.xlu1 %339  ;;  %v349_v24 = vmul.f32 0.03125, %v328_v22  ;;  %v364_v26 = vmul.f32 %v943_v20, %v943_v20 }
  0xa6   : > { %v353_v25 = vmul.f32 0.03125, %v340_v23  ;;  %v368_v27 = vmul.f32 %v945_v21, %v945_v21 }
  0xa7   : > { %v951_v28 = vsub.f32 %v315_v2, %v349_v24  ;;  %v372_v30 = vsel %vm322_vm0, %v364_v26, 0.0 }
  0xa8   : > { %v953_v29 = vsub.f32 %v319_v5, %v353_v25  ;;  %373 = vadd.xlane.f32.xlu0 %v372_v30  ;;  %v331_v31 = vpop.xlane.xlu0 %330  ;;  %v384_v33 = vsel %vm322_vm0, %v368_v27, 0.0  ;;  %v765_v27 = vld [vmem:[%s1093_s3] ss:$0 sm:$0xff] }
  0xa9   : > { %v334_v32 = vpop.xlane.xlu1 %333  ;;  %v350_v34 = vmul.f32 0.03125, %v331_v31  ;;  %v365_v36 = vmul.f32 %v951_v28, %v951_v28 }
  0xaa   : > { %v351_v35 = vmul.f32 0.03125, %v334_v32  ;;  %v369_v37 = vmul.f32 %v953_v29, %v953_v29 }
  0xab   : > { %v961_v38 = vsub.f32 %v316_v8, %v350_v34  ;;  %v375_v40 = vsel %vm322_vm0, %v365_v36, 0.0 }
  0xac   : > { %v963_v39 = vsub.f32 %v317_v9, %v351_v35  ;;  %385 = vadd.xlane.f32.xlu0 %v384_v33  ;;  %376 = vadd.xlane.f32.xlu1 %v375_v40  ;;  %v343_v41 = vpop.xlane.xlu0 %342  ;;  %v387_v43 = vsel %vm322_vm0, %v369_v37, 0.0 }
  0xad   : > { %v346_v42 = vpop.xlane.xlu1 %345  ;;  %v354_v44 = vmul.f32 0.03125, %v343_v41  ;;  %v366_v46 = vmul.f32 %v961_v38, %v961_v38 }
  0xae   : > { %v355_v45 = vmul.f32 0.03125, %v346_v42  ;;  %v367_v47 = vmul.f32 %v963_v39, %v963_v39 }
  0xaf   : > { %v971_v48 = vsub.f32 %v320_v12, %v354_v44  ;;  %v378_v50 = vsel %vm322_vm0, %v366_v46, 0.0 }
  0xb0   : > { %v973_v49 = vsub.f32 %v321_v13, %v355_v45  ;;  %388 = vadd.xlane.f32.xlu1 %v387_v43  ;;  %379 = vadd.xlane.f32.xlu0 %v378_v50  ;;  %v381_v51 = vsel %vm322_vm0, %v367_v47, 0.0 }
  0xb1   : > { %v370_v52 = vmul.f32 %v971_v48, %v971_v48 }
  0xb2   : > { %v371_v53 = vmul.f32 %v973_v49, %v973_v49 }
  0xb3   : > { %v390_v54 = vsel %vm322_vm0, %v370_v52, 0.0 }
  0xb4   : > { %382 = vadd.xlane.f32.xlu1 %v381_v51  ;;  %391 = vadd.xlane.f32.xlu0 %v390_v54  ;;  %v393_v55 = vsel %vm322_vm0, %v371_v53, 0.0 }
  0xb8   : > { %394 = vadd.xlane.f32.xlu1 %v393_v55 }
 0x135   : > { %v374_v58 = vpop.xlane.xlu0 %373 }
 0x136   : > { %v396_v59 = vmul.f32 0.03125, %v374_v58 }
 0x138   : > { %v404_v60 = vadd.f32 1e-05, %v396_v59 }
 0x139   : > { %v377_v61 = vpop.xlane.xlu1 %376  ;;  %v386_v62 = vpop.xlane.xlu0 %385 }
 0x13a   : > { %823 = vrsqrt.f32 %v404_v60  ;;  %v397_v63 = vmul.f32 0.03125, %v377_v61  ;;  %v400_v0 = vmul.f32 0.03125, %v386_v62 }
 0x13c   : > { %v405_v1 = vadd.f32 1e-05, %v397_v63  ;;  %v408_v2 = vadd.f32 1e-05, %v400_v0 }
 0x13d   : > { %v389_v3 = vpop.xlane.xlu1 %388  ;;  %v380_v4 = vpop.xlane.xlu0 %379 }
 0x13e   : > { %825 = vrsqrt.f32 %v405_v1  ;;  %v401_v5 = vmul.f32 0.03125, %v389_v3  ;;  %v398_v6 = vmul.f32 0.03125, %v380_v4 }
 0x13f   : > { %827 = vrsqrt.f32 %v408_v2 }
 0x140   : > { %v409_v7 = vadd.f32 1e-05, %v401_v5  ;;  %v406_v8 = vadd.f32 1e-05, %v398_v6 }
 0x141   : > { %v383_v9 = vpop.xlane.xlu1 %382  ;;  %v392_v10 = vpop.xlane.xlu0 %391 }
 0x142   : > { %829 = vrsqrt.f32 %v409_v7  ;;  %v399_v11 = vmul.f32 0.03125, %v383_v9  ;;  %v402_v12 = vmul.f32 0.03125, %v392_v10 }
 0x143   : > { %831 = vrsqrt.f32 %v406_v8 }
 0x144   : > { %v824_v13 = vpop.eup %823  ;;  %v407_v14 = vadd.f32 1e-05, %v399_v11  ;;  %v410_v15 = vadd.f32 1e-05, %v402_v12 }
 0x145   : > { %v395_v16 = vpop.xlane.xlu1 %394  ;;  %v420_v17 = vmul.f32 %v824_v13, %v943_v20 }
 0x146   : > { %833 = vrsqrt.f32 %v407_v14  ;;  %v403_v18 = vmul.f32 0.03125, %v395_v16 }
 0x147   : > { %835 = vrsqrt.f32 %v410_v15  ;;  %v435_v26 = vmul.f32 %v764_v19, %v420_v17 }
 0x148   : > { %v826_v22 = vpop.eup %825  ;;  %v411_v23 = vadd.f32 1e-05, %v403_v18 }
 0x149   : > { %v828_v24 = vpop.eup %827  ;;  %v421_v25 = vmul.f32 %v826_v22, %v951_v28  ;;  %v450_v33 = vadd.f32 %v765_v27, %v435_v26 }
 0x14a   : > { %837 = vrsqrt.f32 %v411_v23  ;;  %v424_v20 = vmul.f32 %v828_v24, %v945_v21 }
 0x14b   : > { %v436_v30 = vmul.f32 %v764_v19, %v421_v25 }
 0x14c   : > { %v830_v31 = vpop.eup %829  ;;  %v439_v36 = vmul.f32 %v764_v19, %v424_v20 }
 0x14d   : > { %v832_v32 = vpop.eup %831  ;;  %v451_v34 = vadd.f32 %v765_v27, %v436_v30  ;;  %v425_v35 = vmul.f32 %v830_v31, %v953_v29 }
 0x14e   : > { %v422_v37 = vmul.f32 %v832_v32, %v961_v38  ;;  %v454_v44 = vadd.f32 %v765_v27, %v439_v36 }
 0x14f   : > { %v458_v40 = vpack.c.bf16 %v451_v34, %v450_v33  ;;  %v440_v28 = vmul.f32 %v764_v19, %v425_v35 }
 0x150   : > { %v834_v41 = vpop.eup %833  ;;  %v437_v45 = vmul.f32 %v764_v19, %v422_v37 }
 0x151   : > { %v836_v42 = vpop.eup %835  ;;  %v423_v43 = vmul.f32 %v834_v41, %v963_v39  ;;  %785 = vmatprep.mubr.msk.bf16.mxu0 %vm322_vm0, %v458_v40  ;;  %v455_v21 = vadd.f32 %v765_v27, %v440_v28 }
 0x152   : > { %v426_v46 = vmul.f32 %v836_v42, %v971_v48  ;;  %v452_v38 = vadd.f32 %v765_v27, %v437_v45  ;;  %v766_v48 = vld [vmem:[%s1094_s4] ss:$0 sm:$0xff] }
 0x153   : > { %v460_v47 = vpack.c.bf16 %v455_v21, %v454_v44  ;;  %v438_v50 = vmul.f32 %v764_v19, %v423_v43 }
 0x154   : > { %v838_v51 = vpop.eup %837  ;;  %v441_v53 = vmul.f32 %v764_v19, %v426_v46 }
 0x155   : > { %v427_v29 = vmul.f32 %v838_v51, %v973_v49  ;;  %789 = vmatprep.mubr.msk.bf16.mxu1 %vm322_vm0, %v460_v47  ;;  %v453_v52 = vadd.f32 %v765_v27, %v438_v50 }
 0x156   : > { %v456_v39 = vadd.f32 %v765_v27, %v441_v53 }
 0x157   : > { %v459_v54 = vpack.c.bf16 %v453_v52, %v452_v38  ;;  %v442_v55 = vmul.f32 %v764_v19, %v427_v29 }
 0x159   : > { %786 = vmatmul.mubr.msk.bf16.vlgmr.msra.gmra.mrb[0].mxu0 %vm322_vm0, %v459_v54  ;;  %v457_v56 = vadd.f32 %v765_v27, %v442_v55 }
 0x15b   : > { %v461_v57 = vpack.c.bf16 %v457_v56, %v456_v39 }
 0x15d   : > { %790 = vmatmul.mubr.msk.bf16.vlgmr.msra.gmra.mrb[0].mxu1 %vm322_vm0, %v461_v57 }
 0x22c   : > { %v787_v58 = vpop.f32.mrb[0].mxu0 }
 0x22d   : > { %v1010_v49 = vadd.f32 %v787_v58, %v766_v48  ;;  %v531_v59 = vpop.f32.mrb[1].mxu0 }
 0x22e   : > { %v1012_v60 = vadd.f32 %v766_v48, %v531_v59  ;;  %v788_v61 = vpop.f32.mrb[2].mxu0 }
 0x22f   : > { %v564_v62 = vmul.f32 %v1010_v49, %v1010_v49  ;;  %v1016_v63 = vadd.f32 %v788_v61, %v766_v48  ;;  %v534_v0 = vpop.f32.mrb[3].mxu0 }
 0x230   : > { %v562_v1 = vmul.f32 %v1012_v60, %v1012_v60  ;;  %v1020_v2 = vadd.f32 %v766_v48, %v534_v0  ;;  %v791_v3 = vpop.f32.mrb[0].mxu1 }
 0x231   : > { %v572_v4 = vmul.f32 %v564_v62, %v1010_v49  ;;  %v565_v5 = vmul.f32 %v1016_v63, %v1016_v63  ;;  %v1025_v6 = vadd.f32 %v791_v3, %v766_v48  ;;  %v547_v7 = vpop.f32.mrb[1].mxu1 }
 0x232   : > { %v570_v8 = vmul.f32 %v562_v1, %v1012_v60  ;;  %v563_v9 = vmul.f32 %v1020_v2, %v1020_v2  ;;  %v1030_v10 = vadd.f32 %v766_v48, %v547_v7  ;;  %v792_v11 = vpop.f32.mrb[2].mxu1 }
 0x233   : > { %v580_v12 = vmul.f32 0.044715, %v572_v4  ;;  %v573_v13 = vmul.f32 %v565_v5, %v1016_v63  ;;  %v568_v14 = vmul.f32 %v1025_v6, %v1025_v6  ;;  %v1035_v15 = vadd.f32 %v792_v11, %v766_v48  ;;  %v550_v16 = vpop.f32.mrb[3].mxu1 }
 0x234   : > { %v578_v17 = vmul.f32 0.044715, %v570_v8  ;;  %v571_v18 = vmul.f32 %v563_v9, %v1020_v2  ;;  %v566_v19 = vmul.f32 %v1030_v10, %v1030_v10  ;;  %v1040_v22 = vadd.f32 %v766_v48, %v550_v16 }
 0x235   : > { %v588_v23 = vadd.f32 %v580_v12, %v1010_v49  ;;  %v581_v24 = vmul.f32 0.044715, %v573_v13  ;;  %v576_v25 = vmul.f32 %v568_v14, %v1025_v6  ;;  %v569_v26 = vmul.f32 %v1035_v15, %v1035_v15 }
 0x236   : > { %v586_v27 = vadd.f32 %v578_v17, %v1012_v60  ;;  %v579_v20 = vmul.f32 0.044715, %v571_v18  ;;  %v574_v30 = vmul.f32 %v566_v19, %v1030_v10  ;;  %v567_v31 = vmul.f32 %v1040_v22, %v1040_v22 }
 0x237   : > { %v596_v32 = vmul.f32 0.7978846, %v588_v23  ;;  %v589_v33 = vadd.f32 %v581_v24, %v1016_v63  ;;  %v584_v34 = vmul.f32 0.044715, %v576_v25  ;;  %v577_v35 = vmul.f32 %v569_v26, %v1035_v15 }
 0x238   : > { %v594_v36 = vmul.f32 0.7978846, %v586_v27  ;;  %v587_v37 = vadd.f32 %v579_v20, %v1020_v2  ;;  %v582_v40 = vmul.f32 0.044715, %v574_v30  ;;  %v575_v28 = vmul.f32 %v567_v31, %v1040_v22 }
 0x239   : > { %839 = vtanh.f32 %v596_v32  ;;  %v597_v41 = vmul.f32 0.7978846, %v589_v33  ;;  %v592_v42 = vadd.f32 %v584_v34, %v1025_v6  ;;  %v585_v43 = vmul.f32 0.044715, %v577_v35 }
 0x23a   : > { %841 = vtanh.f32 %v594_v36  ;;  %v595_v44 = vmul.f32 0.7978846, %v587_v37  ;;  %v590_v21 = vadd.f32 %v582_v40, %v1030_v10  ;;  %v583_v45 = vmul.f32 0.044715, %v575_v28 }
 0x23b   : > { %843 = vtanh.f32 %v597_v41  ;;  %v600_v46 = vmul.f32 0.7978846, %v592_v42  ;;  %v593_v47 = vadd.f32 %v585_v43, %v1035_v15 }
 0x23c   : > { %845 = vtanh.f32 %v595_v44  ;;  %v598_v50 = vmul.f32 0.7978846, %v590_v21  ;;  %v591_v51 = vadd.f32 %v583_v45, %v1040_v22 }
 0x23d   : > { %847 = vtanh.f32 %v600_v46  ;;  %v601_v29 = vmul.f32 0.7978846, %v593_v47 }
 0x23e   : > { %849 = vtanh.f32 %v598_v50  ;;  %v599_v38 = vmul.f32 0.7978846, %v591_v51 }
 0x23f   : > { %851 = vtanh.f32 %v601_v29 }
 0x240   : > { %853 = vtanh.f32 %v599_v38 }
 0x243   : > { %v840_v52 = vpop.eup %839 }
 0x244   : > { %v842_v53 = vpop.eup %841  ;;  %v612_v54 = vadd.f32 1.0, %v840_v52 }
 0x245   : > { %v844_v55 = vpop.eup %843  ;;  %v610_v39 = vadd.f32 1.0, %v842_v53 }
 0x246   : > { %v846_v56 = vpop.eup %845  ;;  %v620_v57 = vmul.f32 0.5, %v612_v54  ;;  %v613_v48 = vadd.f32 1.0, %v844_v55 }
 0x247   : > { %v848_v58 = vpop.eup %847  ;;  %v618_v59 = vmul.f32 0.5, %v610_v39  ;;  %v611_v61 = vadd.f32 1.0, %v846_v56 }
 0x248   : > { %v850_v62 = vpop.eup %849  ;;  %v628_v0 = vmul.f32 %v620_v57, %v1010_v49  ;;  %v621_v1 = vmul.f32 0.5, %v613_v48  ;;  %v616_v3 = vadd.f32 1.0, %v848_v58 }
 0x249   : > { %v852_v4 = vpop.eup %851  ;;  %v626_v5 = vmul.f32 %v618_v59, %v1012_v60  ;;  %v619_v7 = vmul.f32 0.5, %v611_v61  ;;  %v614_v8 = vadd.f32 1.0, %v850_v62 }
 0x24a   : > { %v854_v9 = vpop.eup %853  ;;  %636 = vst [vmem:[%s1063_s14 + $0x10] sm:$0xff] %v628_v0  ;;  %v629_v11 = vmul.f32 %v621_v1, %v1016_v63  ;;  %v624_v12 = vmul.f32 0.5, %v616_v3  ;;  %v617_v13 = vadd.f32 1.0, %v852_v4 }
 0x24b   : > { %634 = vst [vmem:[%s1063_s14] sm:$0xff] %v626_v5  ;;  %v627_v49 = vmul.f32 %v619_v7, %v1020_v2  ;;  %v622_v14 = vmul.f32 0.5, %v614_v8  ;;  %v615_v16 = vadd.f32 1.0, %v854_v9 }
 0x24c   : > { %637 = vst [vmem:[%s1063_s14 + $0x18] sm:$0xff] %v629_v11  ;;  %v632_v60 = vmul.f32 %v624_v12, %v1025_v6  ;;  %v625_v17 = vmul.f32 0.5, %v617_v13 }
 0x24d   : > { %635 = vst [vmem:[%s1063_s14 + $0x8] sm:$0xff] %v627_v49  ;;  %v630_v18 = vmul.f32 %v622_v14, %v1030_v10  ;;  %v623_v19 = vmul.f32 0.5, %v615_v16 }
 0x24e   : > { %640 = vst [vmem:[%s1063_s14 + $0x30] sm:$0xff] %v632_v60  ;;  %v633_v63 = vmul.f32 %v625_v17, %v1035_v15 }
 0x24f   : > { %638 = vst [vmem:[%s1063_s14 + $0x20] sm:$0xff] %v630_v18  ;;  %v631_v23 = vmul.f32 %v623_v19, %v1040_v22 }
 0x250   : > { %641 = vst [vmem:[%s1063_s14 + $0x38] sm:$0xff] %v633_v63 }
 0x251   : > { %639 = vst [vmem:[%s1063_s14 + $0x28] sm:$0xff] %v631_v23 }
 0x252 PF: > { %s15_s20 = sadd.s32 1, %s877_s20   ;;  %s1096_s18 = smov %s873_s19 }
 0x253   : > { %p12_p5 = scmp.ge.s32.totalorder %s15_s20, 4   ;;  %s1097_s19 = smov %s1099_s21 }
 0x255   :  { %14 = sbr.rel (!%p12_p5) target bundleno = 2 (0x2), region = 76 }

// kernel: _lambda_.34
= control target key start
LH: loop header
LB: loop body
LE: loop exit
PB: predicated region body
PF: predicated region fallthrough
CT: control target
= control target key end

     0   :  { %s664_s15 = smov 0   ;;  %s666_s16 = smov 0   ;;  %s734_s0 = inlined_call_operand.vmem [shape: f32[32,128], index: 0, kind: input, shape index: {}]   ;;  %s735_s1 = inlined_call_operand.vmem [shape: bf16[128,64], index: 1, kind: input, shape index: {}]   ;;  %s736_s2 = inlined_call_operand.vmem [shape: f32[1,128], index: 2, kind: input, shape index: {}]   ;;  %s737_s3 = inlined_call_operand.vmem [shape: f32[1,128], index: 3, kind: input, shape index: {}]   ;;  %s738_s4 = inlined_call_operand.vmem [shape: f32[32,64], index: 4, kind: output, shape index: {}]  }
   0x1   :  { %s668_s17 = smov 0  }
   0x2 LB: > { %s33_s18 = sadd.s32 1, %s631_s16  ;;  %p529_p0 = scmp.ge.s32.totalorder %s635_s17, 1  ;;  %s635_s17 = sphi %s668_s17, %s14_s17   ;;  %s631_s16 = sphi %s666_s16, %s740_s16   ;;  %s627_s15 = sphi %s664_s15, %s739_s15  }
   0x3   : > { %p35_p1 = scmp.ge.s32.totalorder %s33_s18, 2  ;;  %p205_p2 = scmp.lt.s32.totalorder %s635_s17, 3 }
   0x5   : > { %s742_s18 = smov (%p35_p1, %s33_s18), 0  ;;  %p206_p3 = pnand %p529_p0, %p205_p2 }
   0x6   : > { %s530_s19 = sshll.u32 (!%p206_p3), %s627_s15, 1  ;;  %v601_v2 = vld [vmem:[%s735_s1] sm:$0xff] (!%p206_p3)   ;;  %v637_v3 = vmov (!%p206_p3), 0.0   ;;  %v602_v12 = vld [vmem:[%s735_s1 + $0x8] sm:$0xff] (!%p206_p3)   ;;  %v603_v13 = vld [vmem:[%s735_s1 + $0x10] sm:$0xff] (!%p206_p3)   ;;  %vm638_vm0 = vmmov (!%p206_p3), 0  }
   0x7   : > { %209 = sbr.rel (%p206_p3) target bundleno = 550 (0x226), region = 36  ;;  %p246_p4 = scmp.lt.s32.totalorder (!%p206_p3), %s530_s19, 3  ;;  %555 = vmatprep.subr.bf16.mxu0 (!%p206_p3), %v637_v3  ;;  %v604_v14 = vld [vmem:[%s735_s1 + $0x18] sm:$0xff] (!%p206_p3)   ;;  %v605_v15 = vld [vmem:[%s735_s1 + $0x20] sm:$0xff] (!%p206_p3)   ;;  %571 = vmatprep.mubr.msk.bf16.mxu0 (!%p206_p3), %vm638_vm0, %v637_v3  ;;  %v606_v16 = vld [vmem:[%s735_s1 + $0x28] sm:$0xff] (!%p206_p3)   ;;  %vm422_vm1 = vcmask (!%p206_p3), 523264  }
   0x8   : > { %556 = vmatpush3.bf16.msra.mxu0 (!%p206_p3), %v601_v2  ;;  %v607_v17 = vld [vmem:[%s735_s1 + $0x30] sm:$0xff] (!%p206_p3)   ;;  %v608_v18 = vld [vmem:[%s735_s1 + $0x38] sm:$0xff] (!%p206_p3)   ;;  %v534_v27 = vld [vmem:[%s736_s2] ss:$0 sm:$0xff] (!%p206_p3) }
   0x9   : > { %557 = vmatprep.subr.bf16.mxu0 (!%p206_p3), %v637_v3  ;;  %v535_v31 = vld [vmem:[%s737_s3] ss:$0 sm:$0xff] (!%p206_p3) }
   0xc   : > { %558 = vmatpush3.bf16.msra.mxu0 (!%p206_p3), %v602_v12 }
   0xd   : > { %559 = vmatprep.subr.bf16.mxu0 (!%p206_p3), %v637_v3 }
   0xe   : > { %s744_s19 = smov (!%p246_p4, %s530_s19), 3 }
   0xf   : > { %s531_s20 = sshll.u32 %s744_s19, 3 }
  0x10   : > { %s252_s23 = scalar_lea.vmem %s734_s0, %s531_s20  ;;  %560 = vmatpush3.bf16.msra.mxu0 %v603_v13  ;;  %s270_s25 = scalar_lea.vmem %s738_s4, %s531_s20 }
  0x11   : > { %v273_v0 = vld [vmem:[%s252_s23] sm:$0xff]  ;;  %v274_v1 = vld [vmem:[%s252_s23 + $0x8] sm:$0xff]  ;;  %561 = vmatprep.subr.bf16.mxu0 %v637_v3 }
  0x12   : > { %275 = vadd.xlane.f32.xlu0 %v273_v0 }
  0x14   : > { %562 = vmatpush3.bf16.msra.mxu0 %v604_v14 }
  0x15   : > { %563 = vmatprep.subr.bf16.mxu0 %v637_v3 }
  0x16   : > { %277 = vadd.xlane.f32.xlu0 %v274_v1 }
  0x18   : > { %564 = vmatpush3.bf16.msra.mxu0 %v605_v15 }
  0x19   : > { %565 = vmatprep.subr.bf16.mxu0 %v637_v3 }
  0x1c   : > { %566 = vmatpush3.bf16.msra.mxu0 %v606_v16 }
  0x1d   : > { %567 = vmatprep.subr.bf16.mxu0 %v637_v3 }
  0x20   : > { %568 = vmatpush3.bf16.msra.mxu0 %v607_v17 }
  0x21   : > { %569 = vmatprep.subr.bf16.mxu0 %v637_v3 }
  0x24   : > { %570 = vmatpush3.bf16.msra.mxu0 %v608_v18 }
  0x9f   : > { %v276_v4 = vpop.xlane.xlu0 %275 }
  0xa0   : > { %v280_v5 = vmul.f32 0.0078125, %v276_v4 }
  0xa2   : > { %v282_v6 = vsub.f32 %v273_v0, %v280_v5 }
  0xa3   : > { %v278_v7 = vpop.xlane.xlu0 %277 }
  0xa4   : > { %v281_v8 = vmul.f32 0.0078125, %v278_v7  ;;  %v284_v9 = vmul.f32 %v282_v6, %v282_v6 }
  0xa6   : > { %v283_v10 = vsub.f32 %v274_v1, %v281_v8  ;;  %286 = vadd.xlane.f32.xlu1 %v284_v9 }
  0xa8   : > { %v285_v11 = vmul.f32 %v283_v10, %v283_v10 }
  0xaa   : > { %288 = vadd.xlane.f32.xlu1 %v285_v11 }
 0x133   : > { %v287_v19 = vpop.xlane.xlu1 %286 }
 0x134   : > { %v290_v20 = vmul.f32 0.0078125, %v287_v19 }
 0x136   : > { %v292_v21 = vadd.f32 1e-05, %v290_v20 }
 0x137   : > { %v289_v22 = vpop.xlane.xlu1 %288 }
 0x138   : > { %609 = vrsqrt.f32 %v292_v21  ;;  %v291_v23 = vmul.f32 0.0078125, %v289_v22 }
 0x13a   : > { %v293_v24 = vadd.f32 1e-05, %v291_v23 }
 0x13c   : > { %611 = vrsqrt.f32 %v293_v24 }
 0x142   : > { %v610_v25 = vpop.eup %609 }
 0x143   : > { %v296_v26 = vmul.f32 %v610_v25, %v282_v6 }
 0x145   : > { %v305_v30 = vmul.f32 %v534_v27, %v296_v26 }
 0x146   : > { %v612_v28 = vpop.eup %611 }
 0x147   : > { %v297_v29 = vmul.f32 %v612_v28, %v283_v10  ;;  %v314_v33 = vadd.f32 %v535_v31, %v305_v30 }
 0x149   : > { %v306_v32 = vmul.f32 %v534_v27, %v297_v29 }
 0x14b   : > { %v315_v34 = vadd.f32 %v535_v31, %v306_v32 }
 0x14d   : > { %v316_v35 = vpack.c.bf16 %v315_v34, %v314_v33 }
 0x14f   : > { %572 = vmatmul.mubr.bf16.vlgmr.msra.gmra.mrb[0].mxu0 %v316_v35 }
 0x222   : > { %v415_v36 = vpop.f32.mrb[0].mxu0 }
 0x223   : > { %423 = vst.msk [vmem:[%s270_s25] sm:$0xff] %vm422_vm1, %v415_v36  ;;  %v573_v37 = vpop.f32.mrb[1].mxu0 }
 0x224   : > { %v418_v38 = vpop.f32.mrb[2].mxu0 }
 0x225   : > { %424 = vst.msk [vmem:[%s270_s25 + $0x8] sm:$0xff] %vm422_vm1, %v418_v38  ;;  %v574_v39 = vpop.f32.mrb[3].mxu0 }
 0x226 PF: > { %s14_s17 = sadd.s32 1, %s635_s17   ;;  %s739_s15 = smov %s631_s16 }
 0x227   : > { %p11_p5 = scmp.ge.s32.totalorder %s14_s17, 4   ;;  %s740_s16 = smov %s742_s18 }
 0x229   :  { %13 = sbr.rel (!%p11_p5) target bundleno = 2 (0x2), region = 69 }

// kernel: _lambda_.35
= control target key start
LH: loop header
LB: loop body
LE: loop exit
PB: predicated region body
PF: predicated region fallthrough
CT: control target
= control target key end

     0   :  { %s736_s18 = smov 0   ;;  %s738_s19 = smov 0   ;;  %s813_s0 = inlined_call_operand.vmem [shape: f32[32,64], index: 0, kind: input, shape index: {}]   ;;  %s814_s1 = inlined_call_operand.vmem [shape: bf16[64,192], index: 1, kind: input, shape index: {}]   ;;  %s815_s2 = inlined_call_operand.vmem [shape: f32[1,64], index: 2, kind: input, shape index: {}]   ;;  %s816_s3 = inlined_call_operand.vmem [shape: f32[1,64], index: 3, kind: input, shape index: {}]   ;;  %s817_s4 = inlined_call_operand.vmem [shape: f32[1,192], index: 4, kind: input, shape index: {}]   ;;  %s818_s5 = inlined_call_operand.vmem [shape: f32[32,192], index: 5, kind: output, shape index: {}]  }
   0x1   :  { %s740_s20 = smov 0  }
   0x2 LB: > { %s34_s21 = sadd.s32 1, %s699_s19  ;;  %p620_p0 = scmp.ge.s32.totalorder %s703_s20, 1  ;;  %s703_s20 = sphi %s740_s20, %s15_s20   ;;  %s699_s19 = sphi %s738_s19, %s820_s19   ;;  %s695_s18 = sphi %s736_s18, %s819_s18  }
   0x3   : > { %p36_p1 = scmp.ge.s32.totalorder %s34_s21, 2  ;;  %p243_p2 = scmp.lt.s32.totalorder %s703_s20, 3 }
   0x5   : > { %s822_s21 = smov (%p36_p1, %s34_s21), 0  ;;  %p244_p3 = pnand %p620_p0, %p243_p2 }
   0x6   : > { %s621_s22 = sshll.u32 (!%p244_p3), %s695_s18, 1  ;;  %vm334_vm0 = vcmask (!%p244_p3), 523264   ;;  %v665_v14 = vld [vmem:[%s814_s1 + $0x4] ss:$8 sps:$4 sm:$0xff] (!%p244_p3)   ;;  %v667_v15 = vld [vmem:[%s814_s1] ss:$8 sps:$4 sm:$0xff] (!%p244_p3)   ;;  %v391_v40 = vlaneseq (!%p244_p3) }
   0x7   : > { %247 = sbr.rel (%p244_p3) target bundleno = 555 (0x22b), region = 40  ;;  %p294_p4 = scmp.lt.s32.totalorder (!%p244_p3), %s621_s22, 3  ;;  %444 = vmatprep.subr.bf16.mxu0 (!%p244_p3), %v665_v14  ;;  %v668_v16 = vld [vmem:[%s814_s1 + $0x14] ss:$8 sps:$4 sm:$0xff] (!%p244_p3)   ;;  %v670_v17 = vld [vmem:[%s814_s1 + $0x10] ss:$8 sps:$4 sm:$0xff] (!%p244_p3)  }
   0x8   : > { %445 = vmatpush1.bf16.msra.mxu0 (!%p244_p3), %v667_v15  ;;  %v671_v18 = vld [vmem:[%s814_s1 + $0x24] ss:$8 sps:$4 sm:$0xff] (!%p244_p3)   ;;  %v673_v19 = vld [vmem:[%s814_s1 + $0x20] ss:$8 sps:$4 sm:$0xff] (!%p244_p3)   ;;  %v674_v20 = vld [vmem:[%s814_s1 + $0x34] ss:$8 sps:$4 sm:$0xff] (!%p244_p3)  }
   0x9   : > { %446 = vmatprep.subr.bf16.mxu0 (!%p244_p3), %v668_v16  ;;  %v676_v21 = vld [vmem:[%s814_s1 + $0x30] ss:$8 sps:$4 sm:$0xff] (!%p244_p3)   ;;  %v705_v22 = vmov (!%p244_p3), 0   ;;  %v626_v31 = vld [vmem:[%s815_s2] ss:$0 sm:$0xff] (!%p244_p3)  ;;  %v392_v41 = vshrl.u32 (!%p244_p3), %v391_v40, 7 }
   0xa   : > { %476 = vmatprep.mubr.bf16.mxu0 (!%p244_p3), %v705_v22  ;;  %v627_v35 = vld [vmem:[%s816_s3] ss:$0 sm:$0xff] (!%p244_p3) }
   0xb   : > { %v393_v42 = vsub.s32 (!%p244_p3), 0, %v392_v41  ;;  %v389_v43 = vld [vmem:[%s817_s4] sm:$0x3] (!%p244_p3)  ;;  %v397_v44 = vsub.s32 (!%p244_p3), 1, %v392_v41 }
   0xc   : > { %447 = vmatpush1.bf16.msra.mxu0 (!%p244_p3), %v670_v17 }
   0xd   : > { %448 = vmatprep.subr.bf16.mxu0 (!%p244_p3), %v671_v18  ;;  %v394_v45 = vrot.slane (!%p244_p3), %v389_v43, %v393_v42  ;;  %v398_v46 = vrot.slane (!%p244_p3), %v389_v43, %v397_v44 }
   0xe   : > { %s824_s22 = smov (!%p294_p4, %s621_s22), 3 }
   0xf   : > { %s622_s23 = sshll.u32 %s824_s22, 3  ;;  %s639_s28 = sshll.u32 %s824_s22, 4 }
  0x10   : > { %s300_s26 = scalar_lea.vmem %s813_s0, %s622_s23  ;;  %449 = vmatpush1.bf16.msra.mxu0 %v673_v19  ;;  %s328_s6 = scalar_lea.vmem %s818_s5, %s639_s28 }
  0x11   : > { %v332_v0 = vld [vmem:[%s300_s26] sm:$0xff]  ;;  %v333_v1 = vld [vmem:[%s300_s26 + $0x8] sm:$0xff]  ;;  %450 = vmatprep.subr.bf16.mxu0 %v674_v20 }
  0x12   : > { %v335_v2 = vsel %vm334_vm0, %v332_v0, 0.0  ;;  %v338_v3 = vsel %vm334_vm0, %v333_v1, 0.0 }
  0x13   : > { %336 = vadd.xlane.f32.xlu0 %v335_v2 }
  0x14   : > { %451 = vmatpush1.bf16.msra.mxu0 %v676_v21 }
  0x17   : > { %339 = vadd.xlane.f32.xlu0 %v338_v3 }
  0xa0   : > { %v337_v4 = vpop.xlane.xlu0 %336 }
  0xa1   : > { %v342_v5 = vmul.f32 0.015625, %v337_v4 }
  0xa3   : > { %v344_v6 = vsub.f32 %v332_v0, %v342_v5 }
  0xa4   : > { %v340_v7 = vpop.xlane.xlu0 %339 }
  0xa5   : > { %v343_v8 = vmul.f32 0.015625, %v340_v7  ;;  %v346_v9 = vmul.f32 %v344_v6, %v344_v6 }
  0xa7   : > { %v345_v10 = vsub.f32 %v333_v1, %v343_v8  ;;  %v348_v11 = vsel %vm334_vm0, %v346_v9, 0.0 }
  0xa8   : > { %349 = vadd.xlane.f32.xlu1 %v348_v11 }
  0xa9   : > { %v347_v12 = vmul.f32 %v345_v10, %v345_v10 }
  0xab   : > { %v351_v13 = vsel %vm334_vm0, %v347_v12, 0.0 }
  0xac   : > { %352 = vadd.xlane.f32.xlu1 %v351_v13 }
 0x135   : > { %v350_v23 = vpop.xlane.xlu1 %349 }
 0x136   : > { %v354_v24 = vmul.f32 0.015625, %v350_v23 }
 0x138   : > { %v356_v25 = vadd.f32 1e-05, %v354_v24 }
 0x139   : > { %v353_v26 = vpop.xlane.xlu1 %352 }
 0x13a   : > { %677 = vrsqrt.f32 %v356_v25  ;;  %v355_v27 = vmul.f32 0.015625, %v353_v26 }
 0x13c   : > { %v357_v28 = vadd.f32 1e-05, %v355_v27 }
 0x13e   : > { %679 = vrsqrt.f32 %v357_v28 }
 0x144   : > { %v678_v29 = vpop.eup %677 }
 0x145   : > { %v360_v30 = vmul.f32 %v678_v29, %v344_v6 }
 0x147   : > { %v369_v34 = vmul.f32 %v626_v31, %v360_v30 }
 0x148   : > { %v680_v32 = vpop.eup %679 }
 0x149   : > { %v361_v33 = vmul.f32 %v680_v32, %v345_v10  ;;  %v378_v37 = vadd.f32 %v627_v35, %v369_v34 }
 0x14b   : > { %v370_v36 = vmul.f32 %v626_v31, %v361_v33 }
 0x14d   : > { %v379_v38 = vadd.f32 %v627_v35, %v370_v36 }
 0x14f   : > { %v380_v39 = vpack.c.bf16 %v379_v38, %v378_v37 }
 0x151   : > { %636 = vmatmul.mubr.msk.bf16.vlgmr.msra.gmra.mrb[0].mxu0 %vm334_vm0, %v380_v39 }
 0x224   : > { %v478_v47 = vpop.f32.mrb[0].mxu0 }
 0x225   : > { %v479_v48 = vadd.f32 %v478_v47, %v394_v45  ;;  %v480_v49 = vpop.f32.mrb[1].mxu0 }
 0x226   : > { %v481_v50 = vadd.f32 %v480_v49, %v398_v46  ;;  %v482_v51 = vpop.f32.mrb[2].mxu0 }
 0x227   : > { %487 = vst [vmem:[%s328_s6] sm:$0xff] %v479_v48  ;;  %v483_v52 = vadd.f32 %v482_v51, %v394_v45  ;;  %v484_v53 = vpop.f32.mrb[3].mxu0 }
 0x228   : > { %488 = vst.msk [vmem:[%s328_s6 + $0x8] sm:$0xff] %vm334_vm0, %v481_v50  ;;  %v485_v54 = vadd.f32 %v484_v53, %v398_v46 }
 0x229   : > { %489 = vst [vmem:[%s328_s6 + $0x10] sm:$0xff] %v483_v52 }
 0x22a   : > { %490 = vst.msk [vmem:[%s328_s6 + $0x18] sm:$0xff] %vm334_vm0, %v485_v54 }
 0x22b PF: > { %s15_s20 = sadd.s32 1, %s703_s20   ;;  %s819_s18 = smov %s699_s19 }
 0x22c   : > { %p12_p5 = scmp.ge.s32.totalorder %s15_s20, 4   ;;  %s820_s19 = smov %s822_s21 }
 0x22e   :  { %14 = sbr.rel (!%p12_p5) target bundleno = 2 (0x2), region = 76 }

// kernel: _lambda_.36
= control target key start
LH: loop header
LB: loop body
LE: loop exit
PB: predicated region body
PF: predicated region fallthrough
CT: control target
= control target key end

     0   :  { %s1073_s9 = smov 0   ;;  %s1075_s10 = smov 0   ;;  %s1295_s0 = inlined_call_operand.vmem [shape: f32[3,8,16,16], index: 0, kind: input, shape index: {}]   ;;  %s1296_s1 = inlined_call_operand.vmem [shape: f32[4,16,16], index: 1, kind: input, shape index: {}]   ;;  %s1297_s2 = inlined_call_operand.vmem [shape: f32[8,16,16], index: 2, kind: output, shape index: {}]  }
   0x1   :  { %s1077_s11 = smov 0  }
   0x2 LB: > { %s868_s12 = sadd.s32 4294967295, %s1054_s11   ;;  %s1090_s13 = sadd.s32 1, %s1054_s11   ;;  %s1054_s11 = sphi %s1077_s11, %s1300_s11   ;;  %s1050_s10 = sphi %s1075_s10, %s1299_s10   ;;  %s1046_s9 = sphi %s1073_s9, %s1298_s9  }
   0x3   : > { %s16_s14 = ssub.s32 %s1054_s11, %s1090_s13  ;;  %s19_s15 = sadd.s32 1, %s1050_s10 }
   0x4   : > { %p17_p0 = scmp.eq.s32.totalorder %s16_s14, 0  ;;  %p26_p1 = scmp.ne.s32.totalorder %s1050_s10, %s1046_s9 }
   0x5   : > { %p27_p2 = scmp.eq.s32.totalorder %s1054_s11, 0  ;;  %p871_p4 = scmp.ge.s32.totalorder %s1054_s11, 2 }
   0x6   : > { %s1099_s16 = scalar_select %p17_p0, %s1050_s10, %s19_s15  }
   0x7   : > { %p28_p3 = por %p27_p2, %p26_p1  ;;  %102 = sbr.rel (%p871_p4) target bundleno = 31 (0x1f), region = 20 }
   0xe   : > { %105 = sbr.rel (!%p28_p3) target bundleno = 31 (0x1f), region = 24  ;;  %s107_s17 = sand.u32 (%p28_p3), 1, %s1050_s10  }
   0xf   : > { %s906_s18 = sshll.u32 (%p28_p3), %s1054_s11, 6  ;;  %s972_s19 = smul.u32 (%p28_p3), 192, %s107_s17 }
  0x10   : > { %s1107_s22 = scalar_lea.vmem (%p28_p3), %s1295_s0, %s906_s18 }
  0x11   : > { %v187_v0 = vld [vmem:[%s1107_s22] sm:$0xff] (%p28_p3)  ;;  %v189_v1 = vld [vmem:[%s1107_s22 + $0x8] sm:$0xff] (%p28_p3)  ;;  %v191_v2 = vld [vmem:[%s1107_s22 + $0x10] sm:$0xff] (%p28_p3)  ;;  %s1115_s23 = scalar_lea.vmem (%p28_p3), [#allocation2], %s972_s19 }
  0x12   : > { %v193_v3 = vld [vmem:[%s1107_s22 + $0x18] sm:$0xff] (%p28_p3)  ;;  %v195_v4 = vld [vmem:[%s1107_s22 + $0x20] sm:$0xff] (%p28_p3)  ;;  %v197_v5 = vld [vmem:[%s1107_s22 + $0x28] sm:$0xff] (%p28_p3)  ;;  %188 = vst [vmem:[%s1115_s23] sm:$0xff] (%p28_p3), %v187_v0 }
  0x13   : > { %190 = vst [vmem:[%s1115_s23 + $0x8] sm:$0xff] (%p28_p3), %v189_v1  ;;  %192 = vst [vmem:[%s1115_s23 + $0x10] sm:$0xff] (%p28_p3), %v191_v2  ;;  %v199_v6 = vld [vmem:[%s1107_s22 + $0x30] sm:$0xff] (%p28_p3)  ;;  %v201_v7 = vld [vmem:[%s1107_s22 + $0x38] sm:$0xff] (%p28_p3) }
  0x14   : > { %194 = vst [vmem:[%s1115_s23 + $0x18] sm:$0xff] (%p28_p3), %v193_v3  ;;  %196 = vst [vmem:[%s1115_s23 + $0x20] sm:$0xff] (%p28_p3), %v195_v4  ;;  %v203_v8 = vld [vmem:[%s1107_s22 + $0x80] sm:$0xff] (%p28_p3)  ;;  %v205_v9 = vld [vmem:[%s1107_s22 + $0x88] sm:$0xff] (%p28_p3) }
  0x15   : > { %198 = vst [vmem:[%s1115_s23 + $0x28] sm:$0xff] %v197_v5  ;;  %200 = vst [vmem:[%s1115_s23 + $0x30] sm:$0xff] %v199_v6  ;;  %v207_v10 = vld [vmem:[%s1107_s22 + $0x90] sm:$0xff]  ;;  %v209_v11 = vld [vmem:[%s1107_s22 + $0x98] sm:$0xff] }
  0x16   : > { %202 = vst [vmem:[%s1115_s23 + $0x38] sm:$0xff] %v201_v7  ;;  %204 = vst [vmem:[%s1115_s23 + $0x40] sm:$0xff] %v203_v8  ;;  %v211_v12 = vld [vmem:[%s1107_s22 + $0xa0] sm:$0xff]  ;;  %v213_v13 = vld [vmem:[%s1107_s22 + $0xa8] sm:$0xff] }
  0x17   : > { %206 = vst [vmem:[%s1115_s23 + $0x48] sm:$0xff] %v205_v9  ;;  %208 = vst [vmem:[%s1115_s23 + $0x50] sm:$0xff] %v207_v10  ;;  %v215_v14 = vld [vmem:[%s1107_s22 + $0xb0] sm:$0xff]  ;;  %v217_v15 = vld [vmem:[%s1107_s22 + $0xb8] sm:$0xff] }
  0x18   : > { %210 = vst [vmem:[%s1115_s23 + $0x58] sm:$0xff] %v209_v11  ;;  %212 = vst [vmem:[%s1115_s23 + $0x60] sm:$0xff] %v211_v12  ;;  %v219_v16 = vld [vmem:[%s1107_s22 + $0x100] sm:$0xff]  ;;  %v221_v17 = vld [vmem:[%s1107_s22 + $0x108] sm:$0xff] }
  0x19   : > { %214 = vst [vmem:[%s1115_s23 + $0x68] sm:$0xff] %v213_v13  ;;  %216 = vst [vmem:[%s1115_s23 + $0x70] sm:$0xff] %v215_v14  ;;  %v223_v18 = vld [vmem:[%s1107_s22 + $0x110] sm:$0xff]  ;;  %v225_v19 = vld [vmem:[%s1107_s22 + $0x118] sm:$0xff] }
  0x1a   : > { %218 = vst [vmem:[%s1115_s23 + $0x78] sm:$0xff] %v217_v15  ;;  %220 = vst [vmem:[%s1115_s23 + $0x80] sm:$0xff] %v219_v16  ;;  %v227_v20 = vld [vmem:[%s1107_s22 + $0x120] sm:$0xff]  ;;  %v229_v21 = vld [vmem:[%s1107_s22 + $0x128] sm:$0xff] }
  0x1b   : > { %222 = vst [vmem:[%s1115_s23 + $0x88] sm:$0xff] %v221_v17  ;;  %224 = vst [vmem:[%s1115_s23 + $0x90] sm:$0xff] %v223_v18  ;;  %v231_v22 = vld [vmem:[%s1107_s22 + $0x130] sm:$0xff]  ;;  %v233_v23 = vld [vmem:[%s1107_s22 + $0x138] sm:$0xff] }
  0x1c   : > { %226 = vst [vmem:[%s1115_s23 + $0x98] sm:$0xff] %v225_v19  ;;  %228 = vst [vmem:[%s1115_s23 + $0xa0] sm:$0xff] %v227_v20 }
  0x1d   : > { %230 = vst [vmem:[%s1115_s23 + $0xa8] sm:$0xff] %v229_v21  ;;  %232 = vst [vmem:[%s1115_s23 + $0xb0] sm:$0xff] %v231_v22 }
  0x1e   : > { %234 = vst [vmem:[%s1115_s23 + $0xb8] sm:$0xff] %v233_v23 }
  0x1f PF: > { %p875_p5 = scmp.ge.s32.totalorder %s1054_s11, 1  ;;  %p239_p6 = scmp.lt.s32.totalorder %s1054_s11, 3 }
  0x21   : > { %p240_p7 = pnand %p875_p5, %p239_p6 }
  0x22   : > { %s246_s24 = sand.u32 (!%p240_p7), 1, %s1046_s9   ;;  %v1056_v24 = vmov (!%p240_p7), 0.0   ;;  %vm1057_vm0 = vmmov (!%p240_p7), 0   ;;  %vm315_vm1 = vcmask (!%p240_p7), 130048   ;;  %v512_v54 = vld [vmem:[%s1296_s1] sm:$0xff] (!%p240_p7)  ;;  %v514_v58 = vld [vmem:[%s1296_s1 + $0x10] sm:$0xff] (!%p240_p7) }
  0x23   : > { %243 = sbr.rel (%p240_p7) target bundleno = 813 (0x32d), region = 62  ;;  %924 = vmatprep.subr.bf16.mxu0 (!%p240_p7), %v1056_v24  ;;  %930 = vmatprep.subr.bf16.mxu1 (!%p240_p7), %v1056_v24  ;;  %v513_v62 = vld [vmem:[%s1296_s1 + $0x8] sm:$0xff] (!%p240_p7)  ;;  %v515_v3 = vld [vmem:[%s1296_s1 + $0x18] sm:$0xff] (!%p240_p7)  ;;  %v516_v13 = vld [vmem:[%s1296_s1 + $0x20] sm:$0xff] (!%p240_p7)  ;;  %s876_s20 = sshll.u32 (!%p240_p7), %s868_s12, 2 }
  0x24   : > { %s973_s25 = smul.u32 (!%p240_p7), 192, %s246_s24  ;;  %926 = vmatprep.mubr.msk.bf16.mxu0 (!%p240_p7), %vm1057_vm0, %v1056_v24  ;;  %932 = vmatprep.mubr.msk.bf16.mxu1 (!%p240_p7), %vm1057_vm0, %v1056_v24  ;;  %v518_v18 = vld [vmem:[%s1296_s1 + $0x30] sm:$0xff] (!%p240_p7)  ;;  %v517_v22 = vld [vmem:[%s1296_s1 + $0x28] sm:$0xff] (!%p240_p7)  ;;  %p270_p8 = scmp.lt.s32.totalorder (!%p240_p7), %s876_s20, 7 }
  0x26   : > { %s1168_s26 = scalar_lea.vmem (!%p240_p7), [#allocation2], %s973_s25 }
  0x27   : > { %v879_v25 = vld [vmem:[%s1168_s26 + $0x40] sm:$0xff] (!%p240_p7)  ;;  %v880_v26 = vld [vmem:[%s1168_s26 + $0x48] sm:$0xff] (!%p240_p7)  ;;  %v881_v27 = vld [vmem:[%s1168_s26 + $0x50] sm:$0xff] (!%p240_p7) }
  0x28   : > { %v298_v28 = vpack.c.bf16 (!%p240_p7), %v880_v26, %v879_v25  ;;  %v882_v29 = vld [vmem:[%s1168_s26 + $0x58] sm:$0xff] (!%p240_p7)  ;;  %v883_v31 = vld [vmem:[%s1168_s26 + $0x60] sm:$0xff] (!%p240_p7)  ;;  %v884_v33 = vld [vmem:[%s1168_s26 + $0x68] sm:$0xff] (!%p240_p7) }
  0x29   : > { %v299_v30 = vpack.c.bf16 (!%p240_p7), %v882_v29, %v881_v27  ;;  %v885_v34 = vld [vmem:[%s1168_s26 + $0x70] sm:$0xff] (!%p240_p7)  ;;  %v886_v35 = vld [vmem:[%s1168_s26 + $0x78] sm:$0xff] (!%p240_p7)  ;;  %v277_v37 = vld [vmem:[%s1168_s26] sm:$0xff] (!%p240_p7)  ;;  %v300_v41 = vpack.c.bf16 (!%p240_p7), %v884_v33, %v883_v31 }
  0x2a   : > { %v320_v32 = vsel %vm315_vm1, %v298_v28, 0  ;;  %v278_v38 = vld [vmem:[%s1168_s26 + $0x8] sm:$0xff]  ;;  %v279_v39 = vld [vmem:[%s1168_s26 + $0x10] sm:$0xff]  ;;  %v280_v40 = vld [vmem:[%s1168_s26 + $0x18] sm:$0xff]  ;;  %v301_v42 = vpack.c.bf16 %v886_v35, %v885_v34  ;;  %s1302_s20 = smov (!%p270_p8, %s876_s20), 7 }
  0x2b   : > { %925 = vmatpush3.bf16.xpose.msra.mxu0 %v320_v32  ;;  %v367_v36 = vsel %vm315_vm1, %v299_v30, 0  ;;  %v285_v43 = vpack.c.bf16 %v278_v38, %v277_v37  ;;  %v286_v44 = vpack.c.bf16 %v280_v40, %v279_v39  ;;  %v414_v45 = vsel %vm315_vm1, %v300_v41, 0  ;;  %v281_v47 = vld [vmem:[%s1168_s26 + $0x20] sm:$0xff]  ;;  %v282_v48 = vld [vmem:[%s1168_s26 + $0x28] sm:$0xff]  ;;  %v283_v49 = vld [vmem:[%s1168_s26 + $0x30] sm:$0xff]  ;;  %s907_s21 = sshll.u32 %s1302_s20, 4 }
  0x2c   : > { %931 = vmatpush3.bf16.xpose.msra.mxu1 %v367_v36  ;;  %936 = vmatprep.subr.bf16.mxu0 %v1056_v24  ;;  %v461_v46 = vsel %vm315_vm1, %v301_v42, 0  ;;  %v284_v50 = vld [vmem:[%s1168_s26 + $0x38] sm:$0xff]  ;;  %v287_v51 = vpack.c.bf16 %v282_v48, %v281_v47  ;;  %s274_s24 = scalar_lea.vmem %s1297_s2, %s907_s21 }
  0x2d   : > { %942 = vmatprep.subr.bf16.mxu1 %v1056_v24  ;;  %v288_v52 = vpack.c.bf16 %v284_v50, %v283_v49  ;;  %v519_v28 = vld [vmem:[%s1296_s1 + $0x38] sm:$0xff] }
  0x32   : > { %927 = vmatmul.mubr.msk.bf16.vlgmr.msra.gmra.mrb[0].mxu0 %vm315_vm1, %v285_v43 }
  0x33   : > { %933 = vmatmul.mubr.msk.bf16.vlgmr.msra.gmra.mrb[0].mxu1 %vm315_vm1, %v286_v44  ;;  %937 = vmatpush3.bf16.xpose.msra.mxu0 %v414_v45 }
  0x34   : > { %943 = vmatpush3.bf16.xpose.msra.mxu1 %v461_v46  ;;  %938 = vmatprep.mubr.msk.bf16.mxu0 %vm1057_vm0, %v1056_v24 }
  0x35   : > { %944 = vmatprep.mubr.msk.bf16.mxu1 %vm1057_vm0, %v1056_v24  ;;  %948 = vmatprep.subr.bf16.mxu0 %v1056_v24 }
  0x36   : > { %954 = vmatprep.subr.bf16.mxu1 %v1056_v24 }
  0x3a   : > { %939 = vmatmul.mubr.msk.bf16.vlgmr.msra.gmra.mrb[4].mxu0 %vm315_vm1, %v287_v51 }
  0x3b   : > { %945 = vmatmul.mubr.msk.bf16.vlgmr.msra.gmra.mrb[4].mxu1 %vm315_vm1, %v288_v52  ;;  %950 = vmatprep.mubr.msk.bf16.mxu0 %vm1057_vm0, %v1056_v24 }
  0x3c   : > { %956 = vmatprep.mubr.msk.bf16.mxu1 %vm1057_vm0, %v1056_v24 }
 0x105   : > { %v356_v53 = vpop.f32.mrb[0].mxu0 }
 0x106   : > { %v504_v55 = vmul.f32 0.25, %v356_v53  ;;  %v403_v56 = vpop.f32.mrb[0].mxu1  ;;  %v928_v57 = vpop.f32.mrb[1].mxu0 }
 0x107   : > { %v506_v59 = vmul.f32 0.25, %v403_v56  ;;  %v359_v60 = vpop.f32.mrb[2].mxu0  ;;  %v934_v61 = vpop.f32.mrb[1].mxu1 }
 0x108   : > { %v505_v63 = vmul.f32 0.25, %v359_v60  ;;  %v929_v0 = vpop.f32.mrb[3].mxu0  ;;  %v406_v1 = vpop.f32.mrb[2].mxu1  ;;  %v520_v2 = vadd.f32 %v512_v54, %v504_v55 }
 0x109   : > { %v507_v4 = vmul.f32 0.25, %v406_v1  ;;  %v935_v5 = vpop.f32.mrb[3].mxu1  ;;  %v522_v6 = vadd.f32 %v514_v58, %v506_v59 }
 0x10a   : > { %v528_v7 = vsel %vm315_vm1, %v520_v2, -inf  ;;  %v521_v8 = vadd.f32 %v513_v62, %v505_v63 }
 0x10b   : > { %v534_v9 = vsel %vm315_vm1, %v522_v6, -inf  ;;  %529 = vmax.xlane.f32.xlu0 %v528_v7  ;;  %v523_v10 = vadd.f32 %v515_v3, %v507_v4 }
 0x10c   : > { %535 = vmax.xlane.f32.xlu1 %v534_v9  ;;  %v531_v16 = vsel %vm315_vm1, %v521_v8, -inf }
 0x10d   : > { %v450_v11 = vpop.f32.mrb[4].mxu0  ;;  %v537_v12 = vsel %vm315_vm1, %v523_v10, -inf }
 0x10e   : > { %v508_v14 = vmul.f32 0.25, %v450_v11  ;;  %v940_v15 = vpop.f32.mrb[5].mxu0  ;;  %v497_v17 = vpop.f32.mrb[4].mxu1 }
 0x10f   : > { %532 = vmax.xlane.f32.xlu0 %v531_v16  ;;  %v453_v19 = vpop.f32.mrb[6].mxu0  ;;  %v510_v20 = vmul.f32 0.25, %v497_v17  ;;  %v946_v21 = vpop.f32.mrb[5].mxu1  ;;  %v888_v15 = vld [vmem:[%s1168_s26 + $0x88] sm:$0xff]  ;;  %v889_v17 = vld [vmem:[%s1168_s26 + $0x90] sm:$0xff] }
 0x110   : > { %538 = vmax.xlane.f32.xlu1 %v537_v12  ;;  %v509_v23 = vmul.f32 0.25, %v453_v19  ;;  %v941_v25 = vpop.f32.mrb[7].mxu0  ;;  %v500_v26 = vpop.f32.mrb[6].mxu1  ;;  %v524_v27 = vadd.f32 %v516_v13, %v508_v14  ;;  %v887_v14 = vld [vmem:[%s1168_s26 + $0x80] sm:$0xff] }
 0x111   : > { %v511_v29 = vmul.f32 0.25, %v500_v26  ;;  %v947_v30 = vpop.f32.mrb[7].mxu1  ;;  %v526_v31 = vadd.f32 %v518_v18, %v510_v20  ;;  %v311_v16 = vpack.c.bf16 %v888_v15, %v887_v14  ;;  %v890_v18 = vld [vmem:[%s1168_s26 + $0x98] sm:$0xff] }
 0x112   : > { %v540_v32 = vsel %vm315_vm1, %v524_v27, -inf  ;;  %v525_v33 = vadd.f32 %v517_v22, %v509_v23  ;;  %v312_v19 = vpack.c.bf16 %v890_v18, %v889_v17  ;;  %v892_v30 = vld [vmem:[%s1168_s26 + $0xa8] sm:$0xff] }
 0x113   : > { %541 = vmax.xlane.f32.xlu0 %v540_v32  ;;  %v527_v34 = vadd.f32 %v519_v28, %v511_v29  ;;  %v546_v36 = vsel %vm315_vm1, %v526_v31, -inf  ;;  %949 = vmatpush3.bf16.msra.mxu0 %v311_v16  ;;  %v891_v29 = vld [vmem:[%s1168_s26 + $0xa0] sm:$0xff] }
 0x114   : > { %v543_v35 = vsel %vm315_vm1, %v525_v33, -inf  ;;  %960 = vmatprep.subr.bf16.mxu0 %v1056_v24  ;;  %955 = vmatpush3.bf16.msra.mxu1 %v312_v19 }
 0x115   : > { %544 = vmax.xlane.f32.xlu1 %v543_v35  ;;  %v549_v37 = vsel %vm315_vm1, %v527_v34, -inf  ;;  %966 = vmatprep.subr.bf16.mxu1 %v1056_v24 }
 0x117   : > { %547 = vmax.xlane.f32.xlu0 %v546_v36  ;;  %v313_v36 = vpack.c.bf16 %v892_v30, %v891_v29 }
 0x119   : > { %550 = vmax.xlane.f32.xlu1 %v549_v37 }
 0x198   : > { %v530_v38 = vpop.xlane.xlu0 %529 }
 0x199   : > { %v536_v39 = vpop.xlane.xlu1 %535  ;;  %v552_v40 = vsub.f32 %v520_v2, %v530_v38  ;;  %v893_v38 = vld [vmem:[%s1168_s26 + $0xb0] sm:$0xff] }
 0x19a   : > { %v554_v41 = vsub.f32 %v522_v6, %v536_v39  ;;  %v894_v39 = vld [vmem:[%s1168_s26 + $0xb8] sm:$0xff] }
 0x19b   : > { %v560_v42 = vmul.f32 1.442695, %v552_v40 }
 0x19c   : > { %v564_v43 = vmul.f32 1.442695, %v554_v41  ;;  %v533_v44 = vpop.xlane.xlu0 %532 }
 0x19d   : > { %1000 = vpow2.f32 %v560_v42  ;;  %v539_v45 = vpop.xlane.xlu1 %538  ;;  %v553_v46 = vsub.f32 %v521_v8, %v533_v44  ;;  %v314_v44 = vpack.c.bf16 %v894_v39, %v893_v38 }
 0x19e   : > { %v555_v47 = vsub.f32 %v523_v10, %v539_v45  ;;  %1002 = vpow2.f32 %v564_v43 }
 0x19f   : > { %v562_v48 = vmul.f32 1.442695, %v553_v46 }
 0x1a0   : > { %v566_v49 = vmul.f32 1.442695, %v555_v47  ;;  %v542_v50 = vpop.xlane.xlu0 %541 }
 0x1a1   : > { %1004 = vpow2.f32 %v562_v48  ;;  %v556_v51 = vsub.f32 %v524_v27, %v542_v50 }
 0x1a2   : > { %v545_v52 = vpop.xlane.xlu1 %544  ;;  %1006 = vpow2.f32 %v566_v49 }
 0x1a3   : > { %v568_v53 = vmul.f32 1.442695, %v556_v51  ;;  %v557_v54 = vsub.f32 %v525_v33, %v545_v52 }
 0x1a4   : > { %v548_v55 = vpop.xlane.xlu0 %547 }
 0x1a5   : > { %1008 = vpow2.f32 %v568_v53  ;;  %v570_v56 = vmul.f32 1.442695, %v557_v54  ;;  %v558_v57 = vsub.f32 %v526_v31, %v548_v55 }
 0x1a6   : > { %v551_v58 = vpop.xlane.xlu1 %550 }
 0x1a7   : > { %v1001_v59 = vpop.eup %1000  ;;  %1010 = vpow2.f32 %v570_v56  ;;  %v572_v60 = vmul.f32 1.442695, %v558_v57  ;;  %v559_v61 = vsub.f32 %v527_v34, %v551_v58 }
 0x1a8   : > { %v576_v62 = vsel %vm315_vm1, %v1001_v59, 0.0  ;;  %v1239_v63 = vpop.eup %1002 }
 0x1a9   : > { %1012 = vpow2.f32 %v572_v60  ;;  %v574_v0 = vmul.f32 1.442695, %v559_v61  ;;  %577 = vadd.xlane.f32.xlu0 %v576_v62  ;;  %v582_v2 = vsel %vm315_vm1, %v1239_v63, 0.0 }
 0x1ab   : > { %v1005_v1 = vpop.eup %1004  ;;  %1014 = vpow2.f32 %v574_v0 }
 0x1ac   : > { %v579_v3 = vsel %vm315_vm1, %v1005_v1, 0.0  ;;  %v1007_v4 = vpop.eup %1006 }
 0x1ad   : > { %583 = vadd.xlane.f32.xlu0 %v582_v2  ;;  %580 = vadd.xlane.f32.xlu1 %v579_v3  ;;  %v585_v7 = vsel %vm315_vm1, %v1007_v4, 0.0 }
 0x1af   : > { %v1009_v5 = vpop.eup %1008 }
 0x1b0   : > { %v588_v6 = vsel %vm315_vm1, %v1009_v5, 0.0 }
 0x1b1   : > { %v1011_v8 = vpop.eup %1010  ;;  %589 = vadd.xlane.f32.xlu0 %v588_v6  ;;  %586 = vadd.xlane.f32.xlu1 %v585_v7 }
 0x1b2   : > { %v591_v11 = vsel %vm315_vm1, %v1011_v8, 0.0 }
 0x1b3   : > { %v1246_v9 = vpop.eup %1012 }
 0x1b4   : > { %v594_v10 = vsel %vm315_vm1, %v1246_v9, 0.0 }
 0x1b5   : > { %v1015_v12 = vpop.eup %1014  ;;  %595 = vadd.xlane.f32.xlu0 %v594_v10  ;;  %592 = vadd.xlane.f32.xlu1 %v591_v11 }
 0x1b6   : > { %v597_v13 = vsel %vm315_vm1, %v1015_v12, 0.0 }
 0x1b9   : > { %598 = vadd.xlane.f32.xlu1 %v597_v13 }
 0x236   : > { %v578_v20 = vpop.xlane.xlu0 %577 }
 0x237   : > { %1016 = vrcp.f32 %v578_v20 }
 0x23a   : > { %v584_v21 = vpop.xlane.xlu0 %583  ;;  %v581_v22 = vpop.xlane.xlu1 %580 }
 0x23b   : > { %1018 = vrcp.f32 %v581_v22 }
 0x23c   : > { %1020 = vrcp.f32 %v584_v21 }
 0x23e   : > { %v590_v23 = vpop.xlane.xlu0 %589  ;;  %v587_v25 = vpop.xlane.xlu1 %586 }
 0x23f   : > { %1022 = vrcp.f32 %v587_v25 }
 0x240   : > { %1024 = vrcp.f32 %v590_v23 }
 0x241   : > { %v1017_v28 = vpop.eup %1016 }
 0x242   : > { %v596_v26 = vpop.xlane.xlu0 %595  ;;  %v593_v27 = vpop.xlane.xlu1 %592  ;;  %v608_v33 = vmul.f32 %v1017_v28, %v1001_v59 }
 0x243   : > { %1026 = vrcp.f32 %v593_v27 }
 0x244   : > { %1028 = vrcp.f32 %v596_v26 }
 0x245   : > { %v1019_v31 = vpop.eup %1018 }
 0x246   : > { %v599_v32 = vpop.xlane.xlu1 %598  ;;  %v609_v34 = vmul.f32 %v1019_v31, %v1005_v1  ;;  %v1021_v35 = vpop.eup %1020 }
 0x247   : > { %1030 = vrcp.f32 %v599_v32  ;;  %v610_v41 = vmul.f32 %v1021_v35, %v1239_v63 }
 0x248   : > { %v616_v37 = vpack.c.bf16 %v609_v34, %v608_v33 }
 0x249   : > { %v1023_v40 = vpop.eup %1022 }
 0x24a   : > { %v611_v42 = vmul.f32 %v1023_v40, %v1007_v4  ;;  %951 = vmatmul.mubr.msk.bf16.vlgmr.msra.gmra.mrb[8].mxu0 %vm315_vm1, %v616_v37  ;;  %v1025_v43 = vpop.eup %1024 }
 0x24b   : > { %961 = vmatpush3.bf16.msra.mxu0 %v313_v36  ;;  %962 = vmatprep.mubr.msk.bf16.mxu0 %vm1057_vm0, %v1056_v24  ;;  %v612_v48 = vmul.f32 %v1025_v43, %v1009_v5 }
 0x24c   : > { %v617_v45 = vpack.c.bf16 %v611_v42, %v610_v41 }
 0x24d   : > { %v1027_v46 = vpop.eup %1026 }
 0x24e   : > { %v1029_v47 = vpop.eup %1028  ;;  %v613_v49 = vmul.f32 %v1027_v46, %v1011_v8  ;;  %957 = vmatmul.mubr.msk.bf16.vlgmr.msra.gmra.mrb[8].mxu1 %vm315_vm1, %v617_v45 }
 0x24f   : > { %967 = vmatpush3.bf16.msra.mxu1 %v314_v44  ;;  %968 = vmatprep.mubr.msk.bf16.mxu1 %vm1057_vm0, %v1056_v24  ;;  %v614_v52 = vmul.f32 %v1029_v47, %v1246_v9 }
 0x250   : > { %v618_v51 = vpack.c.bf16 %v613_v49, %v612_v48 }
 0x251   : > { %v1031_v50 = vpop.eup %1030 }
 0x252   : > { %v615_v53 = vmul.f32 %v1031_v50, %v1015_v12  ;;  %963 = vmatmul.mubr.msk.bf16.vlgmr.msra.gmra.mrb[12].mxu0 %vm315_vm1, %v618_v51 }
 0x254   : > { %v619_v54 = vpack.c.bf16 %v615_v53, %v614_v52 }
 0x256   : > { %969 = vmatmul.mubr.msk.bf16.vlgmr.msra.gmra.mrb[12].mxu1 %vm315_vm1, %v619_v54 }
 0x31d   : > { %v657_v24 = vpop.f32.mrb[8].mxu0 }
 0x31e   : > { %796 = vst.msk [vmem:[%s274_s24] sm:$0xff] %vm315_vm1, %v657_v24  ;;  %v952_v55 = vpop.f32.mrb[9].mxu0 }
 0x31f   : > { %v660_v56 = vpop.f32.mrb[10].mxu0 }
 0x320   : > { %797 = vst.msk [vmem:[%s274_s24 + $0x8] sm:$0xff] %vm315_vm1, %v660_v56  ;;  %v953_v57 = vpop.f32.mrb[11].mxu0 }
 0x321   : > { %v701_v58 = vpop.f32.mrb[8].mxu1 }
 0x322   : > { %798 = vst.msk [vmem:[%s274_s24 + $0x10] sm:$0xff] %vm315_vm1, %v701_v58  ;;  %v958_v59 = vpop.f32.mrb[9].mxu1 }
 0x323   : > { %v704_v60 = vpop.f32.mrb[10].mxu1 }
 0x324   : > { %799 = vst.msk [vmem:[%s274_s24 + $0x18] sm:$0xff] %vm315_vm1, %v704_v60  ;;  %v959_v61 = vpop.f32.mrb[11].mxu1 }
 0x325   : > { %v745_v62 = vpop.f32.mrb[12].mxu0 }
 0x326   : > { %800 = vst.msk [vmem:[%s274_s24 + $0x20] sm:$0xff] %vm315_vm1, %v745_v62  ;;  %v964_v63 = vpop.f32.mrb[13].mxu0 }
 0x327   : > { %v748_v0 = vpop.f32.mrb[14].mxu0 }
 0x328   : > { %801 = vst.msk [vmem:[%s274_s24 + $0x28] sm:$0xff] %vm315_vm1, %v748_v0  ;;  %v965_v1 = vpop.f32.mrb[15].mxu0 }
 0x329   : > { %v789_v2 = vpop.f32.mrb[12].mxu1 }
 0x32a   : > { %802 = vst.msk [vmem:[%s274_s24 + $0x30] sm:$0xff] %vm315_vm1, %v789_v2  ;;  %v970_v3 = vpop.f32.mrb[13].mxu1 }
 0x32b   : > { %v792_v4 = vpop.f32.mrb[14].mxu1 }
 0x32c   : > { %803 = vst.msk [vmem:[%s274_s24 + $0x38] sm:$0xff] %vm315_vm1, %v792_v4  ;;  %v971_v5 = vpop.f32.mrb[15].mxu1 }
 0x32d PF: > { %p9_p9 = scmp.ge.s32.totalorder %s1090_s13, 4   ;;  %s1298_s9 = smov %s1050_s10 }
 0x32e   : > { %s1299_s10 = smov %s1099_s16  ;;  %s1300_s11 = smov %s1090_s13 }
 0x32f   :  { %11 = sbr.rel (!%p9_p9) target bundleno = 2 (0x2), region = 103 }

// kernel: _lambda_.37
= control target key start
LH: loop header
LB: loop body
LE: loop exit
PB: predicated region body
PF: predicated region fallthrough
CT: control target
= control target key end

     0   :  { %s572_s12 = smov 0   ;;  %s574_s13 = smov 0   ;;  %s620_s0 = inlined_call_operand.vmem [shape: f32[32,64], index: 0, kind: input, shape index: {}]   ;;  %s621_s1 = inlined_call_operand.vmem [shape: bf16[64,64], index: 1, kind: input, shape index: {}]   ;;  %s622_s2 = inlined_call_operand.vmem [shape: f32[1,64], index: 2, kind: input, shape index: {}]   ;;  %s623_s3 = inlined_call_operand.vmem [shape: f32[32,64], index: 3, kind: output, shape index: {}]  }
   0x1   :  { %s576_s14 = smov 0  }
   0x2 LB: > { %s32_s15 = sadd.s32 1, %s544_s13  ;;  %p466_p0 = scmp.ge.s32.totalorder %s548_s14, 1  ;;  %s548_s14 = sphi %s576_s14, %s13_s14   ;;  %s544_s13 = sphi %s574_s13, %s625_s13   ;;  %s540_s12 = sphi %s572_s12, %s624_s12  }
   0x3   : > { %p34_p1 = scmp.ge.s32.totalorder %s32_s15, 2  ;;  %p188_p2 = scmp.lt.s32.totalorder %s548_s14, 3 }
   0x5   : > { %s627_s15 = smov (%p34_p1, %s32_s15), 0  ;;  %p189_p3 = pnand %p466_p0, %p188_p2 }
   0x6   : > { %v522_v0 = vld [vmem:[%s621_s1] sm:$0xff] (!%p189_p3)   ;;  %v550_v1 = vmov (!%p189_p3), 0.0   ;;  %v523_v2 = vld [vmem:[%s621_s1 + $0x8] sm:$0xff] (!%p189_p3)   ;;  %vm551_vm0 = vmmov (!%p189_p3), 0   ;;  %s467_s20 = sshll.u32 (!%p189_p3), %s540_s12, 1  ;;  %v524_v3 = vld [vmem:[%s621_s1 + $0x10] sm:$0xff] (!%p189_p3)  }
   0x7   : > { %192 = sbr.rel (%p189_p3) target bundleno = 240 (0xf0), region = 32  ;;  %484 = vmatprep.subr.bf16.mxu0 (!%p189_p3), %v550_v1  ;;  %492 = vmatprep.mubr.msk.bf16.mxu0 (!%p189_p3), %vm551_vm0, %v550_v1  ;;  %p230_p4 = scmp.lt.s32.totalorder (!%p189_p3), %s467_s20, 3  ;;  %v525_v4 = vld [vmem:[%s621_s1 + $0x18] sm:$0xff] (!%p189_p3)   ;;  %vm302_vm1 = vcmask (!%p189_p3), 523264   ;;  %v471_v8 = vld [vmem:[%s622_s2] ss:$0 sm:$0xff] (!%p189_p3) }
   0x8   : > { %485 = vmatpush3.bf16.msra.mxu0 (!%p189_p3), %v522_v0 }
   0x9   : > { %486 = vmatprep.subr.bf16.mxu0 (!%p189_p3), %v550_v1 }
   0xc   : > { %487 = vmatpush3.bf16.msra.mxu0 (!%p189_p3), %v523_v2 }
   0xd   : > { %488 = vmatprep.subr.bf16.mxu0 (!%p189_p3), %v550_v1 }
   0xe   : > { %s629_s20 = smov (!%p230_p4, %s467_s20), 3 }
   0xf   : > { %s468_s23 = sshll.u32 %s629_s20, 3 }
  0x10   : > { %s236_s26 = scalar_lea.vmem %s620_s0, %s468_s23  ;;  %489 = vmatpush3.bf16.msra.mxu0 %v524_v3  ;;  %s257_s6 = scalar_lea.vmem %s623_s3, %s468_s23 }
  0x11   : > { %v260_v5 = vld [vmem:[%s236_s26] sm:$0xff]  ;;  %v261_v6 = vld [vmem:[%s236_s26 + $0x8] sm:$0xff]  ;;  %490 = vmatprep.subr.bf16.mxu0 %v550_v1 }
  0x12   : > { %v262_v7 = vpack.c.bf16 %v261_v6, %v260_v5 }
  0x14   : > { %491 = vmatpush3.bf16.msra.mxu0 %v525_v4 }
  0x17   : > { %493 = vmatmul.mubr.msk.bf16.vlgmr.msra.gmra.mrb[0].mxu0 %vm302_vm1, %v262_v7 }
  0xea   : > { %v340_v9 = vpop.f32.mrb[0].mxu0 }
  0xeb   : > { %v341_v10 = vadd.f32 %v471_v8, %v340_v9  ;;  %v494_v11 = vpop.f32.mrb[1].mxu0 }
  0xec   : > { %v343_v12 = vpop.f32.mrb[2].mxu0 }
  0xed   : > { %347 = vst.msk [vmem:[%s257_s6] sm:$0xff] %vm302_vm1, %v341_v10  ;;  %v344_v13 = vadd.f32 %v471_v8, %v343_v12  ;;  %v495_v14 = vpop.f32.mrb[3].mxu0 }
  0xef   : > { %348 = vst.msk [vmem:[%s257_s6 + $0x8] sm:$0xff] %vm302_vm1, %v344_v13 }
  0xf0 PF: > { %s13_s14 = sadd.s32 1, %s548_s14   ;;  %s624_s12 = smov %s544_s13 }
  0xf1   : > { %p10_p5 = scmp.ge.s32.totalorder %s13_s14, 4   ;;  %s625_s13 = smov %s627_s15 }
  0xf3   :  { %12 = sbr.rel (!%p10_p5) target bundleno = 2 (0x2), region = 68 }

// kernel: _lambda_.38
= control target key start
LH: loop header
LB: loop body
LE: loop exit
PB: predicated region body
PF: predicated region fallthrough
CT: control target
= control target key end

     0   :  { %s780_s18 = smov 0   ;;  %s782_s19 = smov 0   ;;  %s855_s0 = inlined_call_operand.vmem [shape: f32[32,64], index: 0, kind: input, shape index: {}]   ;;  %s856_s1 = inlined_call_operand.vmem [shape: bf16[64,256], index: 1, kind: input, shape index: {}]   ;;  %s857_s2 = inlined_call_operand.vmem [shape: f32[1,64], index: 2, kind: input, shape index: {}]   ;;  %s858_s3 = inlined_call_operand.vmem [shape: f32[1,64], index: 3, kind: input, shape index: {}]   ;;  %s859_s4 = inlined_call_operand.vmem [shape: f32[1,256], index: 4, kind: input, shape index: {}]   ;;  %s860_s5 = inlined_call_operand.vmem [shape: f32[32,256], index: 5, kind: output, shape index: {}]  }
   0x1   :  { %s784_s20 = smov 0  }
   0x2 LB: > { %s34_s21 = sadd.s32 1, %s743_s19  ;;  %p656_p0 = scmp.ge.s32.totalorder %s747_s20, 1  ;;  %s747_s20 = sphi %s784_s20, %s15_s20   ;;  %s743_s19 = sphi %s782_s19, %s862_s19   ;;  %s739_s18 = sphi %s780_s18, %s861_s18  }
   0x3   : > { %p36_p1 = scmp.ge.s32.totalorder %s34_s21, 2  ;;  %p243_p2 = scmp.lt.s32.totalorder %s747_s20, 3 }
   0x5   : > { %s864_s21 = smov (%p36_p1, %s34_s21), 0  ;;  %p244_p3 = pnand %p656_p0, %p243_p2 }
   0x6   : > { %s657_s22 = sshll.u32 (!%p244_p3), %s739_s18, 1  ;;  %vm334_vm0 = vcmask (!%p244_p3), 523264   ;;  %v701_v14 = vld [vmem:[%s856_s1 + $0x4] ss:$8 sps:$4 sm:$0xff] (!%p244_p3)   ;;  %v703_v15 = vld [vmem:[%s856_s1] ss:$8 sps:$4 sm:$0xff] (!%p244_p3)   ;;  %v391_v40 = vlaneseq (!%p244_p3) }
   0x7   : > { %247 = sbr.rel (%p244_p3) target bundleno = 582 (0x246), region = 40  ;;  %p294_p4 = scmp.lt.s32.totalorder (!%p244_p3), %s657_s22, 3  ;;  %444 = vmatprep.subr.bf16.mxu0 (!%p244_p3), %v701_v14  ;;  %v704_v16 = vld [vmem:[%s856_s1 + $0x14] ss:$8 sps:$4 sm:$0xff] (!%p244_p3)   ;;  %v706_v17 = vld [vmem:[%s856_s1 + $0x10] ss:$8 sps:$4 sm:$0xff] (!%p244_p3)  }
   0x8   : > { %445 = vmatpush1.bf16.msra.mxu0 (!%p244_p3), %v703_v15  ;;  %v707_v18 = vld [vmem:[%s856_s1 + $0x24] ss:$8 sps:$4 sm:$0xff] (!%p244_p3)   ;;  %v709_v19 = vld [vmem:[%s856_s1 + $0x20] ss:$8 sps:$4 sm:$0xff] (!%p244_p3)   ;;  %v710_v20 = vld [vmem:[%s856_s1 + $0x34] ss:$8 sps:$4 sm:$0xff] (!%p244_p3)  }
   0x9   : > { %446 = vmatprep.subr.bf16.mxu0 (!%p244_p3), %v704_v16  ;;  %v712_v21 = vld [vmem:[%s856_s1 + $0x30] ss:$8 sps:$4 sm:$0xff] (!%p244_p3)   ;;  %v749_v22 = vmov (!%p244_p3), 0   ;;  %v662_v31 = vld [vmem:[%s857_s2] ss:$0 sm:$0xff] (!%p244_p3)  ;;  %v392_v41 = vshrl.u32 (!%p244_p3), %v391_v40, 7 }
   0xa   : > { %476 = vmatprep.mubr.bf16.mxu0 (!%p244_p3), %v749_v22  ;;  %v663_v35 = vld [vmem:[%s858_s3] ss:$0 sm:$0xff] (!%p244_p3) }
   0xb   : > { %v393_v42 = vsub.s32 (!%p244_p3), 0, %v392_v41  ;;  %v389_v43 = vld [vmem:[%s859_s4] sm:$0x3] (!%p244_p3)  ;;  %v397_v44 = vsub.s32 (!%p244_p3), 1, %v392_v41 }
   0xc   : > { %447 = vmatpush1.bf16.msra.mxu0 (!%p244_p3), %v706_v17 }
   0xd   : > { %448 = vmatprep.subr.bf16.mxu0 (!%p244_p3), %v707_v18  ;;  %v394_v45 = vrot.slane (!%p244_p3), %v389_v43, %v393_v42  ;;  %v398_v46 = vrot.slane (!%p244_p3), %v389_v43, %v397_v44 }
   0xe   : > { %s866_s22 = smov (!%p294_p4, %s657_s22), 3 }
   0xf   : > { %s658_s23 = sshll.u32 %s866_s22, 3  ;;  %s675_s28 = sshll.u32 %s866_s22, 4 }
  0x10   : > { %s300_s26 = scalar_lea.vmem %s855_s0, %s658_s23  ;;  %449 = vmatpush1.bf16.msra.mxu0 %v709_v19  ;;  %s328_s6 = scalar_lea.vmem %s860_s5, %s675_s28 }
  0x11   : > { %v332_v0 = vld [vmem:[%s300_s26] sm:$0xff]  ;;  %v333_v1 = vld [vmem:[%s300_s26 + $0x8] sm:$0xff]  ;;  %450 = vmatprep.subr.bf16.mxu0 %v710_v20 }
  0x12   : > { %v335_v2 = vsel %vm334_vm0, %v332_v0, 0.0  ;;  %v338_v3 = vsel %vm334_vm0, %v333_v1, 0.0 }
  0x13   : > { %336 = vadd.xlane.f32.xlu0 %v335_v2 }
  0x14   : > { %451 = vmatpush1.bf16.msra.mxu0 %v712_v21 }
  0x17   : > { %339 = vadd.xlane.f32.xlu0 %v338_v3 }
  0xa0   : > { %v337_v4 = vpop.xlane.xlu0 %336 }
  0xa1   : > { %v342_v5 = vmul.f32 0.015625, %v337_v4 }
  0xa3   : > { %v344_v6 = vsub.f32 %v332_v0, %v342_v5 }
  0xa4   : > { %v340_v7 = vpop.xlane.xlu0 %339 }
  0xa5   : > { %v343_v8 = vmul.f32 0.015625, %v340_v7  ;;  %v346_v9 = vmul.f32 %v344_v6, %v344_v6 }
  0xa7   : > { %v345_v10 = vsub.f32 %v333_v1, %v343_v8  ;;  %v348_v11 = vsel %vm334_vm0, %v346_v9, 0.0 }
  0xa8   : > { %349 = vadd.xlane.f32.xlu1 %v348_v11 }
  0xa9   : > { %v347_v12 = vmul.f32 %v345_v10, %v345_v10 }
  0xab   : > { %v351_v13 = vsel %vm334_vm0, %v347_v12, 0.0 }
  0xac   : > { %352 = vadd.xlane.f32.xlu1 %v351_v13 }
 0x135   : > { %v350_v23 = vpop.xlane.xlu1 %349 }
 0x136   : > { %v354_v24 = vmul.f32 0.015625, %v350_v23 }
 0x138   : > { %v356_v25 = vadd.f32 1e-05, %v354_v24 }
 0x139   : > { %v353_v26 = vpop.xlane.xlu1 %352 }
 0x13a   : > { %713 = vrsqrt.f32 %v356_v25  ;;  %v355_v27 = vmul.f32 0.015625, %v353_v26 }
 0x13c   : > { %v357_v28 = vadd.f32 1e-05, %v355_v27 }
 0x13e   : > { %715 = vrsqrt.f32 %v357_v28 }
 0x144   : > { %v714_v29 = vpop.eup %713 }
 0x145   : > { %v360_v30 = vmul.f32 %v714_v29, %v344_v6 }
 0x147   : > { %v369_v34 = vmul.f32 %v662_v31, %v360_v30 }
 0x148   : > { %v716_v32 = vpop.eup %715 }
 0x149   : > { %v361_v33 = vmul.f32 %v716_v32, %v345_v10  ;;  %v378_v37 = vadd.f32 %v663_v35, %v369_v34 }
 0x14b   : > { %v370_v36 = vmul.f32 %v662_v31, %v361_v33 }
 0x14d   : > { %v379_v38 = vadd.f32 %v663_v35, %v370_v36 }
 0x14f   : > { %v380_v39 = vpack.c.bf16 %v379_v38, %v378_v37 }
 0x151   : > { %672 = vmatmul.mubr.msk.bf16.vlgmr.msra.gmra.mrb[0].mxu0 %vm334_vm0, %v380_v39 }
 0x224   : > { %v478_v47 = vpop.f32.mrb[0].mxu0 }
 0x225   : > { %v479_v48 = vadd.f32 %v478_v47, %v394_v45  ;;  %v480_v49 = vpop.f32.mrb[1].mxu0 }
 0x226   : > { %v481_v50 = vadd.f32 %v480_v49, %v398_v46  ;;  %v482_v51 = vpop.f32.mrb[2].mxu0 }
 0x227   : > { %v487_v52 = vmul.f32 %v479_v48, %v479_v48  ;;  %v483_v53 = vadd.f32 %v482_v51, %v394_v45  ;;  %v484_v54 = vpop.f32.mrb[3].mxu0 }
 0x228   : > { %v488_v55 = vmul.f32 %v481_v50, %v481_v50  ;;  %v485_v56 = vadd.f32 %v484_v54, %v398_v46 }
 0x229   : > { %v491_v57 = vmul.f32 %v487_v52, %v479_v48  ;;  %v489_v58 = vmul.f32 %v483_v53, %v483_v53 }
 0x22a   : > { %v492_v59 = vmul.f32 %v488_v55, %v481_v50  ;;  %v490_v60 = vmul.f32 %v485_v56, %v485_v56 }
 0x22b   : > { %v495_v61 = vmul.f32 0.044715, %v491_v57  ;;  %v493_v62 = vmul.f32 %v489_v58, %v483_v53 }
 0x22c   : > { %v496_v63 = vmul.f32 0.044715, %v492_v59  ;;  %v494_v0 = vmul.f32 %v490_v60, %v485_v56 }
 0x22d   : > { %v499_v1 = vadd.f32 %v495_v61, %v479_v48  ;;  %v497_v2 = vmul.f32 0.044715, %v493_v62 }
 0x22e   : > { %v500_v3 = vadd.f32 %v496_v63, %v481_v50  ;;  %v498_v4 = vmul.f32 0.044715, %v494_v0 }
 0x22f   : > { %v503_v5 = vmul.f32 0.7978846, %v499_v1  ;;  %v501_v6 = vadd.f32 %v497_v2, %v483_v53 }
 0x230   : > { %v504_v7 = vmul.f32 0.7978846, %v500_v3  ;;  %v502_v8 = vadd.f32 %v498_v4, %v485_v56 }
 0x231   : > { %717 = vtanh.f32 %v503_v5  ;;  %v505_v9 = vmul.f32 0.7978846, %v501_v6 }
 0x232   : > { %719 = vtanh.f32 %v504_v7  ;;  %v506_v10 = vmul.f32 0.7978846, %v502_v8 }
 0x233   : > { %721 = vtanh.f32 %v505_v9 }
 0x234   : > { %723 = vtanh.f32 %v506_v10 }
 0x23b   : > { %v718_v11 = vpop.eup %717 }
 0x23c   : > { %v720_v12 = vpop.eup %719  ;;  %v511_v13 = vadd.f32 1.0, %v718_v11 }
 0x23d   : > { %v722_v14 = vpop.eup %721  ;;  %v512_v15 = vadd.f32 1.0, %v720_v12 }
 0x23e   : > { %v724_v16 = vpop.eup %723  ;;  %v515_v17 = vmul.f32 0.5, %v511_v13  ;;  %v513_v18 = vadd.f32 1.0, %v722_v14 }
 0x23f   : > { %v516_v19 = vmul.f32 0.5, %v512_v15  ;;  %v514_v20 = vadd.f32 1.0, %v724_v16 }
 0x240   : > { %v519_v21 = vmul.f32 %v515_v17, %v479_v48  ;;  %v517_v22 = vmul.f32 0.5, %v513_v18 }
 0x241   : > { %v520_v23 = vmul.f32 %v516_v19, %v481_v50  ;;  %v518_v24 = vmul.f32 0.5, %v514_v20 }
 0x242   : > { %523 = vst [vmem:[%s328_s6] sm:$0xff] %v519_v21  ;;  %v521_v25 = vmul.f32 %v517_v22, %v483_v53 }
 0x243   : > { %524 = vst [vmem:[%s328_s6 + $0x8] sm:$0xff] %v520_v23  ;;  %v522_v26 = vmul.f32 %v518_v24, %v485_v56 }
 0x244   : > { %525 = vst [vmem:[%s328_s6 + $0x10] sm:$0xff] %v521_v25 }
 0x245   : > { %526 = vst [vmem:[%s328_s6 + $0x18] sm:$0xff] %v522_v26 }
 0x246 PF: > { %s15_s20 = sadd.s32 1, %s747_s20   ;;  %s861_s18 = smov %s743_s19 }
 0x247   : > { %p12_p5 = scmp.ge.s32.totalorder %s15_s20, 4   ;;  %s862_s19 = smov %s864_s21 }
 0x249   :  { %14 = sbr.rel (!%p12_p5) target bundleno = 2 (0x2), region = 76 }

// kernel: _lambda_.45
= control target key start
LH: loop header
LB: loop body
LE: loop exit
PB: predicated region body
PF: predicated region fallthrough
CT: control target
= control target key end

     0   :  { %s333_s12 = smov 0   ;;  %s369_s0 = inlined_call_operand.vmem [shape: f32[32,64], index: 0, kind: input, shape index: {}]   ;;  %s370_s1 = inlined_call_operand.vmem [shape: f32[1,64], index: 1, kind: input, shape index: {}]   ;;  %s371_s2 = inlined_call_operand.vmem [shape: f32[1,64], index: 2, kind: input, shape index: {}]   ;;  %s372_s3 = inlined_call_operand.vmem [shape: f32[32,64], index: 3, kind: output, shape index: {}]  }
   0x1 LB: > { %s280_s13 = sadd.s32 4294967295, %s311_s12   ;;  %p284_p0 = scmp.ge.s32.totalorder %s311_s12, 1  ;;  %s311_s12 = sphi %s333_s12, %s13_s12  }
   0x2   : > { %p138_p1 = scmp.lt.s32.totalorder %s311_s12, 3 }
   0x4   : > { %p139_p2 = pnand %p284_p0, %p138_p1 }
   0x5   : > { %s285_s14 = sshll.u32 (!%p139_p2), %s280_s13, 1  ;;  %vm176_vm0 = vcmask (!%p139_p2), 523264   ;;  %v289_v21 = vld [vmem:[%s370_s1] ss:$0 sm:$0xff] (!%p139_p2) }
   0x6   : > { %142 = sbr.rel (%p139_p2) target bundleno = 335 (0x14f), region = 32  ;;  %p163_p3 = scmp.lt.s32.totalorder (!%p139_p2), %s285_s14, 3  ;;  %v290_v23 = vld [vmem:[%s371_s2] ss:$0 sm:$0xff] (!%p139_p2) }
   0xd   : > { %s374_s14 = smov (!%p163_p3, %s285_s14), 3 }
   0xe   : > { %s286_s15 = sshll.u32 %s374_s14, 3 }
   0xf   : > { %s166_s18 = scalar_lea.vmem %s369_s0, %s286_s15  ;;  %s172_s25 = scalar_lea.vmem %s372_s3, %s286_s15 }
  0x10   : > { %v174_v0 = vld [vmem:[%s166_s18] sm:$0xff]  ;;  %v175_v1 = vld [vmem:[%s166_s18 + $0x8] sm:$0xff] }
  0x11   : > { %v177_v2 = vsel %vm176_vm0, %v174_v0, 0.0  ;;  %v180_v3 = vsel %vm176_vm0, %v175_v1, 0.0 }
  0x12   : > { %178 = vadd.xlane.f32.xlu0 %v177_v2 }
  0x16   : > { %181 = vadd.xlane.f32.xlu0 %v180_v3 }
  0x9f   : > { %v179_v4 = vpop.xlane.xlu0 %178 }
  0xa0   : > { %v184_v5 = vmul.f32 0.015625, %v179_v4 }
  0xa2   : > { %v186_v6 = vsub.f32 %v174_v0, %v184_v5 }
  0xa3   : > { %v182_v7 = vpop.xlane.xlu0 %181 }
  0xa4   : > { %v185_v8 = vmul.f32 0.015625, %v182_v7  ;;  %v188_v9 = vmul.f32 %v186_v6, %v186_v6 }
  0xa6   : > { %v187_v10 = vsub.f32 %v175_v1, %v185_v8  ;;  %v190_v11 = vsel %vm176_vm0, %v188_v9, 0.0 }
  0xa7   : > { %191 = vadd.xlane.f32.xlu1 %v190_v11 }
  0xa8   : > { %v189_v12 = vmul.f32 %v187_v10, %v187_v10 }
  0xaa   : > { %v193_v13 = vsel %vm176_vm0, %v189_v12, 0.0 }
  0xab   : > { %194 = vadd.xlane.f32.xlu1 %v193_v13 }
 0x134   : > { %v192_v14 = vpop.xlane.xlu1 %191 }
 0x135   : > { %v196_v15 = vmul.f32 0.015625, %v192_v14 }
 0x137   : > { %v198_v16 = vadd.f32 1e-05, %v196_v15 }
 0x138   : > { %v195_v17 = vpop.xlane.xlu1 %194 }
 0x139   : > { %301 = vrsqrt.f32 %v198_v16  ;;  %v197_v18 = vmul.f32 0.015625, %v195_v17 }
 0x13b   : > { %v199_v19 = vadd.f32 1e-05, %v197_v18 }
 0x13d   : > { %303 = vrsqrt.f32 %v199_v19 }
 0x143   : > { %v302_v20 = vpop.eup %301 }
 0x144   : > { %v202_v22 = vmul.f32 %v302_v20, %v186_v6 }
 0x146   : > { %v211_v24 = vmul.f32 %v289_v21, %v202_v22 }
 0x147   : > { %v304_v25 = vpop.eup %303 }
 0x148   : > { %v220_v26 = vadd.f32 %v290_v23, %v211_v24  ;;  %v203_v27 = vmul.f32 %v304_v25, %v187_v10 }
 0x14a   : > { %222 = vst.msk [vmem:[%s172_s25] sm:$0xff] %vm176_vm0, %v220_v26  ;;  %v212_v28 = vmul.f32 %v289_v21, %v203_v27 }
 0x14c   : > { %v221_v29 = vadd.f32 %v290_v23, %v212_v28 }
 0x14e   : > { %223 = vst.msk [vmem:[%s172_s25 + $0x8] sm:$0xff] %vm176_vm0, %v221_v29 }
 0x14f PF: > { %s13_s12 = sadd.s32 1, %s311_s12  }
 0x150   : > { %p10_p4 = scmp.ge.s32.totalorder %s13_s12, 4  }
 0x152   :  { %12 = sbr.rel (!%p10_p4) target bundleno = 1 (0x1), region = 62 }

// kernel: _lambda_.39
= control target key start
LH: loop header
LB: loop body
LE: loop exit
PB: predicated region body
PF: predicated region fallthrough
CT: control target
= control target key end

     0   :  { %s791_s15 = smov 0   ;;  %s793_s16 = smov 0   ;;  %s882_s0 = inlined_call_operand.vmem [shape: f32[32,256], index: 0, kind: input, shape index: {}]   ;;  %s883_s1 = inlined_call_operand.vmem [shape: bf16[256,64], index: 1, kind: input, shape index: {}]   ;;  %s884_s2 = inlined_call_operand.vmem [shape: f32[1,64], index: 2, kind: input, shape index: {}]   ;;  %s885_s3 = inlined_call_operand.vmem [shape: f32[32,64], index: 3, kind: input, shape index: {}]   ;;  %s886_s4 = inlined_call_operand.vmem [shape: f32[32,64], index: 4, kind: output, shape index: {}]  }
   0x1   :  { %s795_s17 = smov 0  }
   0x2 LB: > { %s33_s18 = sadd.s32 1, %s760_s16  ;;  %p652_p0 = scmp.ge.s32.totalorder %s764_s17, 1  ;;  %s764_s17 = sphi %s795_s17, %s14_s17   ;;  %s760_s16 = sphi %s793_s16, %s888_s16   ;;  %s756_s15 = sphi %s791_s15, %s887_s15  }
   0x3   : > { %p35_p1 = scmp.ge.s32.totalorder %s33_s18, 2  ;;  %p232_p2 = scmp.lt.s32.totalorder %s764_s17, 3 }
   0x5   : > { %s890_s18 = smov (%p35_p1, %s33_s18), 0  ;;  %p233_p3 = pnand %p652_p0, %p232_p2 }
   0x6   : > { %v726_v0 = vld [vmem:[%s883_s1 + $0x40] sm:$0xff] (!%p233_p3)   ;;  %s653_s21 = sshll.u32 (!%p233_p3), %s756_s15, 1  ;;  %v728_v2 = vld [vmem:[%s883_s1 + $0x48] sm:$0xff] (!%p233_p3)   ;;  %v730_v4 = vld [vmem:[%s883_s1 + $0x50] sm:$0xff] (!%p233_p3)   ;;  %vm514_vm0 = vcmask (!%p233_p3), 523264  }
   0x7   : > { %236 = sbr.rel (%p233_p3) target bundleno = 261 (0x105), region = 36  ;;  %v727_v1 = vld [vmem:[%s883_s1] sm:$0xff] (!%p233_p3)   ;;  %680 = vmatprep.subr.bf16.mxu0 (!%p233_p3), %v726_v0  ;;  %p287_p4 = scmp.lt.s32.totalorder (!%p233_p3), %s653_s21, 3  ;;  %v729_v3 = vld [vmem:[%s883_s1 + $0x8] sm:$0xff] (!%p233_p3)   ;;  %v731_v5 = vld [vmem:[%s883_s1 + $0x10] sm:$0xff] (!%p233_p3)  }
   0x8   : > { %681 = vmatpush3.bf16.msra.mxu0 (!%p233_p3), %v727_v1  ;;  %v732_v6 = vld [vmem:[%s883_s1 + $0x58] sm:$0xff] (!%p233_p3)   ;;  %v734_v8 = vld [vmem:[%s883_s1 + $0x60] sm:$0xff] (!%p233_p3)   ;;  %v736_v10 = vld [vmem:[%s883_s1 + $0x68] sm:$0xff] (!%p233_p3)  }
   0x9   : > { %682 = vmatprep.subr.bf16.mxu0 (!%p233_p3), %v728_v2  ;;  %v733_v7 = vld [vmem:[%s883_s1 + $0x18] sm:$0xff] (!%p233_p3)   ;;  %v735_v9 = vld [vmem:[%s883_s1 + $0x20] sm:$0xff] (!%p233_p3)   ;;  %v737_v14 = vld [vmem:[%s883_s1 + $0x28] sm:$0xff] (!%p233_p3)  }
   0xa   : > { %v738_v15 = vld [vmem:[%s883_s1 + $0x70] sm:$0xff] (!%p233_p3)   ;;  %v740_v17 = vld [vmem:[%s883_s1 + $0x78] sm:$0xff] (!%p233_p3)   ;;  %v660_v23 = vld [vmem:[%s884_s2] ss:$0 sm:$0xff] (!%p233_p3) }
   0xb   : > { %v739_v16 = vld [vmem:[%s883_s1 + $0x30] sm:$0xff] (!%p233_p3)   ;;  %v741_v18 = vld [vmem:[%s883_s1 + $0x38] sm:$0xff] (!%p233_p3)  }
   0xc   : > { %683 = vmatpush3.bf16.msra.mxu0 (!%p233_p3), %v729_v3 }
   0xd   : > { %684 = vmatprep.subr.bf16.mxu0 (!%p233_p3), %v730_v4 }
   0xe   : > { %s892_s21 = smov (!%p287_p4, %s653_s21), 3 }
   0xf   : > { %s679_s8 = sshll.u32 %s892_s21, 4 }
  0x10   : > { %685 = vmatpush3.bf16.msra.mxu0 %v731_v5  ;;  %s294_s15 = scalar_lea.vmem %s882_s0, %s679_s8  ;;  %s657_s8 = sshll.u32 %s892_s21, 3 }
  0x11   : > { %686 = vmatprep.subr.bf16.mxu0 %v732_v6  ;;  %v329_v11 = vld [vmem:[%s294_s15 + $0x8] sm:$0xff]  ;;  %v331_v12 = vld [vmem:[%s294_s15 + $0x18] sm:$0xff]  ;;  %v328_v19 = vld [vmem:[%s294_s15] sm:$0xff]  ;;  %s316_s11 = scalar_lea.vmem %s885_s3, %s657_s8  ;;  %s325_s21 = scalar_lea.vmem %s886_s4, %s657_s8 }
  0x12   : > { %v333_v13 = vpack.c.bf16 %v331_v12, %v329_v11  ;;  %v330_v20 = vld [vmem:[%s294_s15 + $0x10] sm:$0xff]  ;;  %v510_v27 = vld [vmem:[%s316_s11] sm:$0xff]  ;;  %v511_v31 = vld [vmem:[%s316_s11 + $0x8] sm:$0xff] }
  0x13   : > { %v332_v21 = vpack.c.bf16 %v330_v20, %v328_v19 }
  0x14   : > { %687 = vmatpush3.bf16.msra.mxu0 %v733_v7  ;;  %501 = vmatprep.mubr.bf16.mxu0 %v333_v13 }
  0x15   : > { %688 = vmatprep.subr.bf16.mxu0 %v734_v8 }
  0x18   : > { %689 = vmatpush3.bf16.msra.mxu0 %v735_v9 }
  0x19   : > { %690 = vmatprep.subr.bf16.mxu0 %v736_v10 }
  0x1c   : > { %691 = vmatpush3.bf16.msra.mxu0 %v737_v14 }
  0x1d   : > { %692 = vmatprep.subr.bf16.mxu0 %v738_v15 }
  0x20   : > { %693 = vmatpush3.bf16.msra.mxu0 %v739_v16 }
  0x21   : > { %694 = vmatprep.subr.bf16.mxu0 %v740_v17 }
  0x24   : > { %695 = vmatpush3.bf16.msra.mxu0 %v741_v18 }
  0x27   : > { %502 = vmatmul.mubr.bf16.vlgmr.msra.gmra.mrb[0].mxu0 %v332_v21 }
  0xfa   : > { %v696_v22 = vpop.f32.mrb[0].mxu0 }
  0xfb   : > { %v697_v24 = vpop.f32.mrb[1].mxu0 }
  0xfc   : > { %v698_v25 = vadd.f32 %v697_v24, %v696_v22  ;;  %v699_v26 = vpop.f32.mrb[2].mxu0 }
  0xfd   : > { %v700_v28 = vpop.f32.mrb[3].mxu0 }
  0xfe   : > { %v504_v29 = vadd.f32 %v698_v25, %v660_v23  ;;  %v701_v30 = vadd.f32 %v700_v28, %v699_v26 }
 0x100   : > { %v512_v32 = vadd.f32 %v510_v27, %v504_v29  ;;  %v507_v33 = vadd.f32 %v701_v30, %v660_v23 }
 0x102   : > { %515 = vst.msk [vmem:[%s325_s21] sm:$0xff] %vm514_vm0, %v512_v32  ;;  %v513_v34 = vadd.f32 %v511_v31, %v507_v33 }
 0x104   : > { %516 = vst.msk [vmem:[%s325_s21 + $0x8] sm:$0xff] %vm514_vm0, %v513_v34 }
 0x105 PF: > { %s14_s17 = sadd.s32 1, %s764_s17   ;;  %s887_s15 = smov %s760_s16 }
 0x106   : > { %p11_p5 = scmp.ge.s32.totalorder %s14_s17, 4   ;;  %s888_s16 = smov %s890_s18 }
 0x108   :  { %13 = sbr.rel (!%p11_p5) target bundleno = 2 (0x2), region = 75 }

</bundles_post_ra>
